<compile_context>
chip_gen: v5e
topology: v5e:2x2
jax: 0.10.0
libtpu: 0.0.40
codegen_flags: <defaults>
</compile_context>

<pallas_src>
import jax
import jax.numpy as jnp
import numpy as np
from jax import lax
from jax.experimental import pallas as pl
from jax.experimental.pallas import tpu as pltpu

EPS = 1e-6

_PARAM_ORDER = ("ln1_w", "ln1_b", "w1", "b1", "wdw", "bdw", "wsca", "bsca",
                "w3", "b3", "beta", "ln2_w", "ln2_b", "w4", "b4", "w5", "b5",
                "gamma")


def pack_params(P, c):
    """Pack every (small) parameter into one (rows, 2c) f32 array.

    Returns (packed, layout) with layout[name] = (row_start, n_rows, n_cols).
    One packed array -> one BlockSpec and one DMA per grid step instead of
    ~18 tiny, individually (8,128)-padded, double-buffered transfers.
    """
    width = 2 * c
    chunks, layout, row = [], {}, 0
    for name in _PARAM_ORDER:
        a = jnp.asarray(P[name], jnp.float32)
        if a.ndim == 1:
            a = a[None, :]
        r, cols = a.shape
        if cols < width:
            a = jnp.pad(a, ((0, 0), (0, width - cols)))
        chunks.append(a)
        layout[name] = (row, r, cols)
        row += r
    packed = jnp.concatenate(chunks, axis=0)
    pad_rows = (-packed.shape[0]) % 8          # tidy sublane tiling
    if pad_rows:
        packed = jnp.pad(packed, ((0, pad_rows), (0, 0)))
    return packed, layout


def _make_nafblock_kernel(layout, C, H, W):
    HW = H * W
    C2 = 2 * C

    def kernel(x_ref, pv_ref, o_ref, pad_ref):
        pv = pv_ref[...]                                   # (rows, 2C), tiny

        def vec(name):                                     # 1-row params -> (n,)
            r0, _, nc = layout[name]
            return pv[r0, :nc]

        def mat(name):                                     # matrices -> (r, n)
            r0, nr, nc = layout[name]
            return pv[r0:r0 + nr, :nc]

        def layer_norm(v, w, b):                           # LayerNorm2d: per-pixel over C
            mu = jnp.mean(v, axis=-1, keepdims=True)
            var = jnp.mean((v - mu) * (v - mu), axis=-1, keepdims=True)
            return (v - mu) * lax.rsqrt(var + EPS) * w + b

        x = x_ref[0].reshape(HW, C)                        # (HW, C)

        # ---------------- branch 1: conv path ----------------
        xn = layer_norm(x, vec("ln1_w"), vec("ln1_b"))
        # conv1: fused 1x1, C -> 2C (single matmul; halves sliced later)
        h = jnp.dot(xn, mat("w1"), preferred_element_type=jnp.float32) + vec("b1")

        # conv2: depthwise 3x3, padding=1, both halves at once, done as 9
        # static-slice FMAs off a zero-padded VMEM scratch (no rolls/masks).
        pad_ref[...] = jnp.zeros((H + 2, W + 2, C2), jnp.float32)
        pad_ref[1:H + 1, 1:W + 1, :] = h.reshape(H, W, C2)
        wdw = mat("wdw")                                   # (9, 2C)
        d = jnp.zeros((H, W, C2), jnp.float32) + vec("bdw")
        k = 0
        for dy in range(3):
            for dx in range(3):
                d = d + pad_ref[dy:dy + H, dx:dx + W, :] * wdw[k]
                k += 1

        # SimpleGate
        g = (d[..., :C] * d[..., C:]).reshape(HW, C)
        # SCA: global average pool -> 1x1 conv -> per-channel scale
        pooled = jnp.mean(g, axis=0, keepdims=True)        # (1, C)
        sca = jnp.dot(pooled, mat("wsca"),
                      preferred_element_type=jnp.float32) + vec("bsca")
        g = g * sca
        # conv3: 1x1, C -> C
        x3 = jnp.dot(g, mat("w3"), preferred_element_type=jnp.float32) + vec("b3")
        y = x + x3 * vec("beta")                           # residual 1

        # ---------------- branch 2: FFN path ----------------
        zn = layer_norm(y, vec("ln2_w"), vec("ln2_b"))
        f = jnp.dot(zn, mat("w4"), preferred_element_type=jnp.float32) + vec("b4")
        f = f[:, :C] * f[:, C:]                            # SimpleGate
        f = jnp.dot(f, mat("w5"), preferred_element_type=jnp.float32) + vec("b5")

        o_ref[0] = (y + f * vec("gamma")).reshape(H, W, C)

    return kernel


def nafblock_pallas(x_nchw, P):
    N, C, H, W = x_nchw.shape
    x = jnp.transpose(x_nchw, (0, 2, 3, 1)).astype(jnp.float32)   # NHWC
    packed, layout = pack_params(P, C)
    kernel = _make_nafblock_kernel(layout, C, H, W)

    out = pl.pallas_call(
        kernel,
        out_shape=jax.ShapeDtypeStruct((N, H, W, C), jnp.float32),
        grid=(N,),
        in_specs=[
            pl.BlockSpec((1, H, W, C), lambda b: (b, 0, 0, 0)),
            pl.BlockSpec(packed.shape, lambda b: (0, 0)),
        ],
        out_specs=pl.BlockSpec((1, H, W, C), lambda b: (b, 0, 0, 0)),
        scratch_shapes=[pltpu.VMEM((H + 2, W + 2, 2 * C), jnp.float32)],
        compiler_params=pltpu.CompilerParams(dimension_semantics=("parallel",)),
    )(x, packed)
    return jnp.transpose(out, (0, 3, 1, 2))                       # back to NCHW


# ------------------- plain-JAX reference (for verification) -------------------
def nafblock_ref(x_nchw, P):
    x = jnp.transpose(x_nchw, (0, 2, 3, 1)).astype(jnp.float32)
    N, H, W, C = x.shape

    def ln(v, w, b):
        mu = v.mean(-1, keepdims=True)
        var = ((v - mu) ** 2).mean(-1, keepdims=True)
        return (v - mu) / jnp.sqrt(var + EPS) * w + b

    def dw(v, wk, bk):
        vp = jnp.pad(v, ((0, 0), (1, 1), (1, 1), (0, 0)))
        acc = jnp.zeros_like(v) + bk
        k = 0
        for dy in range(3):
            for dx in range(3):
                acc = acc + vp[:, dy:dy + H, dx:dx + W, :] * wk[k]
                k += 1
        return acc

    h = ln(x, P["ln1_w"], P["ln1_b"])
    h = jnp.einsum("nhwc,cd->nhwd", h, P["w1"]) + P["b1"]
    h = dw(h, P["wdw"], P["bdw"])
    h = h[..., :C] * h[..., C:]
    pooled = h.mean(axis=(1, 2), keepdims=True)
    sca = jnp.einsum("nhwc,cd->nhwd", pooled, P["wsca"]) + P["bsca"]
    h = h * sca
    h = jnp.einsum("nhwc,cd->nhwd", h, P["w3"]) + P["b3"]
    y = x + h * P["beta"]
    z = ln(y, P["ln2_w"], P["ln2_b"])
    z = jnp.einsum("nhwc,cd->nhwd", z, P["w4"]) + P["b4"]
    z = z[..., :C] * z[..., C:]
    z = jnp.einsum("nhwc,cd->nhwd", z, P["w5"]) + P["b5"]
    out = y + z * P["gamma"]
    return jnp.transpose(out, (0, 3, 1, 2))


def init_params(key, c):
    # Deterministic synthetic weights (module __init__ gives the shapes).
    # beta/gamma are initialized non-zero (torch init is zeros) so the full
    # data path is exercised.  1x1 conv weights stored as (Cin, Cout);
    # depthwise 3x3 stored as (9, Cd) with k = (dy+1)*3 + (dx+1).
    dw_ch = 2 * c
    ffn_ch = 2 * c
    ks = jax.random.split(key, 18)
    n = lambda k, s, sc=0.2: sc * jax.random.normal(k, s, dtype=jnp.float32)
    return {
        "ln1_w": 1.0 + n(ks[0], (1, c), 0.1),
        "ln1_b": n(ks[1], (1, c), 0.1),
        "w1": n(ks[2], (c, dw_ch)),
        "b1": n(ks[3], (1, dw_ch), 0.05),
        "wdw": n(ks[4], (9, dw_ch)),
        "bdw": n(ks[5], (1, dw_ch), 0.05),
        "wsca": n(ks[6], (c, c)),
        "bsca": n(ks[7], (1, c), 0.05),
        "w3": n(ks[8], (c, c)),
        "b3": n(ks[9], (1, c), 0.05),
        "beta": n(ks[10], (1, c), 0.5),
        "ln2_w": 1.0 + n(ks[11], (1, c), 0.1),
        "ln2_b": n(ks[12], (1, c), 0.1),
        "w4": n(ks[13], (c, ffn_ch)),
        "b4": n(ks[14], (1, ffn_ch), 0.05),
        "w5": n(ks[15], (c, c)),
        "b5": n(ks[16], (1, c), 0.05),
        "gamma": n(ks[17], (1, c), 0.5),
    }


if __name__ == "__main__":
    key = jax.random.PRNGKey(0)
    kx, kp = jax.random.split(key)
    N, C, H, W = 2, 4, 16, 16
    x = jax.random.normal(kx, (N, C, H, W), dtype=jnp.float32)
    P = init_params(kp, C)

    out = jax.block_until_ready(jax.jit(nafblock_pallas)(x, P))
    ref = jax.block_until_ready(nafblock_ref(x, P))

    np.testing.assert_allclose(np.asarray(out), np.asarray(ref),
                               rtol=2e-3, atol=2e-3)
    print("KERNEL_OK")
</pallas_src>

<mosaic_0001>
module attributes {stable_mosaic.version = 11 : i64} {
  func.func @kernel(%arg0: i32, %arg1: memref<1x16x16x4xf32, #tpu.memory_space<vmem>>, %arg2: memref<48x8xf32, #tpu.memory_space<vmem>>, %arg3: memref<1x16x16x4xf32, #tpu.memory_space<vmem>>, %arg4: memref<18x18x8xf32, #tpu.memory_space<vmem>>) attributes {dimension_semantics = [#tpu.dimension_semantics<parallel>], iteration_bounds = array<i64: 2>, scalar_prefetch = 0 : i64, scratch_operands = 1 : i64, tpu.core_type = #tpu.core_type<tc>, window_params = [{transform_indices = @transform_0, window_bounds = array<i64: 1, 16, 16, 4>}, {pipeline_mode = #tpu.pipeline_mode<synchronous>, transform_indices = @transform_1, window_bounds = array<i64: 48, 8>}, {transform_indices = @transform_2, window_bounds = array<i64: 1, 16, 16, 4>}]} {
    %c0 = arith.constant 0 : index
    %c0_0 = arith.constant 0 : index
    %0 = vector.load %arg2[%c0, %c0_0] : memref<48x8xf32, #tpu.memory_space<vmem>>, vector<48x8xf32>
    %c0_1 = arith.constant 0 : index
    %c0_2 = arith.constant 0 : index
    %c0_3 = arith.constant 0 : index
    %c0_4 = arith.constant 0 : index
    %1 = vector.load %arg1[%c0_1, %c0_2, %c0_3, %c0_4] : memref<1x16x16x4xf32, #tpu.memory_space<vmem>>, vector<1x16x16x4xf32>
    %2 = vector.shape_cast %1 : vector<1x16x16x4xf32> to vector<16x16x4xf32>
    %3 = vector.shape_cast %2 : vector<16x16x4xf32> to vector<256x4xf32>
    %4 = vector.extract_strided_slice %0 {offsets = [0, 0], sizes = [1, 4], strides = [1, 1]} : vector<48x8xf32> to vector<1x4xf32>
    %5 = vector.shape_cast %4 : vector<1x4xf32> to vector<4xf32>
    %6 = vector.extract_strided_slice %0 {offsets = [1, 0], sizes = [1, 4], strides = [1, 1]} : vector<48x8xf32> to vector<1x4xf32>
    %7 = vector.shape_cast %6 : vector<1x4xf32> to vector<4xf32>
    %cst = arith.constant dense<0.000000e+00> : vector<256xf32>
    %8 = vector.multi_reduction <add>, %3, %cst [1] : vector<256x4xf32> to vector<256xf32>
    %9 = vector.shape_cast %8 : vector<256xf32> to vector<256x1xf32>
    %cst_5 = arith.constant 4.000000e+00 : f32
    %10 = vector.broadcast %cst_5 : f32 to vector<256x1xf32>
    %11 = arith.divf %9, %10 : vector<256x1xf32>
    %12 = vector.broadcast %11 : vector<256x1xf32> to vector<256x4xf32>
    %13 = arith.subf %3, %12 : vector<256x4xf32>
    %14 = vector.broadcast %11 : vector<256x1xf32> to vector<256x4xf32>
    %15 = arith.subf %3, %14 : vector<256x4xf32>
    %16 = arith.mulf %13, %15 : vector<256x4xf32>
    %cst_6 = arith.constant dense<0.000000e+00> : vector<256xf32>
    %17 = vector.multi_reduction <add>, %16, %cst_6 [1] : vector<256x4xf32> to vector<256xf32>
    %18 = vector.shape_cast %17 : vector<256xf32> to vector<256x1xf32>
    %cst_7 = arith.constant 4.000000e+00 : f32
    %19 = vector.broadcast %cst_7 : f32 to vector<256x1xf32>
    %20 = arith.divf %18, %19 : vector<256x1xf32>
    %21 = vector.broadcast %11 : vector<256x1xf32> to vector<256x4xf32>
    %22 = arith.subf %3, %21 : vector<256x4xf32>
    %cst_8 = arith.constant 9.99999997E-7 : f32
    %23 = vector.broadcast %cst_8 : f32 to vector<256x1xf32>
    %24 = arith.addf %20, %23 : vector<256x1xf32>
    %25 = math.rsqrt %24 : vector<256x1xf32>
    %26 = vector.broadcast %25 : vector<256x1xf32> to vector<256x4xf32>
    %27 = arith.mulf %22, %26 : vector<256x4xf32>
    %28 = vector.shape_cast %5 : vector<4xf32> to vector<1x4xf32>
    %29 = vector.broadcast %28 : vector<1x4xf32> to vector<256x4xf32>
    %30 = arith.mulf %27, %29 : vector<256x4xf32>
    %31 = vector.shape_cast %7 : vector<4xf32> to vector<1x4xf32>
    %32 = vector.broadcast %31 : vector<1x4xf32> to vector<256x4xf32>
    %33 = arith.addf %30, %32 : vector<256x4xf32>
    %34 = vector.extract_strided_slice %0 {offsets = [2, 0], sizes = [4, 8], strides = [1, 1]} : vector<48x8xf32> to vector<4x8xf32>
    %cst_9 = arith.constant dense<0.000000e+00> : vector<256x8xf32>
    %35 = tpu.matmul %33, %34, %cst_9 {dimension_numbers = #tpu.dot_dimension_numbers<[1], [0], [0], [1], [0, 0, 1, 1], [], []>} : vector<256x4xf32>, vector<4x8xf32>, vector<256x8xf32> -> vector<256x8xf32>
    %36 = vector.extract_strided_slice %0 {offsets = [6, 0], sizes = [1, 8], strides = [1, 1]} : vector<48x8xf32> to vector<1x8xf32>
    %37 = vector.shape_cast %36 : vector<1x8xf32> to vector<8xf32>
    %38 = vector.shape_cast %37 : vector<8xf32> to vector<1x8xf32>
    %39 = vector.broadcast %38 : vector<1x8xf32> to vector<256x8xf32>
    %40 = arith.addf %35, %39 : vector<256x8xf32>
    %cst_10 = arith.constant 0.000000e+00 : f32
    %41 = vector.broadcast %cst_10 : f32 to vector<18x18x8xf32>
    %c0_11 = arith.constant 0 : index
    %c0_12 = arith.constant 0 : index
    %c0_13 = arith.constant 0 : index
    %42 = vector.load %arg4[%c0_11, %c0_12, %c0_13] : memref<18x18x8xf32, #tpu.memory_space<vmem>>, vector<18x18x8xf32>
    tpu.vector_store %arg4[%c0_11, %c0_12, %c0_13], %41 {strides = array<i32>} : memref<18x18x8xf32, #tpu.memory_space<vmem>>, vector<18x18x8xf32>,
    %43 = vector.shape_cast %40 : vector<256x8xf32> to vector<16x16x8xf32>
    %c1 = arith.constant 1 : index
    %c1_14 = arith.constant 1 : index
    %c0_15 = arith.constant 0 : index
    %44 = vector.load %arg4[%c1, %c1_14, %c0_15] : memref<18x18x8xf32, #tpu.memory_space<vmem>>, vector<16x16x8xf32>
    tpu.vector_store %arg4[%c1, %c1_14, %c0_15], %43 {strides = array<i32>} : memref<18x18x8xf32, #tpu.memory_space<vmem>>, vector<16x16x8xf32>,
    %45 = vector.extract_strided_slice %0 {offsets = [7, 0], sizes = [9, 8], strides = [1, 1]} : vector<48x8xf32> to vector<9x8xf32>
    %cst_16 = arith.constant 0.000000e+00 : f32
    %46 = vector.broadcast %cst_16 : f32 to vector<16x16x8xf32>
    %47 = vector.extract_strided_slice %0 {offsets = [16, 0], sizes = [1, 8], strides = [1, 1]} : vector<48x8xf32> to vector<1x8xf32>
    %48 = vector.shape_cast %47 : vector<1x8xf32> to vector<8xf32>
    %49 = vector.shape_cast %48 : vector<8xf32> to vector<1x1x8xf32>
    %50 = vector.broadcast %49 : vector<1x1x8xf32> to vector<16x16x8xf32>
    %51 = arith.addf %46, %50 : vector<16x16x8xf32>
    %c0_17 = arith.constant 0 : index
    %c0_18 = arith.constant 0 : index
    %c0_19 = arith.constant 0 : index
    %52 = vector.load %arg4[%c0_17, %c0_18, %c0_19] : memref<18x18x8xf32, #tpu.memory_space<vmem>>, vector<16x16x8xf32>
    %53 = vector.extract_strided_slice %45 {offsets = [0, 0], sizes = [1, 8], strides = [1, 1]} : vector<9x8xf32> to vector<1x8xf32>
    %54 = vector.shape_cast %53 : vector<1x8xf32> to vector<8xf32>
    %55 = vector.shape_cast %54 : vector<8xf32> to vector<1x1x8xf32>
    %56 = vector.broadcast %55 : vector<1x1x8xf32> to vector<16x16x8xf32>
    %57 = arith.mulf %52, %56 : vector<16x16x8xf32>
    %58 = arith.addf %51, %57 : vector<16x16x8xf32>
    %c0_20 = arith.constant 0 : index
    %c1_21 = arith.constant 1 : index
    %c0_22 = arith.constant 0 : index
    %59 = vector.load %arg4[%c0_20, %c1_21, %c0_22] : memref<18x18x8xf32, #tpu.memory_space<vmem>>, vector<16x16x8xf32>
    %60 = vector.extract_strided_slice %45 {offsets = [1, 0], sizes = [1, 8], strides = [1, 1]} : vector<9x8xf32> to vector<1x8xf32>
    %61 = vector.shape_cast %60 : vector<1x8xf32> to vector<8xf32>
    %62 = vector.shape_cast %61 : vector<8xf32> to vector<1x1x8xf32>
    %63 = vector.broadcast %62 : vector<1x1x8xf32> to vector<16x16x8xf32>
    %64 = arith.mulf %59, %63 : vector<16x16x8xf32>
    %65 = arith.addf %58, %64 : vector<16x16x8xf32>
    %c0_23 = arith.constant 0 : index
    %c2 = arith.constant 2 : index
    %c0_24 = arith.constant 0 : index
    %66 = vector.load %arg4[%c0_23, %c2, %c0_24] : memref<18x18x8xf32, #tpu.memory_space<vmem>>, vector<16x16x8xf32>
    %67 = vector.extract_strided_slice %45 {offsets = [2, 0], sizes = [1, 8], strides = [1, 1]} : vector<9x8xf32> to vector<1x8xf32>
    %68 = vector.shape_cast %67 : vector<1x8xf32> to vector<8xf32>
    %69 = vector.shape_cast %68 : vector<8xf32> to vector<1x1x8xf32>
    %70 = vector.broadcast %69 : vector<1x1x8xf32> to vector<16x16x8xf32>
    %71 = arith.mulf %66, %70 : vector<16x16x8xf32>
    %72 = arith.addf %65, %71 : vector<16x16x8xf32>
    %c1_25 = arith.constant 1 : index
    %c0_26 = arith.constant 0 : index
    %c0_27 = arith.constant 0 : index
    %73 = vector.load %arg4[%c1_25, %c0_26, %c0_27] : memref<18x18x8xf32, #tpu.memory_space<vmem>>, vector<16x16x8xf32>
    %74 = vector.extract_strided_slice %45 {offsets = [3, 0], sizes = [1, 8], strides = [1, 1]} : vector<9x8xf32> to vector<1x8xf32>
    %75 = vector.shape_cast %74 : vector<1x8xf32> to vector<8xf32>
    %76 = vector.shape_cast %75 : vector<8xf32> to vector<1x1x8xf32>
    %77 = vector.broadcast %76 : vector<1x1x8xf32> to vector<16x16x8xf32>
    %78 = arith.mulf %73, %77 : vector<16x16x8xf32>
    %79 = arith.addf %72, %78 : vector<16x16x8xf32>
    %c1_28 = arith.constant 1 : index
    %c1_29 = arith.constant 1 : index
    %c0_30 = arith.constant 0 : index
    %80 = vector.load %arg4[%c1_28, %c1_29, %c0_30] : memref<18x18x8xf32, #tpu.memory_space<vmem>>, vector<16x16x8xf32>
    %81 = vector.extract_strided_slice %45 {offsets = [4, 0], sizes = [1, 8], strides = [1, 1]} : vector<9x8xf32> to vector<1x8xf32>
    %82 = vector.shape_cast %81 : vector<1x8xf32> to vector<8xf32>
    %83 = vector.shape_cast %82 : vector<8xf32> to vector<1x1x8xf32>
    %84 = vector.broadcast %83 : vector<1x1x8xf32> to vector<16x16x8xf32>
    %85 = arith.mulf %80, %84 : vector<16x16x8xf32>
    %86 = arith.addf %79, %85 : vector<16x16x8xf32>
    %c1_31 = arith.constant 1 : index
    %c2_32 = arith.constant 2 : index
    %c0_33 = arith.constant 0 : index
    %87 = vector.load %arg4[%c1_31, %c2_32, %c0_33] : memref<18x18x8xf32, #tpu.memory_space<vmem>>, vector<16x16x8xf32>
    %88 = vector.extract_strided_slice %45 {offsets = [5, 0], sizes = [1, 8], strides = [1, 1]} : vector<9x8xf32> to vector<1x8xf32>
    %89 = vector.shape_cast %88 : vector<1x8xf32> to vector<8xf32>
    %90 = vector.shape_cast %89 : vector<8xf32> to vector<1x1x8xf32>
    %91 = vector.broadcast %90 : vector<1x1x8xf32> to vector<16x16x8xf32>
    %92 = arith.mulf %87, %91 : vector<16x16x8xf32>
    %93 = arith.addf %86, %92 : vector<16x16x8xf32>
    %c2_34 = arith.constant 2 : index
    %c0_35 = arith.constant 0 : index
    %c0_36 = arith.constant 0 : index
    %94 = vector.load %arg4[%c2_34, %c0_35, %c0_36] : memref<18x18x8xf32, #tpu.memory_space<vmem>>, vector<16x16x8xf32>
    %95 = vector.extract_strided_slice %45 {offsets = [6, 0], sizes = [1, 8], strides = [1, 1]} : vector<9x8xf32> to vector<1x8xf32>
    %96 = vector.shape_cast %95 : vector<1x8xf32> to vector<8xf32>
    %97 = vector.shape_cast %96 : vector<8xf32> to vector<1x1x8xf32>
    %98 = vector.broadcast %97 : vector<1x1x8xf32> to vector<16x16x8xf32>
    %99 = arith.mulf %94, %98 : vector<16x16x8xf32>
    %100 = arith.addf %93, %99 : vector<16x16x8xf32>
    %c2_37 = arith.constant 2 : index
    %c1_38 = arith.constant 1 : index
    %c0_39 = arith.constant 0 : index
    %101 = vector.load %arg4[%c2_37, %c1_38, %c0_39] : memref<18x18x8xf32, #tpu.memory_space<vmem>>, vector<16x16x8xf32>
    %102 = vector.extract_strided_slice %45 {offsets = [7, 0], sizes = [1, 8], strides = [1, 1]} : vector<9x8xf32> to vector<1x8xf32>
    %103 = vector.shape_cast %102 : vector<1x8xf32> to vector<8xf32>
    %104 = vector.shape_cast %103 : vector<8xf32> to vector<1x1x8xf32>
    %105 = vector.broadcast %104 : vector<1x1x8xf32> to vector<16x16x8xf32>
    %106 = arith.mulf %101, %105 : vector<16x16x8xf32>
    %107 = arith.addf %100, %106 : vector<16x16x8xf32>
    %c2_40 = arith.constant 2 : index
    %c2_41 = arith.constant 2 : index
    %c0_42 = arith.constant 0 : index
    %108 = vector.load %arg4[%c2_40, %c2_41, %c0_42] : memref<18x18x8xf32, #tpu.memory_space<vmem>>, vector<16x16x8xf32>
    %109 = vector.extract_strided_slice %45 {offsets = [8, 0], sizes = [1, 8], strides = [1, 1]} : vector<9x8xf32> to vector<1x8xf32>
    %110 = vector.shape_cast %109 : vector<1x8xf32> to vector<8xf32>
    %111 = vector.shape_cast %110 : vector<8xf32> to vector<1x1x8xf32>
    %112 = vector.broadcast %111 : vector<1x1x8xf32> to vector<16x16x8xf32>
    %113 = arith.mulf %108, %112 : vector<16x16x8xf32>
    %114 = arith.addf %107, %113 : vector<16x16x8xf32>
    %115 = vector.extract_strided_slice %114 {offsets = [0, 0, 0], sizes = [16, 16, 4], strides = [1, 1, 1]} : vector<16x16x8xf32> to vector<16x16x4xf32>
    %116 = vector.extract_strided_slice %114 {offsets = [0, 0, 4], sizes = [16, 16, 4], strides = [1, 1, 1]} : vector<16x16x8xf32> to vector<16x16x4xf32>
    %117 = arith.mulf %115, %116 : vector<16x16x4xf32>
    %118 = vector.shape_cast %117 : vector<16x16x4xf32> to vector<256x4xf32>
    %cst_43 = arith.constant dense<0.000000e+00> : vector<4xf32>
    %119 = vector.multi_reduction <add>, %118, %cst_43 [0] : vector<256x4xf32> to vector<4xf32>
    %120 = vector.shape_cast %119 : vector<4xf32> to vector<1x4xf32>
    %cst_44 = arith.constant 2.560000e+02 : f32
    %121 = vector.broadcast %cst_44 : f32 to vector<1x4xf32>
    %122 = arith.divf %120, %121 : vector<1x4xf32>
    %123 = vector.extract_strided_slice %0 {offsets = [17, 0], sizes = [4, 4], strides = [1, 1]} : vector<48x8xf32> to vector<4x4xf32>
    %cst_45 = arith.constant dense<0.000000e+00> : vector<1x4xf32>
    %124 = tpu.matmul %122, %123, %cst_45 {dimension_numbers = #tpu.dot_dimension_numbers<[1], [0], [0], [1], [0, 0, 1, 1], [], []>} : vector<1x4xf32>, vector<4x4xf32>, vector<1x4xf32> -> vector<1x4xf32>
    %125 = vector.extract_strided_slice %0 {offsets = [21, 0], sizes = [1, 4], strides = [1, 1]} : vector<48x8xf32> to vector<1x4xf32>
    %126 = vector.shape_cast %125 : vector<1x4xf32> to vector<4xf32>
    %127 = vector.shape_cast %126 : vector<4xf32> to vector<1x4xf32>
    %128 = arith.addf %124, %127 : vector<1x4xf32>
    %129 = vector.broadcast %128 : vector<1x4xf32> to vector<256x4xf32>
    %130 = arith.mulf %118, %129 : vector<256x4xf32>
    %131 = vector.extract_strided_slice %0 {offsets = [22, 0], sizes = [4, 4], strides = [1, 1]} : vector<48x8xf32> to vector<4x4xf32>
    %cst_46 = arith.constant dense<0.000000e+00> : vector<256x4xf32>
    %132 = tpu.matmul %130, %131, %cst_46 {dimension_numbers = #tpu.dot_dimension_numbers<[1], [0], [0], [1], [0, 0, 1, 1], [], []>} : vector<256x4xf32>, vector<4x4xf32>, vector<256x4xf32> -> vector<256x4xf32>
    %133 = vector.extract_strided_slice %0 {offsets = [26, 0], sizes = [1, 4], strides = [1, 1]} : vector<48x8xf32> to vector<1x4xf32>
    %134 = vector.shape_cast %133 : vector<1x4xf32> to vector<4xf32>
    %135 = vector.shape_cast %134 : vector<4xf32> to vector<1x4xf32>
    %136 = vector.broadcast %135 : vector<1x4xf32> to vector<256x4xf32>
    %137 = arith.addf %132, %136 : vector<256x4xf32>
    %138 = vector.extract_strided_slice %0 {offsets = [27, 0], sizes = [1, 4], strides = [1, 1]} : vector<48x8xf32> to vector<1x4xf32>
    %139 = vector.shape_cast %138 : vector<1x4xf32> to vector<4xf32>
    %140 = vector.shape_cast %139 : vector<4xf32> to vector<1x4xf32>
    %141 = vector.broadcast %140 : vector<1x4xf32> to vector<256x4xf32>
    %142 = arith.mulf %137, %141 : vector<256x4xf32>
    %143 = arith.addf %3, %142 : vector<256x4xf32>
    %144 = vector.extract_strided_slice %0 {offsets = [28, 0], sizes = [1, 4], strides = [1, 1]} : vector<48x8xf32> to vector<1x4xf32>
    %145 = vector.shape_cast %144 : vector<1x4xf32> to vector<4xf32>
    %146 = vector.extract_strided_slice %0 {offsets = [29, 0], sizes = [1, 4], strides = [1, 1]} : vector<48x8xf32> to vector<1x4xf32>
    %147 = vector.shape_cast %146 : vector<1x4xf32> to vector<4xf32>
    %cst_47 = arith.constant dense<0.000000e+00> : vector<256xf32>
    %148 = vector.multi_reduction <add>, %143, %cst_47 [1] : vector<256x4xf32> to vector<256xf32>
    %149 = vector.shape_cast %148 : vector<256xf32> to vector<256x1xf32>
    %cst_48 = arith.constant 4.000000e+00 : f32
    %150 = vector.broadcast %cst_48 : f32 to vector<256x1xf32>
    %151 = arith.divf %149, %150 : vector<256x1xf32>
    %152 = vector.broadcast %151 : vector<256x1xf32> to vector<256x4xf32>
    %153 = arith.subf %143, %152 : vector<256x4xf32>
    %154 = vector.broadcast %151 : vector<256x1xf32> to vector<256x4xf32>
    %155 = arith.subf %143, %154 : vector<256x4xf32>
    %156 = arith.mulf %153, %155 : vector<256x4xf32>
    %cst_49 = arith.constant dense<0.000000e+00> : vector<256xf32>
    %157 = vector.multi_reduction <add>, %156, %cst_49 [1] : vector<256x4xf32> to vector<256xf32>
    %158 = vector.shape_cast %157 : vector<256xf32> to vector<256x1xf32>
    %cst_50 = arith.constant 4.000000e+00 : f32
    %159 = vector.broadcast %cst_50 : f32 to vector<256x1xf32>
    %160 = arith.divf %158, %159 : vector<256x1xf32>
    %161 = vector.broadcast %151 : vector<256x1xf32> to vector<256x4xf32>
    %162 = arith.subf %143, %161 : vector<256x4xf32>
    %cst_51 = arith.constant 9.99999997E-7 : f32
    %163 = vector.broadcast %cst_51 : f32 to vector<256x1xf32>
    %164 = arith.addf %160, %163 : vector<256x1xf32>
    %165 = math.rsqrt %164 : vector<256x1xf32>
    %166 = vector.broadcast %165 : vector<256x1xf32> to vector<256x4xf32>
    %167 = arith.mulf %162, %166 : vector<256x4xf32>
    %168 = vector.shape_cast %145 : vector<4xf32> to vector<1x4xf32>
    %169 = vector.broadcast %168 : vector<1x4xf32> to vector<256x4xf32>
    %170 = arith.mulf %167, %169 : vector<256x4xf32>
    %171 = vector.shape_cast %147 : vector<4xf32> to vector<1x4xf32>
    %172 = vector.broadcast %171 : vector<1x4xf32> to vector<256x4xf32>
    %173 = arith.addf %170, %172 : vector<256x4xf32>
    %174 = vector.extract_strided_slice %0 {offsets = [30, 0], sizes = [4, 8], strides = [1, 1]} : vector<48x8xf32> to vector<4x8xf32>
    %cst_52 = arith.constant dense<0.000000e+00> : vector<256x8xf32>
    %175 = tpu.matmul %173, %174, %cst_52 {dimension_numbers = #tpu.dot_dimension_numbers<[1], [0], [0], [1], [0, 0, 1, 1], [], []>} : vector<256x4xf32>, vector<4x8xf32>, vector<256x8xf32> -> vector<256x8xf32>
    %176 = vector.extract_strided_slice %0 {offsets = [34, 0], sizes = [1, 8], strides = [1, 1]} : vector<48x8xf32> to vector<1x8xf32>
    %177 = vector.shape_cast %176 : vector<1x8xf32> to vector<8xf32>
    %178 = vector.shape_cast %177 : vector<8xf32> to vector<1x8xf32>
    %179 = vector.broadcast %178 : vector<1x8xf32> to vector<256x8xf32>
    %180 = arith.addf %175, %179 : vector<256x8xf32>
    %181 = vector.extract_strided_slice %180 {offsets = [0, 0], sizes = [256, 4], strides = [1, 1]} : vector<256x8xf32> to vector<256x4xf32>
    %182 = vector.extract_strided_slice %180 {offsets = [0, 4], sizes = [256, 4], strides = [1, 1]} : vector<256x8xf32> to vector<256x4xf32>
    %183 = arith.mulf %181, %182 : vector<256x4xf32>
    %184 = vector.extract_strided_slice %0 {offsets = [35, 0], sizes = [4, 4], strides = [1, 1]} : vector<48x8xf32> to vector<4x4xf32>
    %cst_53 = arith.constant dense<0.000000e+00> : vector<256x4xf32>
    %185 = tpu.matmul %183, %184, %cst_53 {dimension_numbers = #tpu.dot_dimension_numbers<[1], [0], [0], [1], [0, 0, 1, 1], [], []>} : vector<256x4xf32>, vector<4x4xf32>, vector<256x4xf32> -> vector<256x4xf32>
    %186 = vector.extract_strided_slice %0 {offsets = [39, 0], sizes = [1, 4], strides = [1, 1]} : vector<48x8xf32> to vector<1x4xf32>
    %187 = vector.shape_cast %186 : vector<1x4xf32> to vector<4xf32>
    %188 = vector.shape_cast %187 : vector<4xf32> to vector<1x4xf32>
    %189 = vector.broadcast %188 : vector<1x4xf32> to vector<256x4xf32>
    %190 = arith.addf %185, %189 : vector<256x4xf32>
    %191 = vector.extract_strided_slice %0 {offsets = [40, 0], sizes = [1, 4], strides = [1, 1]} : vector<48x8xf32> to vector<1x4xf32>
    %192 = vector.shape_cast %191 : vector<1x4xf32> to vector<4xf32>
    %193 = vector.shape_cast %192 : vector<4xf32> to vector<1x4xf32>
    %194 = vector.broadcast %193 : vector<1x4xf32> to vector<256x4xf32>
    %195 = arith.mulf %190, %194 : vector<256x4xf32>
    %196 = arith.addf %143, %195 : vector<256x4xf32>
    %197 = vector.shape_cast %196 : vector<256x4xf32> to vector<16x16x4xf32>
    %c0_54 = arith.constant 0 : index
    %c0_55 = arith.constant 0 : index
    %c0_56 = arith.constant 0 : index
    %c0_57 = arith.constant 0 : index
    %198 = vector.load %arg3[%c0_54, %c0_55, %c0_56, %c0_57] : memref<1x16x16x4xf32, #tpu.memory_space<vmem>>, vector<1x16x16x4xf32>
    %199 = vector.shape_cast %198 : vector<1x16x16x4xf32> to vector<16x16x4xf32>
    %200 = vector.shape_cast %197 : vector<16x16x4xf32> to vector<1x16x16x4xf32>
    tpu.vector_store %arg3[%c0_54, %c0_55, %c0_56, %c0_57], %200 {strides = array<i32>} : memref<1x16x16x4xf32, #tpu.memory_space<vmem>>, vector<1x16x16x4xf32>,
    return
  }
  func.func @transform_0(%arg0: i32) -> (i32, i32, i32, i32) {
    %c0_i32 = arith.constant 0 : i32
    %c0_i32_0 = arith.constant 0 : i32
    %c0_i32_1 = arith.constant 0 : i32
    %c0_i32_2 = arith.constant 0 : i32
    return %arg0, %c0_i32, %c0_i32_0, %c0_i32_1 : i32, i32, i32, i32
  }
  func.func @transform_1(%arg0: i32) -> (i32, i32) {
    %c0_i32 = arith.constant 0 : i32
    %c0_i32_0 = arith.constant 0 : i32
    %c0_i32_1 = arith.constant 0 : i32
    return %c0_i32, %c0_i32_0 : i32, i32
  }
  func.func @transform_2(%arg0: i32) -> (i32, i32, i32, i32) {
    %c0_i32 = arith.constant 0 : i32
    %c0_i32_0 = arith.constant 0 : i32
    %c0_i32_1 = arith.constant 0 : i32
    %c0_i32_2 = arith.constant 0 : i32
    return %arg0, %c0_i32, %c0_i32_0, %c0_i32_1 : i32, i32, i32, i32
  }
}

</mosaic_0001>

<bundles_post_ra>
// kernel: nafblock_pallas.1
= control target key start
LH: loop header
LB: loop body
LE: loop exit
PB: predicated region body
PF: predicated region fallthrough
CT: control target
= control target key end

     0   :  { %s4584_s9 = smov 0   ;;  %s7833_s0 = inlined_call_operand.vmem [shape: f32[2,16,16,4], index: 0, kind: input, shape index: {}]   ;;  %s7834_s1 = inlined_call_operand.vmem [shape: f32[48,8], index: 1, kind: input, shape index: {}]   ;;  %s7835_s2 = inlined_call_operand.vmem [shape: f32[2,16,16,4], index: 2, kind: output, shape index: {}]  }
   0x1 LB: > { %s4231_s10 = sadd.s32 4294967295, %s4563_s9   ;;  %p4235_p0 = scmp.ge.s32.totalorder %s4563_s9, 1  ;;  %s4563_s9 = sphi %s4584_s9, %s12_s9  }
   0x2   : > { %p112_p1 = scmp.lt.s32.totalorder %s4563_s9, 3 }
   0x4   : > { %p113_p2 = pnand %p4235_p0, %p112_p1 }
   0x6   : > { %116 = sbr.rel (%p113_p2) target bundleno = 2419 (0x973), region = 28 }
   0xb   : > { %p134_p3 = scmp.lt.s32.totalorder %s4231_s10, 1  ;;  %vm182_vm0 = vcmask 31744   ;;  %v4565_v14 = vmov 4.0   ;;  %vm1059_vm2 = vcmask 1043456   ;;  %s4567_s23 = smov 124  }
   0xc   : > { %4390 = vrcp.f32 %v4565_v14 }
   0xd   : > { %s7939_s10 = smov (!%p134_p3, %s4231_s10), 1 }
   0xe   : > { %s4376_s11 = sshll.u32 %s7939_s10, 8 }
   0xf   : > { %s4600_s14 = scalar_lea.vmem %s7833_s0, %s4376_s11  ;;  %s7562_s8 = scalar_lea.vmem %s7835_s2, %s4376_s11 }
  0x10   : > { %v152_v0 = vld [vmem:[%s4600_s14 + $0x10] sm:$0xff]  ;;  %v150_v1 = vld [vmem:[%s4600_s14] sm:$0xff]  ;;  %v151_v6 = vld [vmem:[%s4600_s14 + $0x8] sm:$0xff] }
  0x11   : > { %v4605_v2 = vld [vmem:[%s4600_s14 + $0x20] sm:$0xff]  ;;  %v189_v3 = vsel %vm182_vm0, %v152_v0, 0.0  ;;  %v183_v4 = vsel %vm182_vm0, %v150_v1, 0.0  ;;  %v153_v7 = vld [vmem:[%s4600_s14 + $0x18] sm:$0xff]  ;;  %v155_v8 = vld [vmem:[%s4600_s14 + $0x28] sm:$0xff]  ;;  %v186_v9 = vsel %vm182_vm0, %v151_v6, 0.0 }
  0x12   : > { %v195_v5 = vsel %vm182_vm0, %v4605_v2, 0.0  ;;  %190 = vadd.xlane.f32.xlu1 %v189_v3  ;;  %184 = vadd.xlane.f32.xlu0 %v183_v4  ;;  %v192_v10 = vsel %vm182_vm0, %v153_v7, 0.0  ;;  %v198_v11 = vsel %vm182_vm0, %v155_v8, 0.0  ;;  %v156_v12 = vld [vmem:[%s4600_s14 + $0x30] sm:$0xff]  ;;  %v4391_v15 = vpop.eup %4390  ;;  %v4635_v36 = vld [vmem:[%s4600_s14 + $0x48] sm:$0xff]  ;;  %v4640_v39 = vld [vmem:[%s4600_s14 + $0x38] sm:$0xff] }
  0x13   : > { %196 = vadd.xlane.f32.xlu2 %v195_v5  ;;  %v201_v13 = vsel %vm182_vm0, %v156_v12, 0.0  ;;  %v280_v16 = vmul.f32 4.0, %v4391_v15  ;;  %vm284_vm1 = vweird.f32 %v4391_v15  ;;  %v210_v41 = vsel %vm182_vm0, %v4635_v36, 0.0  ;;  %v4661_v50 = vld [vmem:[%s4600_s14 + $0x40] sm:$0xff]  ;;  %v4675_v58 = vld [vmem:[%s4600_s14 + $0x50] sm:$0xff]  ;;  %v4695_v4 = vld [vmem:[%s4600_s14 + $0x68] sm:$0xff] }
  0x14   : > { %v204_v44 = vsel %vm182_vm0, %v4640_v39, 0.0  ;;  %v207_v54 = vsel %vm182_vm0, %v4661_v50, 0.0  ;;  %v4672_v57 = vld [vmem:[%s4600_s14 + $0x60] sm:$0xff]  ;;  %v213_v62 = vsel %vm182_vm0, %v4675_v58, 0.0  ;;  %v222_v5 = vsel %vm182_vm0, %v4695_v4, 0.0 }
  0x15   : > { %v281_v17 = vsub.f32 1.0, %v280_v16  ;;  %v219_v60 = vsel %vm182_vm0, %v4672_v57, 0.0 }
  0x17   : > { %v282_v18 = vmul.f32 %v4391_v15, %v281_v17 }
  0x19   : > { %v283_v19 = vadd.f32 %v4391_v15, %v282_v18 }
  0x1a   : > { %187 = vadd.xlane.f32.xlu0 %v186_v9  ;;  %193 = vadd.xlane.f32.xlu1 %v192_v10 }
  0x1b   : > { %199 = vadd.xlane.f32.xlu2 %v198_v11  ;;  %v4619_v20 = vsel %vm284_vm1, %v4391_v15, %v283_v19 }
  0x1c   : > { %7860 = vst [vmem:[#allocation3_spill] sm:$0xff] %v4619_v20 }
  0x22   : > { %202 = vadd.xlane.f32.xlu1 %v201_v13 }
  0x85   : > { %v191_v21 = vpop.xlane.xlu1 %190  ;;  %v185_v22 = vpop.xlane.xlu0 %184 }
  0x86   : > { %v288_v23 = vmul.f32 %v4619_v20, %v191_v21  ;;  %v286_v24 = vmul.f32 %v4619_v20, %v185_v22  ;;  %v197_v25 = vpop.xlane.xlu2 %196 }
  0x87   : > { %v290_v49 = vmul.f32 %v4619_v20, %v197_v25 }
  0x88   : > { %v4623_v26 = vsub.f32 %v152_v0, %v288_v23  ;;  %v4625_v27 = vsub.f32 %v150_v1, %v286_v24  ;;  %v4689_v1 = vld [vmem:[%s4600_s14 + $0x58] sm:$0xff] }
  0x89   : > { %v4666_v53 = vsub.f32 %v4605_v2, %v290_v49  ;;  %v216_v3 = vsel %vm182_vm0, %v4689_v1, 0.0 }
  0x8a   : > { %v352_v28 = vmul.f32 %v4623_v26, %v4623_v26  ;;  %v350_v29 = vmul.f32 %v4625_v27, %v4625_v27 }
  0x8b   : > { %v354_v59 = vmul.f32 %v4666_v53, %v4666_v53 }
  0x8c   : > { %v388_v30 = vsel %vm182_vm0, %v352_v28, 0.0  ;;  %v382_v31 = vsel %vm182_vm0, %v350_v29, 0.0 }
  0x8d   : > { %389 = vadd.xlane.f32.xlu1 %v388_v30  ;;  %383 = vadd.xlane.f32.xlu0 %v382_v31  ;;  %v188_v32 = vpop.xlane.xlu0 %187  ;;  %v194_v33 = vpop.xlane.xlu1 %193  ;;  %v394_v63 = vsel %vm182_vm0, %v354_v59, 0.0 }
  0x8e   : > { %v287_v34 = vmul.f32 %v4619_v20, %v188_v32  ;;  %v200_v35 = vpop.xlane.xlu2 %199  ;;  %v289_v37 = vmul.f32 %v4619_v20, %v194_v33 }
  0x8f   : > { %v291_v38 = vmul.f32 %v4619_v20, %v200_v35 }
  0x90   : > { %v4642_v40 = vsub.f32 %v151_v6, %v287_v34  ;;  %v4648_v43 = vsub.f32 %v153_v7, %v289_v37  ;;  %v4702_v6 = vld [vmem:[%s7834_s1] sm:$0xff] }
  0x91   : > { %v4646_v42 = vsub.f32 %v155_v8, %v291_v38  ;;  %v962_v7 = vrot.slane %v4702_v6, 2 }
  0x92   : > { %v351_v45 = vmul.f32 %v4642_v40, %v4642_v40  ;;  %v353_v48 = vmul.f32 %v4648_v43, %v4648_v43 }
  0x93   : > { %v355_v47 = vmul.f32 %v4646_v42, %v4646_v42  ;;  %4240 = vmatpush.msk.msra.mxu0 %vm1059_vm2, %v962_v7 }
  0x94   : > { %v385_v46 = vsel %vm182_vm0, %v351_v45, 0.0  ;;  %v391_v52 = vsel %vm182_vm0, %v353_v48, 0.0  ;;  %v4739_v45 = vld [vmem:[%s4600_s14 + $0x70] sm:$0xff] }
  0x95   : > { %211 = vadd.xlane.f32.xlu1 %v210_v41  ;;  %205 = vadd.xlane.f32.xlu0 %v204_v44  ;;  %v397_v51 = vsel %vm182_vm0, %v355_v47, 0.0  ;;  %v203_v55 = vpop.xlane.xlu1 %202  ;;  %v4736_v44 = vld [vmem:[%s4600_s14 + $0x80] sm:$0xff] }
  0x96   : > { %386 = vadd.xlane.f32.xlu2 %v385_v46  ;;  %v292_v56 = vmul.f32 %v4619_v20, %v203_v55  ;;  %v225_v55 = vsel %vm182_vm0, %v4739_v45, 0.0 }
  0x98   : > { %v4681_v61 = vsub.f32 %v156_v12, %v292_v56 }
  0x9a   : > { %v356_v0 = vmul.f32 %v4681_v61, %v4681_v61 }
  0x9c   : > { %v400_v2 = vsel %vm182_vm0, %v356_v0, 0.0 }
  0x9d   : > { %398 = vadd.xlane.f32.xlu1 %v397_v51  ;;  %392 = vadd.xlane.f32.xlu0 %v391_v52 }
  0x9e   : > { %208 = vadd.xlane.f32.xlu2 %v207_v54  ;;  %v231_v54 = vsel %vm182_vm0, %v4736_v44, 0.0 }
  0xa5   : > { %220 = vadd.xlane.f32.xlu1 %v219_v60  ;;  %214 = vadd.xlane.f32.xlu0 %v213_v62 }
  0xa6   : > { %395 = vadd.xlane.f32.xlu2 %v394_v63 }
  0xad   : > { %401 = vadd.xlane.f32.xlu0 %v400_v2 }
  0xae   : > { %217 = vadd.xlane.f32.xlu2 %v216_v3 }
  0xb5   : > { %223 = vadd.xlane.f32.xlu0 %v222_v5 }
 0x100   : > { %v390_v8 = vpop.xlane.xlu1 %389  ;;  %v384_v9 = vpop.xlane.xlu0 %383 }
 0x101   : > { %v480_v10 = vmul.f32 %v390_v8, %v4619_v20  ;;  %v478_v11 = vmul.f32 %v384_v9, %v4619_v20  ;;  %v4764_v8 = vperm.slane %v4702_v6, 1 }
 0x103   : > { %v4708_v12 = vadd.f32 1e-06, %v480_v10  ;;  %v510_v13 = vadd.f32 1e-06, %v478_v11 }
 0x105   : > { %4392 = vrsqrt.f32 %v4708_v12  ;;  %vm548_vm4 = vweird.f32 %v510_v13  ;;  %vm568_vm6 = vweird.f32 %v4708_v12 }
 0x106   : > { %4394 = vrsqrt.f32 %v510_v13 }
 0x108   : > { %v212_v14 = vpop.xlane.xlu1 %211  ;;  %v206_v15 = vpop.xlane.xlu0 %205 }
 0x109   : > { %v295_v16 = vmul.f32 %v4619_v20, %v212_v14  ;;  %v387_v17 = vpop.xlane.xlu2 %386  ;;  %v293_v18 = vmul.f32 %v4619_v20, %v206_v15 }
 0x10a   : > { %v479_v19 = vmul.f32 %v387_v17, %v4619_v20 }
 0x10b   : > { %v4714_v21 = vpop.eup %4392  ;;  %v4717_v22 = vsub.f32 %v4635_v36, %v295_v16  ;;  %v4720_v23 = vsub.f32 %v4640_v39, %v293_v18 }
 0x10c   : > { %v4395_v24 = vpop.eup %4394  ;;  %v4722_v25 = vadd.f32 1e-06, %v479_v19  ;;  %v563_v28 = vmul.f32 %v4714_v21, %v4708_v12  ;;  %vm569_vm7 = vweird.f32 %v4714_v21 }
 0x10d   : > { %v543_v29 = vmul.f32 %v4395_v24, %v510_v13  ;;  %v359_v30 = vmul.f32 %v4717_v22, %v4717_v22  ;;  %v357_v31 = vmul.f32 %v4720_v23, %v4720_v23  ;;  %vm549_vm3 = vweird.f32 %v4395_v24  ;;  %vm4791_vm10 = vmor %vm568_vm6, %vm569_vm7 }
 0x10e   : > { %4396 = vrsqrt.f32 %v4722_v25  ;;  %v564_v37 = vmul.f32 %v4714_v21, %v563_v28  ;;  %vm550_vm5 = vmor %vm548_vm4, %vm549_vm3  ;;  %vm558_vm9 = vweird.f32 %v4722_v25 }
 0x10f   : > { %v544_v32 = vmul.f32 %v4395_v24, %v543_v29  ;;  %v409_v33 = vsel %vm182_vm0, %v359_v30, 0.0  ;;  %v403_v34 = vsel %vm182_vm0, %v357_v31, 0.0 }
 0x110   : > { %v399_v35 = vpop.xlane.xlu1 %398  ;;  %410 = vadd.xlane.f32.xlu0 %v409_v33  ;;  %404 = vadd.xlane.f32.xlu2 %v403_v34  ;;  %v393_v36 = vpop.xlane.xlu0 %392  ;;  %v565_v56 = vmul.f32 0.5, %v564_v37 }
 0x111   : > { %v545_v38 = vmul.f32 0.5, %v544_v32  ;;  %v209_v39 = vpop.xlane.xlu2 %208  ;;  %v481_v41 = vmul.f32 %v393_v36, %v4619_v20  ;;  %v483_v48 = vmul.f32 %v399_v35, %v4619_v20 }
 0x112   : > { %v294_v46 = vmul.f32 %v4619_v20, %v209_v39  ;;  %v566_v10 = vsub.f32 1.5, %v565_v56 }
 0x113   : > { %v546_v47 = vsub.f32 1.5, %v545_v38  ;;  %v4743_v49 = vadd.f32 1e-06, %v481_v41  ;;  %v4759_v0 = vadd.f32 1e-06, %v483_v48  ;;  %v4811_v41 = vld [vmem:[%s4600_s14 + $0x98] sm:$0xff] }
 0x114   : > { %v4397_v51 = vpop.eup %4396  ;;  %v4746_v52 = vsub.f32 %v4661_v50, %v294_v46  ;;  %v4757_v50 = vperm.slane %v4702_v6, 0  ;;  %v567_v31 = vmul.f32 %v4714_v21, %v566_v10 }
 0x115   : > { %v547_v59 = vmul.f32 %v4395_v24, %v546_v47  ;;  %v553_v60 = vmul.f32 %v4397_v51, %v4722_v25  ;;  %4398 = vrsqrt.f32 %v4743_v49  ;;  %vm559_vm8 = vweird.f32 %v4397_v51 }
 0x116   : > { %v358_v62 = vmul.f32 %v4746_v52, %v4746_v52  ;;  %4400 = vrsqrt.f32 %v4759_v0  ;;  %vm560_vm11 = vmor %vm558_vm9, %vm559_vm8  ;;  %vm578_vm12 = vweird.f32 %v4743_v49  ;;  %vm598_vm4 = vweird.f32 %v4759_v0 }
 0x117   : > { %v554_v63 = vmul.f32 %v4397_v51, %v553_v60  ;;  %v551_v2 = vsel %vm550_vm5, %v4395_v24, %v547_v59  ;;  %v4780_v24 = vld [vmem:[%s4600_s14 + $0x78] sm:$0xff]  ;;  %v240_v60 = vsel %vm182_vm0, %v4811_v41, 0.0 }
 0x118   : > { %v221_v3 = vpop.xlane.xlu1 %220  ;;  %232 = vadd.xlane.f32.xlu0 %v231_v54  ;;  %v406_v5 = vsel %vm182_vm0, %v358_v62, 0.0  ;;  %226 = vadd.xlane.f32.xlu2 %v225_v55  ;;  %v215_v7 = vpop.xlane.xlu0 %214  ;;  %v862_v9 = vmul.f32 %v551_v2, %v4625_v27  ;;  %v228_v12 = vsel %vm182_vm0, %v4780_v24, 0.0  ;;  %v4827_v62 = vld [vmem:[%s4600_s14 + $0x88] sm:$0xff] }
 0x119   : > { %v555_v11 = vmul.f32 0.5, %v554_v63  ;;  %v298_v13 = vmul.f32 %v4619_v20, %v221_v3  ;;  %407 = vadd.xlane.f32.xlu1 %v406_v5  ;;  %v396_v14 = vpop.xlane.xlu2 %395  ;;  %v296_v15 = vmul.f32 %v4619_v20, %v215_v7 }
 0x11a   : > { %v482_v16 = vmul.f32 %v396_v14, %v4619_v20  ;;  %v895_v17 = vmul.f32 %v4757_v50, %v862_v9 }
 0x11b   : > { %v556_v18 = vsub.f32 1.5, %v555_v11  ;;  %v4774_v27 = vsub.f32 %v4672_v57, %v298_v13  ;;  %v4777_v19 = vsub.f32 %v4675_v58, %v296_v15  ;;  %v4782_v28 = vpop.eup %4398 }
 0x11c   : > { %v4785_v29 = vadd.f32 1e-06, %v482_v16  ;;  %v928_v30 = vadd.f32 %v4764_v8, %v895_v17  ;;  %v573_v32 = vmul.f32 %v4782_v28, %v4743_v49  ;;  %v4813_v46 = vpop.eup %4400  ;;  %vm579_vm13 = vweird.f32 %v4782_v28 }
 0x11d   : > { %v557_v58 = vmul.f32 %v4397_v51, %v556_v18  ;;  %v362_v25 = vmul.f32 %v4774_v27, %v4774_v27  ;;  %v360_v33 = vmul.f32 %v4777_v19, %v4777_v19  ;;  %v593_v2 = vmul.f32 %v4813_v46, %v4759_v0  ;;  %vm4847_vm14 = vmor %vm578_vm12, %vm579_vm13 }
 0x11e   : > { %4402 = vrsqrt.f32 %v4785_v29  ;;  %4241 = vmatmul.msk.f32.vlgmr.msra.gmra.mxu0 %vm182_vm0, %v928_v30  ;;  %v574_v34 = vmul.f32 %v4782_v28, %v573_v32  ;;  %vm588_vm15 = vweird.f32 %v4785_v29  ;;  %vm599_vm5 = vweird.f32 %v4813_v46 }
 0x11f   : > { %v418_v35 = vsel %vm182_vm0, %v362_v25, 0.0  ;;  %v561_v36 = vsel %vm560_vm11, %v4397_v51, %v557_v58  ;;  %v412_v37 = vsel %vm182_vm0, %v360_v33, 0.0  ;;  %v571_v51 = vsel %vm4791_vm10, %v4714_v21, %v567_v31  ;;  %v4863_v58 = vld [vmem:[%s4600_s14 + $0x90] sm:$0xff]  ;;  %vm600_vm6 = vmor %vm598_vm4, %vm599_vm5 }
 0x120   : > { %419 = vadd.xlane.f32.xlu0 %v418_v35  ;;  %v402_v38 = vpop.xlane.xlu0 %401  ;;  %v863_v39 = vmul.f32 %v561_v36, %v4642_v40  ;;  %v575_v47 = vmul.f32 0.5, %v574_v34  ;;  %413 = vadd.xlane.f32.xlu2 %v412_v37  ;;  %v864_v5 = vmul.f32 %v571_v51, %v4623_v26  ;;  %v594_v16 = vmul.f32 %v4813_v46, %v593_v2 }
 0x121   : > { %229 = vadd.xlane.f32.xlu1 %v228_v12  ;;  %v218_v48 = vpop.xlane.xlu2 %217  ;;  %v484_v54 = vmul.f32 %v402_v38, %v4619_v20  ;;  %v4878_v38 = vld [vmem:[%s4600_s14 + $0xa0] sm:$0xff]  ;;  %vm1175_vm10 = vcmask 64512  }
 0x122   : > { %v297_v55 = vmul.f32 %v4619_v20, %v218_v48  ;;  %v896_v56 = vmul.f32 %v4757_v50, %v863_v39  ;;  %v576_v59 = vsub.f32 1.5, %v575_v47  ;;  %v897_v15 = vmul.f32 %v4757_v50, %v864_v5 }
 0x123   : > { %v4822_v40 = vadd.f32 1e-06, %v484_v54  ;;  %v595_v12 = vmul.f32 0.5, %v594_v16  ;;  %v243_v51 = vsel %vm182_vm0, %v4878_v38, 0.0 }
 0x124   : > { %v4403_v63 = vpop.eup %4402  ;;  %v4832_v21 = vsub.f32 %v4689_v1, %v297_v55  ;;  %v929_v3 = vadd.f32 %v4764_v8, %v896_v56  ;;  %v577_v7 = vmul.f32 %v4782_v28, %v576_v59  ;;  %v234_v1 = vsel %vm182_vm0, %v4827_v62, 0.0 }
 0x125   : > { %v583_v9 = vmul.f32 %v4403_v63, %v4785_v29  ;;  %4404 = vrsqrt.f32 %v4822_v40  ;;  %vm589_vm1 = vweird.f32 %v4403_v63  ;;  %v930_v32 = vadd.f32 %v4764_v8, %v897_v15 }
 0x126   : > { %4242 = vmatmul.msk.f32.gmra.mxu0 %vm182_vm0, %v929_v3  ;;  %v361_v10 = vmul.f32 %v4832_v21, %v4832_v21  ;;  %v581_v49 = vsel %vm4847_vm14, %v4782_v28, %v577_v7  ;;  %vm590_vm3 = vmor %vm588_vm15, %vm589_vm1  ;;  %v596_v36 = vsub.f32 1.5, %v595_v12  ;;  %vm608_vm7 = vweird.f32 %v4822_v40 }
 0x127   : > { %v584_v11 = vmul.f32 %v4403_v63, %v583_v9  ;;  %v865_v25 = vmul.f32 %v581_v49, %v4648_v43 }
 0x128   : > { %241 = vadd.xlane.f32.xlu0 %v240_v60  ;;  %v415_v13 = vsel %vm182_vm0, %v361_v10, 0.0  ;;  %v224_v14 = vpop.xlane.xlu0 %223  ;;  %235 = vadd.xlane.f32.xlu2 %v234_v1  ;;  %v597_v48 = vmul.f32 %v4813_v46, %v596_v36 }
 0x129   : > { %v585_v17 = vmul.f32 0.5, %v584_v11  ;;  %416 = vadd.xlane.f32.xlu1 %v415_v13  ;;  %v299_v18 = vmul.f32 %v4619_v20, %v224_v14  ;;  %v898_v35 = vmul.f32 %v4757_v50, %v865_v25 }
 0x12a   : > { %v601_v56 = vsel %vm600_vm6, %v4813_v46, %v597_v48 }
 0x12b   : > { %v4405_v30 = vpop.eup %4404  ;;  %v586_v31 = vsub.f32 1.5, %v585_v17  ;;  %v4860_v57 = vsub.f32 %v4695_v4, %v299_v18  ;;  %v237_v4 = vsel %vm182_vm0, %v4863_v58, 0.0  ;;  %v931_v39 = vadd.f32 %v4764_v8, %v898_v35  ;;  %v4985_v35 = vld [vmem:[%s4600_s14 + $0xa8] sm:$0xff] }
 0x12c   : > { %v603_v34 = vmul.f32 %v4405_v30, %v4822_v40  ;;  %vm609_vm8 = vweird.f32 %v4405_v30  ;;  %v867_v59 = vmul.f32 %v601_v56, %v4646_v42  ;;  %v4566_v42 = vmov 0.0  }
 0x12d   : > { %v587_v33 = vmul.f32 %v4403_v63, %v586_v31  ;;  %v363_v28 = vmul.f32 %v4860_v57, %v4860_v57  ;;  %vm610_vm9 = vmor %vm608_vm7, %vm609_vm8  ;;  %1180 = vst.msk [vmem:[#allocation2 + $0x18] sm:$0xff] %vm1175_vm10, %v4566_v42 }
 0x12e   : > { %4243 = vmatmul.msk.f32.gmra.mxu0 %vm182_vm0, %v930_v32  ;;  %v604_v43 = vmul.f32 %v4405_v30, %v603_v34  ;;  %1181 = vst.msk [vmem:[#allocation2 + $0x20] sm:$0xff] %vm1175_vm10, %v4566_v42 }
 0x12f   : > { %v421_v29 = vsel %vm182_vm0, %v363_v28, 0.0  ;;  %v591_v37 = vsel %vm590_vm3, %v4403_v63, %v587_v33  ;;  %v900_v63 = vmul.f32 %v4757_v50, %v867_v59  ;;  %1176 = vst.msk [vmem:[#allocation2] sm:$0xff] %vm1175_vm10, %v4566_v42  ;;  %vm1178_vm3 = vcmask 58368  }
 0x130   : > { %422 = vadd.xlane.f32.xlu2 %v421_v29  ;;  %v866_v47 = vmul.f32 %v591_v37, %v4666_v53  ;;  %v605_v54 = vmul.f32 0.5, %v604_v43  ;;  %1177 = vst.msk [vmem:[#allocation2 + $0x8] sm:$0xff] %vm1175_vm10, %v4566_v42 }
 0x131   : > { %238 = vadd.xlane.f32.xlu1 %v237_v4  ;;  %v933_v3 = vadd.f32 %v4764_v8, %v900_v63  ;;  %1183 = vst.msk [vmem:[#allocation2 + $0x30] sm:$0xff] %vm1175_vm10, %v4566_v42 }
 0x132   : > { %v899_v55 = vmul.f32 %v4757_v50, %v866_v47  ;;  %v606_v0 = vsub.f32 1.5, %v605_v54  ;;  %1184 = vst.msk [vmem:[#allocation2 + $0x38] sm:$0xff] %vm1175_vm10, %v4566_v42  ;;  %v4995_v54 = vld [vmem:[%s4600_s14 + $0xb8] sm:$0xff] }
 0x133   : > { %1186 = vst.msk [vmem:[#allocation2 + $0x48] sm:$0xff] %vm1175_vm10, %v4566_v42 }
 0x134   : > { %v932_v53 = vadd.f32 %v4764_v8, %v899_v55  ;;  %v607_v60 = vmul.f32 %v4405_v30, %v606_v0  ;;  %1187 = vst.msk [vmem:[#allocation2 + $0x50] sm:$0xff] %vm1175_vm10, %v4566_v42  ;;  %v246_v55 = vsel %vm182_vm0, %v4985_v35, 0.0 }
 0x135   : > { %1189 = vst.msk [vmem:[#allocation2 + $0x60] sm:$0xff] %vm1175_vm10, %v4566_v42 }
 0x136   : > { %4244 = vmatmul.msk.f32.gmra.mxu0 %vm182_vm0, %v931_v39  ;;  %v611_v2 = vsel %vm610_vm9, %v4405_v30, %v607_v60  ;;  %1190 = vst.msk [vmem:[#allocation2 + $0x68] sm:$0xff] %vm1175_vm10, %v4566_v42 }
 0x137   : > { %v868_v5 = vmul.f32 %v611_v2, %v4681_v61  ;;  %1192 = vst.msk [vmem:[#allocation2 + $0x78] sm:$0xff] %vm1175_vm10, %v4566_v42 }
 0x138   : > { %244 = vadd.xlane.f32.xlu2 %v243_v51  ;;  %1193 = vst.msk [vmem:[#allocation2 + $0x80] sm:$0xff] %vm1175_vm10, %v4566_v42  ;;  %v4998_v51 = vperm.slane %v4702_v6, 6 }
 0x139   : > { %v901_v46 = vmul.f32 %v4757_v50, %v868_v5  ;;  %1195 = vst.msk [vmem:[#allocation2 + $0x90] sm:$0xff] %vm1175_vm10, %v4566_v42 }
 0x13a   : > { %1196 = vst.msk [vmem:[#allocation2 + $0x98] sm:$0xff] %vm1175_vm10, %v4566_v42 }
 0x13b   : > { %v934_v40 = vadd.f32 %v4764_v8, %v901_v46  ;;  %1198 = vst.msk [vmem:[#allocation2 + $0xa8] sm:$0xff] %vm1175_vm10, %v4566_v42 }
 0x13c   : > { %1199 = vst.msk [vmem:[#allocation2 + $0xb0] sm:$0xff] %vm1175_vm10, %v4566_v42 }
 0x13d   : > { %1201 = vst.msk [vmem:[#allocation2 + $0xc0] sm:$0xff] %vm1175_vm10, %v4566_v42 }
 0x13e   : > { %4245 = vmatmul.msk.f32.gmra.mxu0 %vm182_vm0, %v932_v53  ;;  %1202 = vst.msk [vmem:[#allocation2 + $0xc8] sm:$0xff] %vm1175_vm10, %v4566_v42 }
 0x13f   : > { %1204 = vst.msk [vmem:[#allocation2 + $0xd8] sm:$0xff] %vm1175_vm10, %v4566_v42 }
 0x140   : > { %1205 = vst.msk [vmem:[#allocation2 + $0xe0] sm:$0xff] %vm1175_vm10, %v4566_v42 }
 0x141   : > { %1207 = vst.msk [vmem:[#allocation2 + $0xf0] sm:$0xff] %vm1175_vm10, %v4566_v42 }
 0x142   : > { %1208 = vst.msk [vmem:[#allocation2 + $0xf8] sm:$0xff] %vm1175_vm10, %v4566_v42 }
 0x143   : > { %1210 = vst.msk [vmem:[#allocation2 + $0x108] sm:$0xff] %vm1175_vm10, %v4566_v42 }
 0x144   : > { %1211 = vst.msk [vmem:[#allocation2 + $0x110] sm:$0xff] %vm1175_vm10, %v4566_v42 }
 0x145   : > { %1213 = vst.msk [vmem:[#allocation2 + $0x120] sm:$0xff] %vm1175_vm10, %v4566_v42 }
 0x146   : > { %4246 = vmatmul.msk.f32.gmra.mxu0 %vm182_vm0, %v933_v3  ;;  %1214 = vst.msk [vmem:[#allocation2 + $0x128] sm:$0xff] %vm1175_vm10, %v4566_v42 }
 0x147   : > { %1216 = vst.msk [vmem:[#allocation2 + $0x138] sm:$0xff] %vm1175_vm10, %v4566_v42 }
 0x148   : > { %1217 = vst.msk [vmem:[#allocation2 + $0x140] sm:$0xff] %vm1175_vm10, %v4566_v42 }
 0x149   : > { %1219 = vst.msk [vmem:[#allocation2 + $0x150] sm:$0xff] %vm1175_vm10, %v4566_v42 }
 0x14a   : > { %1220 = vst.msk [vmem:[#allocation2 + $0x158] sm:$0xff] %vm1175_vm10, %v4566_v42 }
 0x14b   : > { %1222 = vst.msk [vmem:[#allocation2 + $0x168] sm:$0xff] %vm1175_vm10, %v4566_v42 }
 0x14c   : > { %1223 = vst.msk [vmem:[#allocation2 + $0x170] sm:$0xff] %vm1175_vm10, %v4566_v42 }
 0x14d   : > { %1225 = vst.msk [vmem:[#allocation2 + $0x180] sm:$0xff] %vm1175_vm10, %v4566_v42 }
 0x14e   : > { %4247 = vmatmul.msk.f32.gmra.mxu0 %vm182_vm0, %v934_v40  ;;  %1226 = vst.msk [vmem:[#allocation2 + $0x188] sm:$0xff] %vm1175_vm10, %v4566_v42 }
 0x14f   : > { %1228 = vst.msk [vmem:[#allocation2 + $0x198] sm:$0xff] %vm1175_vm10, %v4566_v42 }
 0x150   : > { %1229 = vst.msk [vmem:[#allocation2 + $0x1a0] sm:$0xff] %vm1175_vm10, %v4566_v42 }
 0x151   : > { %1182 = vst.msk [vmem:[#allocation2 + $0x28] sm:$0x3] %vm1178_vm3, %v4566_v42 }
 0x152   : > { %1179 = vst.msk [vmem:[#allocation2 + $0x10] sm:$0x3] %vm1178_vm3, %v4566_v42 }
 0x153   : > { %1185 = vst.msk [vmem:[#allocation2 + $0x40] sm:$0x3] %vm1178_vm3, %v4566_v42 }
 0x154   : > { %1188 = vst.msk [vmem:[#allocation2 + $0x58] sm:$0x3] %vm1178_vm3, %v4566_v42 }
 0x155   : > { %1191 = vst.msk [vmem:[#allocation2 + $0x70] sm:$0x3] %vm1178_vm3, %v4566_v42 }
 0x156   : > { %1194 = vst.msk [vmem:[#allocation2 + $0x88] sm:$0x3] %vm1178_vm3, %v4566_v42 }
 0x157   : > { %1197 = vst.msk [vmem:[#allocation2 + $0xa0] sm:$0x3] %vm1178_vm3, %v4566_v42 }
 0x158   : > { %1200 = vst.msk [vmem:[#allocation2 + $0xb8] sm:$0x3] %vm1178_vm3, %v4566_v42 }
 0x159   : > { %1203 = vst.msk [vmem:[#allocation2 + $0xd0] sm:$0x3] %vm1178_vm3, %v4566_v42 }
 0x15a   : > { %1206 = vst.msk [vmem:[#allocation2 + $0xe8] sm:$0x3] %vm1178_vm3, %v4566_v42 }
 0x15b   : > { %1209 = vst.msk [vmem:[#allocation2 + $0x100] sm:$0x3] %vm1178_vm3, %v4566_v42 }
 0x15c   : > { %1212 = vst.msk [vmem:[#allocation2 + $0x118] sm:$0x3] %vm1178_vm3, %v4566_v42 }
 0x15d   : > { %1215 = vst.msk [vmem:[#allocation2 + $0x130] sm:$0x3] %vm1178_vm3, %v4566_v42 }
 0x15e   : > { %1218 = vst.msk [vmem:[#allocation2 + $0x148] sm:$0x3] %vm1178_vm3, %v4566_v42 }
 0x15f   : > { %1221 = vst.msk [vmem:[#allocation2 + $0x160] sm:$0x3] %vm1178_vm3, %v4566_v42 }
 0x160   : > { %1224 = vst.msk [vmem:[#allocation2 + $0x178] sm:$0x3] %vm1178_vm3, %v4566_v42 }
 0x161   : > { %1227 = vst.msk [vmem:[#allocation2 + $0x190] sm:$0x3] %vm1178_vm3, %v4566_v42 }
 0x162   : > { %1230 = vst.msk [vmem:[#allocation2 + $0x1a8] sm:$0x3] %vm1178_vm3, %v4566_v42  ;;  %v5217_v42 = vld [vmem:[%s4600_s14 + $0xd8] sm:$0xff] }
 0x183   : > { %v405_v61 = vpop.xlane.xlu2 %404  ;;  %v411_v7 = vpop.xlane.xlu0 %410 }
 0x184   : > { %v485_v9 = vmul.f32 %v405_v61, %v4619_v20  ;;  %v487_v10 = vmul.f32 %v411_v7, %v4619_v20 }
 0x186   : > { %v4923_v1 = vadd.f32 1e-06, %v485_v9  ;;  %v4925_v11 = vadd.f32 1e-06, %v487_v10 }
 0x188   : > { %4406 = vrsqrt.f32 %v4923_v1  ;;  %vm618_vm12 = vweird.f32 %v4923_v1  ;;  %vm638_vm14 = vweird.f32 %v4925_v11 }
 0x189   : > { %4408 = vrsqrt.f32 %v4925_v11 }
 0x18b   : > { %v227_v26 = vpop.xlane.xlu2 %226  ;;  %v233_v13 = vpop.xlane.xlu0 %232 }
 0x18c   : > { %v408_v14 = vpop.xlane.xlu1 %407  ;;  %v300_v15 = vmul.f32 %v4619_v20, %v227_v26  ;;  %v302_v16 = vmul.f32 %v4619_v20, %v233_v13 }
 0x18d   : > { %v486_v17 = vmul.f32 %v408_v14, %v4619_v20 }
 0x18e   : > { %v4948_v18 = vpop.eup %4406  ;;  %v4951_v49 = vsub.f32 %v4739_v45, %v300_v15  ;;  %v4954_v30 = vsub.f32 %v4736_v44, %v302_v16 }
 0x18f   : > { %v4958_v31 = vpop.eup %4408  ;;  %v613_v32 = vmul.f32 %v4948_v18, %v4923_v1  ;;  %v4962_v25 = vadd.f32 1e-06, %v486_v17  ;;  %vm619_vm11 = vweird.f32 %v4948_v18 }
 0x190   : > { %v633_v45 = vmul.f32 %v4958_v31, %v4925_v11  ;;  %v364_v44 = vmul.f32 %v4951_v49, %v4951_v49  ;;  %v366_v12 = vmul.f32 %v4954_v30, %v4954_v30  ;;  %vm620_vm13 = vmor %vm618_vm12, %vm619_vm11  ;;  %vm639_vm15 = vweird.f32 %v4958_v31 }
 0x191   : > { %v614_v33 = vmul.f32 %v4948_v18, %v613_v32  ;;  %4410 = vrsqrt.f32 %v4962_v25  ;;  %vm628_vm4 = vweird.f32 %v4962_v25  ;;  %vm5073_vm5 = vmor %vm638_vm14, %vm639_vm15 }
 0x192   : > { %v424_v34 = vsel %vm182_vm0, %v364_v44, 0.0  ;;  %v430_v28 = vsel %vm182_vm0, %v366_v12, 0.0  ;;  %v634_v36 = vmul.f32 %v4958_v31, %v633_v45  ;;  %v5055_v45 = vld [vmem:[%s4600_s14 + $0xb0] sm:$0xff] }
 0x193   : > { %v615_v4 = vmul.f32 0.5, %v614_v33  ;;  %425 = vadd.xlane.f32.xlu1 %v424_v34  ;;  %431 = vadd.xlane.f32.xlu2 %v430_v28  ;;  %v420_v29 = vpop.xlane.xlu0 %419  ;;  %v414_v37 = vpop.xlane.xlu2 %413 }
 0x194   : > { %v230_v43 = vpop.xlane.xlu1 %229  ;;  %v488_v48 = vmul.f32 %v414_v37, %v4619_v20  ;;  %v490_v6 = vmul.f32 %v420_v29, %v4619_v20  ;;  %v635_v60 = vmul.f32 0.5, %v634_v36 }
 0x195   : > { %v616_v39 = vsub.f32 1.5, %v615_v4  ;;  %v301_v47 = vmul.f32 %v4619_v20, %v230_v43 }
 0x196   : > { %v5011_v59 = vadd.f32 1e-06, %v488_v48  ;;  %v5033_v46 = vadd.f32 1e-06, %v490_v6  ;;  %v636_v10 = vsub.f32 1.5, %v635_v60  ;;  %v5108_v60 = vld [vmem:[%s4600_s14 + $0xc0] sm:$0xff] }
 0x197   : > { %v5005_v0 = vpop.eup %4410  ;;  %v617_v56 = vmul.f32 %v4948_v18, %v616_v39  ;;  %v5009_v53 = vsub.f32 %v4780_v24, %v301_v47  ;;  %v252_v24 = vsel %vm182_vm0, %v4995_v54, 0.0 }
 0x198   : > { %v623_v63 = vmul.f32 %v5005_v0, %v4962_v25  ;;  %4412 = vrsqrt.f32 %v5011_v59  ;;  %vm629_vm1 = vweird.f32 %v5005_v0  ;;  %vm648_vm7 = vweird.f32 %v5011_v59 }
 0x199   : > { %v365_v2 = vmul.f32 %v5009_v53, %v5009_v53  ;;  %v621_v5 = vsel %vm620_vm13, %v4948_v18, %v617_v56  ;;  %4414 = vrsqrt.f32 %v5033_v46  ;;  %vm630_vm6 = vmor %vm628_vm4, %vm629_vm1  ;;  %vm668_vm14 = vweird.f32 %v5033_v46 }
 0x19a   : > { %v624_v3 = vmul.f32 %v5005_v0, %v623_v63  ;;  %v869_v9 = vmul.f32 %v621_v5, %v4720_v23 }
 0x19b   : > { %v1079_v40 = vpop.f32.mrf.mxu0  ;;  %v427_v61 = vsel %vm182_vm0, %v365_v2, 0.0  ;;  %247 = vadd.xlane.f32.xlu1 %v246_v55  ;;  %253 = vadd.xlane.f32.xlu2 %v252_v24  ;;  %v242_v7 = vpop.xlane.xlu0 %241 }
 0x19c   : > { %v625_v1 = vmul.f32 0.5, %v624_v3  ;;  %v1080_v26 = vadd.f32 %v1079_v40, %v4998_v51  ;;  %428 = vadd.xlane.f32.xlu0 %v427_v61  ;;  %v417_v13 = vpop.xlane.xlu1 %416  ;;  %v236_v14 = vpop.xlane.xlu2 %235  ;;  %v305_v15 = vmul.f32 %v4619_v20, %v242_v7  ;;  %v902_v17 = vmul.f32 %v4757_v50, %v869_v9 }
 0x19d   : > { %v489_v23 = vmul.f32 %v417_v13, %v4619_v20  ;;  %v303_v16 = vmul.f32 %v4619_v20, %v236_v14  ;;  %v255_v9 = vsel %vm182_vm0, %v5108_v60, 0.0 }
 0x19e   : > { %v626_v18 = vsub.f32 1.5, %v625_v1  ;;  %1232 = vst.msk [vmem:[#allocation2 + $0x19] sm:$0xff] %vm1175_vm10, %v1080_v26  ;;  %v5052_v32 = vsub.f32 %v4811_v41, %v305_v15  ;;  %v5057_v44 = vpop.eup %4412  ;;  %v637_v41 = vmul.f32 %v4958_v31, %v636_v10  ;;  %v935_v4 = vadd.f32 %v4764_v8, %v902_v17  ;;  %v5134_v10 = vld [vmem:[%s4600_s14 + $0xd0] sm:$0xff] }
 0x19f   : > { %v5063_v12 = vadd.f32 1e-06, %v489_v23  ;;  %v5066_v33 = vsub.f32 %v4827_v62, %v303_v16  ;;  %v643_v28 = vmul.f32 %v5057_v44, %v5011_v59  ;;  %v249_v62 = vsel %vm182_vm0, %v5055_v45, 0.0 }
 0x1a0   : > { %v627_v25 = vmul.f32 %v5005_v0, %v626_v18  ;;  %4248 = vmatmul.msk.f32.gmra.mxu0 %vm182_vm0, %v935_v4  ;;  %v369_v36 = vmul.f32 %v5052_v32, %v5052_v32  ;;  %v641_v63 = vsel %vm5073_vm5, %v4958_v31, %v637_v41  ;;  %vm649_vm8 = vweird.f32 %v5057_v44 }
 0x1a1   : > { %4416 = vrsqrt.f32 %v5063_v12  ;;  %v367_v11 = vmul.f32 %v5066_v33, %v5066_v33  ;;  %v644_v29 = vmul.f32 %v5057_v44, %v643_v28  ;;  %vm5162_vm9 = vmor %vm648_vm7, %vm649_vm8  ;;  %v5174_v28 = vld [vmem:[%s4600_s14 + $0xc8] sm:$0xff]  ;;  %vm658_vm11 = vweird.f32 %v5063_v12 }
 0x1a2   : > { %v631_v43 = vsel %vm630_vm6, %v5005_v0, %v627_v25  ;;  %v439_v0 = vsel %vm182_vm0, %v369_v36, 0.0 }
 0x1a3   : > { %v1082_v37 = vpop.f32.mrf.mxu0  ;;  %v433_v39 = vsel %vm182_vm0, %v367_v11, 0.0  ;;  %v870_v47 = vmul.f32 %v631_v43, %v4746_v52  ;;  %v645_v48 = vmul.f32 0.5, %v644_v29  ;;  %v5113_v52 = vpop.eup %4414  ;;  %440 = vadd.xlane.f32.xlu2 %v439_v0  ;;  %v258_v43 = vsel %vm182_vm0, %v5174_v28, 0.0 }
 0x1a4   : > { %v1083_v55 = vadd.f32 %v1082_v37, %v4998_v51  ;;  %250 = vadd.xlane.f32.xlu0 %v249_v62  ;;  %v239_v56 = vpop.xlane.xlu1 %238  ;;  %434 = vadd.xlane.f32.xlu1 %v433_v39  ;;  %v423_v6 = vpop.xlane.xlu2 %422  ;;  %v663_v1 = vmul.f32 %v5113_v52, %v5033_v46  ;;  %vm669_vm15 = vweird.f32 %v5113_v52 }
 0x1a5   : > { %v304_v24 = vmul.f32 %v4619_v20, %v239_v56  ;;  %v491_v2 = vmul.f32 %v423_v6, %v4619_v20  ;;  %v903_v3 = vmul.f32 %v4757_v50, %v870_v47  ;;  %v646_v5 = vsub.f32 1.5, %v645_v48  ;;  %vm670_vm1 = vmor %vm668_vm14, %vm669_vm15 }
 0x1a6   : > { %1233 = vst.msk [vmem:[#allocation2 + $0x21] sm:$0xff] %vm1175_vm10, %v1083_v55  ;;  %v664_v25 = vmul.f32 %v5113_v52, %v663_v1 }
 0x1a7   : > { %v5121_v40 = vpop.eup %4416  ;;  %v5126_v31 = vsub.f32 %v4863_v58, %v304_v24  ;;  %v5128_v61 = vadd.f32 1e-06, %v491_v2  ;;  %v936_v7 = vadd.f32 %v4764_v8, %v903_v3  ;;  %v871_v58 = vmul.f32 %v641_v63, %v4717_v22 }
 0x1a8   : > { %v653_v26 = vmul.f32 %v5121_v40, %v5063_v12  ;;  %v647_v13 = vmul.f32 %v5057_v44, %v646_v5  ;;  %v261_v22 = vsel %vm182_vm0, %v5134_v10, 0.0  ;;  %vm659_vm12 = vweird.f32 %v5121_v40 }
 0x1a9   : > { %4418 = vrsqrt.f32 %v5128_v61  ;;  %v368_v14 = vmul.f32 %v5126_v31, %v5126_v31  ;;  %4249 = vmatmul.msk.f32.gmra.mxu0 %vm182_vm0, %v936_v7  ;;  %v904_v34 = vmul.f32 %v4757_v50, %v871_v58  ;;  %v665_v37 = vmul.f32 0.5, %v664_v25  ;;  %vm5201_vm13 = vmor %vm658_vm11, %vm659_vm12 }
 0x1aa   : > { %v654_v15 = vmul.f32 %v5121_v40, %v653_v26  ;;  %v651_v4 = vsel %vm5162_vm9, %v5057_v44, %v647_v13  ;;  %vm678_vm3 = vweird.f32 %v5128_v61 }
 0x1ab   : > { %v1085_v23 = vpop.f32.mrf.mxu0  ;;  %v436_v16 = vsel %vm182_vm0, %v368_v14, 0.0  ;;  %262 = vadd.xlane.f32.xlu2 %v261_v22  ;;  %v937_v44 = vadd.f32 %v4764_v8, %v904_v34  ;;  %v872_v12 = vmul.f32 %v651_v4, %v4777_v19  ;;  %v666_v0 = vsub.f32 1.5, %v665_v37 }
 0x1ac   : > { %v655_v18 = vmul.f32 0.5, %v654_v15  ;;  %437 = vadd.xlane.f32.xlu0 %v436_v16  ;;  %256 = vadd.xlane.f32.xlu1 %v255_v9  ;;  %v245_v41 = vpop.xlane.xlu2 %244  ;;  %v1086_v29 = vadd.f32 %v1085_v23, %v4998_v51  ;;  %v264_v9 = vsel %vm182_vm0, %v5217_v42, 0.0 }
 0x1ad   : > { %v306_v59 = vmul.f32 %v4619_v20, %v245_v41  ;;  %v905_v6 = vmul.f32 %v4757_v50, %v872_v12  ;;  %v667_v5 = vmul.f32 %v5113_v52, %v666_v0 }
 0x1ae   : > { %v656_v62 = vsub.f32 1.5, %v655_v18  ;;  %1234 = vst.msk [vmem:[#allocation2 + $0x31] sm:$0xff] %vm1175_vm10, %v1086_v29 }
 0x1af   : > { %v4419_v11 = vpop.eup %4418  ;;  %v5187_v36 = vsub.f32 %v4878_v38, %v306_v59  ;;  %v938_v2 = vadd.f32 %v4764_v8, %v905_v6  ;;  %v671_v58 = vsel %vm670_vm1, %v5113_v52, %v667_v5 }
 0x1b0   : > { %v657_v39 = vmul.f32 %v5121_v40, %v656_v62  ;;  %v673_v47 = vmul.f32 %v4419_v11, %v5128_v61  ;;  %vm679_vm4 = vweird.f32 %v4419_v11  ;;  %v874_v13 = vmul.f32 %v671_v58, %v4774_v27 }
 0x1b1   : > { %v370_v38 = vmul.f32 %v5187_v36, %v5187_v36  ;;  %4250 = vmatmul.msk.f32.gmra.mxu0 %vm182_vm0, %v937_v44  ;;  %vm680_vm5 = vmor %vm678_vm3, %vm679_vm4 }
 0x1b2   : > { %v674_v63 = vmul.f32 %v4419_v11, %v673_v47  ;;  %v661_v24 = vsel %vm5201_vm13, %v5121_v40, %v657_v39  ;;  %v907_v23 = vmul.f32 %v4757_v50, %v874_v13 }
 0x1b3   : > { %v1088_v19 = vpop.f32.mrf.mxu0  ;;  %v442_v55 = vsel %vm182_vm0, %v370_v38, 0.0  ;;  %v873_v3 = vmul.f32 %v661_v24, %v4832_v21 }
 0x1b4   : > { %v1089_v56 = vadd.f32 %v1088_v19, %v4998_v51  ;;  %259 = vadd.xlane.f32.xlu0 %v258_v43  ;;  %443 = vadd.xlane.f32.xlu1 %v442_v55  ;;  %v675_v7 = vmul.f32 0.5, %v674_v63  ;;  %v940_v52 = vadd.f32 %v4764_v8, %v907_v23 }
 0x1b5   : > { %v906_v46 = vmul.f32 %v4757_v50, %v873_v3 }
 0x1b6   : > { %1235 = vst.msk [vmem:[#allocation2 + $0x39] sm:$0xff] %vm1175_vm10, %v1089_v56  ;;  %v676_v26 = vsub.f32 1.5, %v675_v7 }
 0x1b7   : > { %v939_v21 = vadd.f32 %v4764_v8, %v906_v46  ;;  %v5277_v46 = vld [vmem:[%s4600_s14 + $0xe0] sm:$0xff] }
 0x1b8   : > { %v677_v14 = vmul.f32 %v4419_v11, %v676_v26  ;;  %v5280_v26 = vld [vmem:[%s4600_s14 + $0xf0] sm:$0xff]  ;;  %v267_v23 = vsel %vm182_vm0, %v5277_v46, 0.0 }
 0x1b9   : > { %4251 = vmatmul.msk.f32.gmra.mxu0 %vm182_vm0, %v938_v2 }
 0x1ba   : > { %v681_v16 = vsel %vm680_vm5, %v4419_v11, %v677_v14 }
 0x1bb   : > { %v1091_v40 = vpop.f32.mrf.mxu0  ;;  %v875_v61 = vmul.f32 %v681_v16, %v4860_v57  ;;  %v273_v16 = vsel %vm182_vm0, %v5280_v26, 0.0 }
 0x1bc   : > { %v1092_v1 = vadd.f32 %v1091_v40, %v4998_v51  ;;  %265 = vadd.xlane.f32.xlu1 %v264_v9 }
 0x1bd   : > { %v908_v18 = vmul.f32 %v4757_v50, %v875_v61 }
 0x1be   : > { %1236 = vst.msk [vmem:[#allocation2 + $0x49] sm:$0xff] %vm1175_vm10, %v1092_v1 }
 0x1bf   : > { %v941_v41 = vadd.f32 %v4764_v8, %v908_v18 }
 0x1c1   : > { %4252 = vmatmul.msk.f32.gmra.mxu0 %vm182_vm0, %v939_v21 }
 0x1c3   : > { %v1094_v15 = vpop.f32.mrf.mxu0 }
 0x1c4   : > { %v1095_v22 = vadd.f32 %v1094_v15, %v4998_v51 }
 0x1c6   : > { %1237 = vst.msk [vmem:[#allocation2 + $0x51] sm:$0xff] %vm1175_vm10, %v1095_v22 }
 0x1c9   : > { %4253 = vmatmul.msk.f32.gmra.mxu0 %vm182_vm0, %v940_v52 }
 0x1cb   : > { %v1097_v17 = vpop.f32.mrf.mxu0 }
 0x1cc   : > { %v1098_v27 = vadd.f32 %v1097_v17, %v4998_v51 }
 0x1ce   : > { %1238 = vst.msk [vmem:[#allocation2 + $0x61] sm:$0xff] %vm1175_vm10, %v1098_v27 }
 0x1d1   : > { %4254 = vmatmul.msk.f32.gmra.mxu0 %vm182_vm0, %v941_v41 }
 0x206   : > { %v426_v34 = vpop.xlane.xlu1 %425  ;;  %v432_v25 = vpop.xlane.xlu2 %431 }
 0x207   : > { %v492_v59 = vmul.f32 %v426_v34, %v4619_v20  ;;  %v494_v4 = vmul.f32 %v432_v25, %v4619_v20 }
 0x209   : > { %v524_v57 = vadd.f32 1e-06, %v492_v59  ;;  %v5248_v62 = vadd.f32 1e-06, %v494_v4 }
 0x20b   : > { %4420 = vrsqrt.f32 %v524_v57  ;;  %vm688_vm7 = vweird.f32 %v524_v57  ;;  %vm708_vm11 = vweird.f32 %v5248_v62 }
 0x20c   : > { %4422 = vrsqrt.f32 %v5248_v62 }
 0x20e   : > { %v248_v11 = vpop.xlane.xlu1 %247  ;;  %v254_v29 = vpop.xlane.xlu2 %253 }
 0x20f   : > { %v307_v44 = vmul.f32 %v4619_v20, %v248_v11  ;;  %v309_v43 = vmul.f32 %v4619_v20, %v254_v29  ;;  %v429_v12 = vpop.xlane.xlu0 %428 }
 0x210   : > { %v493_v37 = vmul.f32 %v429_v12, %v4619_v20 }
 0x211   : > { %v4421_v39 = vpop.eup %4420  ;;  %v5255_v47 = vsub.f32 %v4985_v35, %v307_v44  ;;  %v5258_v38 = vsub.f32 %v4995_v54, %v309_v43 }
 0x212   : > { %v5260_v48 = vpop.eup %4422  ;;  %v683_v19 = vmul.f32 %v4421_v39, %v524_v57  ;;  %v5262_v55 = vadd.f32 1e-06, %v493_v37  ;;  %vm689_vm6 = vweird.f32 %v4421_v39 }
 0x213   : > { %v371_v56 = vmul.f32 %v5255_v47, %v5255_v47  ;;  %v373_v6 = vmul.f32 %v5258_v38, %v5258_v38  ;;  %v703_v35 = vmul.f32 %v5260_v48, %v5248_v62  ;;  %vm690_vm8 = vmor %vm688_vm7, %vm689_vm6  ;;  %vm709_vm12 = vweird.f32 %v5260_v48 }
 0x214   : > { %v684_v0 = vmul.f32 %v4421_v39, %v683_v19  ;;  %4424 = vrsqrt.f32 %v5262_v55  ;;  %v5313_v19 = vld [vmem:[%s4600_s14 + $0xe8] sm:$0xff]  ;;  %vm698_vm13 = vweird.f32 %v5262_v55  ;;  %vm5347_vm15 = vmor %vm708_vm11, %vm709_vm12 }
 0x215   : > { %v445_v54 = vsel %vm182_vm0, %v371_v56, 0.0  ;;  %v451_v63 = vsel %vm182_vm0, %v373_v6, 0.0  ;;  %v704_v7 = vmul.f32 %v5260_v48, %v703_v35 }
 0x216   : > { %v685_v24 = vmul.f32 0.5, %v684_v0  ;;  %446 = vadd.xlane.f32.xlu0 %v445_v54  ;;  %452 = vadd.xlane.f32.xlu1 %v451_v63  ;;  %v441_v40 = vpop.xlane.xlu2 %440 }
 0x217   : > { %v435_v2 = vpop.xlane.xlu1 %434  ;;  %v251_v3 = vpop.xlane.xlu0 %250  ;;  %v497_v22 = vmul.f32 %v441_v40, %v4619_v20  ;;  %v705_v52 = vmul.f32 0.5, %v704_v7 }
 0x218   : > { %v686_v5 = vsub.f32 1.5, %v685_v24  ;;  %v495_v9 = vmul.f32 %v435_v2, %v4619_v20  ;;  %v308_v1 = vmul.f32 %v4619_v20, %v251_v3 }
 0x219   : > { %v5303_v34 = vadd.f32 1e-06, %v497_v22  ;;  %v706_v57 = vsub.f32 1.5, %v705_v52  ;;  %v5362_v22 = vld [vmem:[%s4600_s14 + $0xf8] sm:$0xff] }
 0x21a   : > { %v5282_v58 = vpop.eup %4424  ;;  %v687_v21 = vmul.f32 %v4421_v39, %v686_v5  ;;  %v5284_v13 = vadd.f32 1e-06, %v495_v9  ;;  %v5287_v14 = vsub.f32 %v5055_v45, %v308_v1 }
 0x21b   : > { %v693_v15 = vmul.f32 %v5282_v58, %v5262_v55  ;;  %vm699_vm9 = vweird.f32 %v5282_v58  ;;  %v707_v63 = vmul.f32 %v5260_v48, %v706_v57 }
 0x21c   : > { %4426 = vrsqrt.f32 %v5284_v13  ;;  %v372_v45 = vmul.f32 %v5287_v14, %v5287_v14  ;;  %v691_v61 = vsel %vm690_vm8, %v4421_v39, %v687_v21  ;;  %vm5335_vm14 = vmor %vm698_vm13, %vm699_vm9  ;;  %vm718_vm1 = vweird.f32 %v5284_v13 }
 0x21d   : > { %v694_v17 = vmul.f32 %v5282_v58, %v693_v15  ;;  %v876_v27 = vmul.f32 %v691_v61, %v4951_v49  ;;  %v1100_v25 = vpop.f32.mrf.mxu0  ;;  %4428 = vrsqrt.f32 %v5303_v34  ;;  %v711_v52 = vsel %vm5347_vm15, %v5260_v48, %v707_v63 }
 0x21e   : > { %268 = vadd.xlane.f32.xlu0 %v267_v23  ;;  %274 = vadd.xlane.f32.xlu1 %v273_v16  ;;  %v448_v18 = vsel %vm182_vm0, %v372_v45, 0.0  ;;  %v1101_v11 = vadd.f32 %v1100_v25, %v4998_v51  ;;  %v263_v29 = vpop.xlane.xlu2 %262  ;;  %v878_v25 = vmul.f32 %v711_v52, %v4954_v30  ;;  %vm738_vm8 = vweird.f32 %v5303_v34 }
 0x21f   : > { %v695_v41 = vmul.f32 0.5, %v694_v17  ;;  %v257_v59 = vpop.xlane.xlu1 %256  ;;  %449 = vadd.xlane.f32.xlu2 %v448_v18  ;;  %v909_v4 = vmul.f32 %v4757_v50, %v876_v27  ;;  %v438_v44 = vpop.xlane.xlu0 %437  ;;  %v312_v12 = vmul.f32 %v4619_v20, %v263_v29  ;;  %v276_v18 = vsel %vm182_vm0, %v5362_v22, 0.0 }
 0x220   : > { %v310_v49 = vmul.f32 %v4619_v20, %v257_v59  ;;  %v496_v37 = vmul.f32 %v438_v44, %v4619_v20  ;;  %1239 = vst.msk [vmem:[#allocation2 + $0x69] sm:$0xff] %vm1175_vm10, %v1101_v11 }
 0x221   : > { %v696_v43 = vsub.f32 1.5, %v695_v41  ;;  %v942_v39 = vadd.f32 %v4764_v8, %v909_v4  ;;  %v5329_v54 = vsub.f32 %v5134_v10, %v312_v12  ;;  %v270_v10 = vsel %vm182_vm0, %v5313_v19, 0.0 }
 0x222   : > { %v5315_v56 = vpop.eup %4426  ;;  %v5322_v6 = vsub.f32 %v5108_v60, %v310_v49  ;;  %v5339_v60 = vadd.f32 1e-06, %v496_v37 }
 0x223   : > { %v697_v0 = vmul.f32 %v5282_v58, %v696_v43  ;;  %v713_v35 = vmul.f32 %v5315_v56, %v5284_v13  ;;  %4255 = vmatmul.msk.f32.gmra.mxu0 %vm182_vm0, %v942_v39  ;;  %v376_v5 = vmul.f32 %v5329_v54, %v5329_v54  ;;  %v5369_v45 = vpop.eup %4428  ;;  %vm719_vm3 = vweird.f32 %v5315_v56  ;;  %v1267_v13 = vld [vmem:[#allocation2 + $0x8] sm:$0xff] }
 0x224   : > { %v374_v24 = vmul.f32 %v5322_v6, %v5322_v6  ;;  %4430 = vrsqrt.f32 %v5339_v60  ;;  %v733_v57 = vmul.f32 %v5369_v45, %v5303_v34  ;;  %vm5393_vm4 = vmor %vm718_vm1, %vm719_vm3  ;;  %v911_v43 = vmul.f32 %v4757_v50, %v878_v25 }
 0x225   : > { %v714_v3 = vmul.f32 %v5315_v56, %v713_v35  ;;  %v701_v7 = vsel %vm5335_vm14, %v5282_v58, %v697_v0  ;;  %v460_v21 = vsel %vm182_vm0, %v376_v5, 0.0  ;;  %vm728_vm5 = vweird.f32 %v5339_v60 }
 0x226   : > { %v454_v9 = vsel %vm182_vm0, %v374_v24, 0.0  ;;  %v1103_v1 = vpop.f32.mrf.mxu0  ;;  %v877_v15 = vmul.f32 %v701_v7, %v5009_v53  ;;  %461 = vadd.xlane.f32.xlu1 %v460_v21  ;;  %v734_v12 = vmul.f32 %v5369_v45, %v733_v57  ;;  %vm739_vm9 = vweird.f32 %v5369_v45 }
 0x227   : > { %v715_v40 = vmul.f32 0.5, %v714_v3  ;;  %455 = vadd.xlane.f32.xlu0 %v454_v9  ;;  %v444_v62 = vpop.xlane.xlu1 %443  ;;  %271 = vadd.xlane.f32.xlu2 %v270_v10  ;;  %v1104_v23 = vadd.f32 %v1103_v1, %v4998_v51  ;;  %v260_v58 = vpop.xlane.xlu0 %259  ;;  %v944_v10 = vadd.f32 %v4764_v8, %v911_v43  ;;  %vm740_vm11 = vmor %vm738_vm8, %vm739_vm9  ;;  %v1364_v43 = vld [vmem:[#allocation2 + $0x9] sm:$0xff] }
 0x228   : > { %v498_v16 = vmul.f32 %v444_v62, %v4619_v20  ;;  %v311_v17 = vmul.f32 %v4619_v20, %v260_v58  ;;  %v910_v27 = vmul.f32 %v4757_v50, %v877_v15  ;;  %v735_v3 = vmul.f32 0.5, %v734_v12  ;;  %v1266_v12 = vld [vmem:[#allocation2] sm:$0xff] }
 0x229   : > { %v716_v61 = vsub.f32 1.5, %v715_v40  ;;  %1240 = vst.msk [vmem:[#allocation2 + $0x79] sm:$0xff] %vm1175_vm10, %v1104_v23 }
 0x22a   : > { %v5374_v53 = vadd.f32 1e-06, %v498_v16  ;;  %v5380_v41 = vsub.f32 %v5174_v28, %v311_v17  ;;  %v943_v48 = vadd.f32 %v4764_v8, %v910_v27  ;;  %v4431_v59 = vpop.eup %4430  ;;  %v736_v40 = vsub.f32 1.5, %v735_v3 }
 0x22b   : > { %v717_v4 = vmul.f32 %v5315_v56, %v716_v61  ;;  %v723_v11 = vmul.f32 %v4431_v59, %v5339_v60  ;;  %vm729_vm6 = vweird.f32 %v4431_v59 }
 0x22c   : > { %4432 = vrsqrt.f32 %v5374_v53  ;;  %4256 = vmatmul.msk.f32.gmra.mxu0 %vm182_vm0, %v943_v48  ;;  %v375_v28 = vmul.f32 %v5380_v41, %v5380_v41  ;;  %vm730_vm7 = vmor %vm728_vm5, %vm729_vm6  ;;  %v737_v23 = vmul.f32 %v5369_v45, %v736_v40  ;;  %vm748_vm12 = vweird.f32 %v5374_v53  ;;  %v1557_v40 = vld [vmem:[#allocation2 + $0x18] sm:$0xff] }
 0x22d   : > { %v724_v30 = vmul.f32 %v4431_v59, %v723_v11  ;;  %v721_v0 = vsel %vm5393_vm4, %v5315_v56, %v717_v4 }
 0x22e   : > { %v1106_v49 = vpop.f32.mrf.mxu0  ;;  %v457_v44 = vsel %vm182_vm0, %v375_v28, 0.0  ;;  %v879_v2 = vmul.f32 %v721_v0, %v5066_v33  ;;  %v741_v17 = vsel %vm740_vm11, %v5369_v45, %v737_v23  ;;  %v1655_v23 = vld [vmem:[#allocation2 + $0x21] sm:$0xff] }
 0x22f   : > { %277 = vadd.xlane.f32.xlu0 %v276_v18  ;;  %v266_v29 = vpop.xlane.xlu1 %265  ;;  %v1107_v37 = vadd.f32 %v1106_v49, %v4998_v51  ;;  %458 = vadd.xlane.f32.xlu2 %v457_v44  ;;  %v725_v35 = vmul.f32 0.5, %v724_v30  ;;  %v881_v27 = vmul.f32 %v741_v17, %v5052_v32  ;;  %v4522_v30 = vld [vmem:[%s7834_s1] sm:$0xff] }
 0x230   : > { %v313_v39 = vmul.f32 %v4619_v20, %v266_v29  ;;  %v5447_v49 = vperm.slane %v4522_v30, 7  ;;  %v146_v29 = vld [vmem:[%s7834_s1 + $0x10] sm:$0xff] }
 0x231   : > { %1241 = vst.msk [vmem:[#allocation2 + $0x81] sm:$0xff] %vm1175_vm10, %v1107_v37  ;;  %v726_v24 = vsub.f32 1.5, %v725_v35  ;;  %v914_v25 = vmul.f32 %v4757_v50, %v881_v27  ;;  %v5459_v37 = vperm.slane %v146_v29, 0  ;;  %v1751_v27 = vld [vmem:[#allocation2 + $0x1a] sm:$0xff] }
 0x232   : > { %v4433_v63 = vpop.eup %4432  ;;  %v5408_v55 = vsub.f32 %v5217_v42, %v313_v39  ;;  %v912_v42 = vmul.f32 %v4757_v50, %v879_v2  ;;  %v1300_v44 = vmul.f32 %v5447_v49, %v1267_v13 }
 0x233   : > { %v743_v5 = vmul.f32 %v4433_v63, %v5374_v53  ;;  %v727_v7 = vmul.f32 %v4431_v59, %v726_v24  ;;  %vm749_vm13 = vweird.f32 %v4433_v63  ;;  %v947_v45 = vadd.f32 %v4764_v8, %v914_v25  ;;  %v1461_v24 = vld [vmem:[#allocation2 + $0xa] sm:$0xff] }
 0x234   : > { %7877 = vst [vmem:[#allocation4_spill] sm:$0xff] %v5408_v55  ;;  %v377_v56 = vmul.f32 %v5408_v55, %v5408_v55  ;;  %4257 = vmatmul.msk.f32.gmra.mxu0 %vm182_vm0, %v944_v10  ;;  %v945_v21 = vadd.f32 %v4764_v8, %v912_v42  ;;  %vm750_vm14 = vmor %vm748_vm12, %vm749_vm13  ;;  %v1332_v0 = vadd.f32 %v1300_v44, %v5459_v37  ;;  %v1363_v10 = vld [vmem:[#allocation2 + $0x1] sm:$0xff] }
 0x235   : > { %v744_v1 = vmul.f32 %v4433_v63, %v743_v5  ;;  %v731_v33 = vsel %vm730_vm7, %v4431_v59, %v727_v7 }
 0x236   : > { %v463_v60 = vsel %vm182_vm0, %v377_v56, 0.0  ;;  %v1109_v9 = vpop.f32.mrf.mxu0  ;;  %v880_v15 = vmul.f32 %v731_v33, %v5126_v31 }
 0x237   : > { %v1110_v62 = vadd.f32 %v1109_v9, %v4998_v51  ;;  %464 = vadd.xlane.f32.xlu2 %v463_v60  ;;  %v745_v16 = vmul.f32 0.5, %v744_v1  ;;  %v1558_v60 = vld [vmem:[#allocation2 + $0x20] sm:$0xff] }
 0x238   : > { %v913_v52 = vmul.f32 %v4757_v50, %v880_v15  ;;  %v1460_v9 = vld [vmem:[#allocation2 + $0x2] sm:$0xff]  ;;  %v1301_v15 = vmul.f32 %v1557_v40, %v5447_v49 }
 0x239   : > { %1242 = vst.msk [vmem:[#allocation2 + $0x91] sm:$0xff] %vm1175_vm10, %v1110_v62  ;;  %v746_v61 = vsub.f32 1.5, %v745_v16  ;;  %v1302_v16 = vmul.f32 %v1558_v60, %v5447_v49 }
 0x23a   : > { %v946_v31 = vadd.f32 %v4764_v8, %v913_v52  ;;  %v1333_v25 = vadd.f32 %v1301_v15, %v5459_v37  ;;  %v2043_v15 = vld [vmem:[#allocation2 + $0x32] sm:$0xff] }
 0x23b   : > { %v747_v18 = vmul.f32 %v4433_v63, %v746_v61 }
 0x23c   : > { %4258 = vmatmul.msk.f32.gmra.mxu0 %vm182_vm0, %v945_v21 }
 0x23d   : > { %v751_v59 = vsel %vm750_vm14, %v4433_v63, %v747_v18  ;;  %v1299_v63 = vmul.f32 %v5447_v49, %v1266_v12 }
 0x23e   : > { %v1112_v58 = vpop.f32.mrf.mxu0  ;;  %v882_v53 = vmul.f32 %v751_v59, %v5187_v36  ;;  %v5453_v36 = vld [vmem:[%s7834_s1 + $0x8] sm:$0xff]  ;;  %v1850_v59 = vld [vmem:[#allocation2 + $0x38] sm:$0xff] }
 0x23f   : > { %v1113_v34 = vadd.f32 %v1112_v58, %v4998_v51  ;;  %v5462_v39 = vperm.slane %v5453_v36, 0  ;;  %v5468_v2 = vperm.slane %v5453_v36, 1  ;;  %v1331_v56 = vadd.f32 %v1299_v63, %v5459_v37 }
 0x240   : > { %v915_v32 = vmul.f32 %v4757_v50, %v882_v53  ;;  %v5474_v42 = vperm.slane %v5453_v36, 2  ;;  %v5481_v52 = vperm.slane %v5453_v36, 3  ;;  %v5485_v17 = vperm.slane %v5453_v36, 4  ;;  %v1849_v53 = vld [vmem:[#allocation2 + $0x30] sm:$0xff] }
 0x241   : > { %1243 = vst.msk [vmem:[#allocation2 + $0x99] sm:$0xff] %vm1175_vm10, %v1113_v34  ;;  %v1397_v35 = vmul.f32 %v5462_v39, %v1364_v43  ;;  %v1494_v5 = vmul.f32 %v5468_v2, %v1461_v24  ;;  %v1396_v7 = vmul.f32 %v5462_v39, %v1363_v10  ;;  %v1493_v21 = vmul.f32 %v5468_v2, %v1460_v9  ;;  %v1947_v9 = vld [vmem:[#allocation2 + $0x39] sm:$0xff] }
 0x242   : > { %v948_v28 = vadd.f32 %v4764_v8, %v915_v32  ;;  %v1591_v62 = vmul.f32 %v5474_v42, %v1558_v60  ;;  %v1590_v34 = vmul.f32 %v5474_v42, %v1557_v40  ;;  %v1688_v18 = vmul.f32 %v5481_v52, %v1655_v23 }
 0x243   : > { %v1429_v3 = vadd.f32 %v1397_v35, %v1332_v0  ;;  %v1428_v33 = vadd.f32 %v1396_v7, %v1331_v56  ;;  %v1399_v30 = vmul.f32 %v1655_v23, %v5462_v39  ;;  %v1784_v43 = vmul.f32 %v5485_v17, %v1751_v27  ;;  %v1946_v7 = vld [vmem:[#allocation2 + $0x31] sm:$0xff] }
 0x244   : > { %4259 = vmatmul.msk.f32.gmra.mxu0 %vm182_vm0, %v946_v31  ;;  %v1654_v31 = vld [vmem:[#allocation2 + $0x19] sm:$0xff]  ;;  %v1592_v0 = vmul.f32 %v1849_v53, %v5474_v42  ;;  %v5502_v35 = vperm.slane %v5453_v36, 6  ;;  %v1303_v24 = vmul.f32 %v1849_v53, %v5447_v49  ;;  %v1304_v10 = vmul.f32 %v1850_v59, %v5447_v49 }
 0x245   : > { %v1526_v1 = vadd.f32 %v1494_v5, %v1429_v3  ;;  %v1525_v61 = vadd.f32 %v1493_v21, %v1428_v33  ;;  %v1687_v29 = vmul.f32 %v5481_v52, %v1654_v31  ;;  %v5510_v33 = vperm.slane %v5453_v36, 7 }
 0x246   : > { %v1115_v48 = vpop.f32.mrf.mxu0 }
 0x247   : > { %v1116_v4 = vadd.f32 %v1115_v48, %v4998_v51  ;;  %v1623_v58 = vadd.f32 %v1591_v62, %v1526_v1  ;;  %v1752_v48 = vld [vmem:[#allocation2 + $0x22] sm:$0xff]  ;;  %v1622_v32 = vadd.f32 %v1590_v34, %v1525_v61  ;;  %v1593_v1 = vmul.f32 %v1850_v59, %v5474_v42 }
 0x248   : > { %v1785_v13 = vmul.f32 %v5485_v17, %v1752_v48  ;;  %v1496_v40 = vmul.f32 %v1752_v48, %v5468_v2  ;;  %v1851_v61 = vld [vmem:[#allocation2 + $0x48] sm:$0xff]  ;;  %v1335_v34 = vadd.f32 %v1303_v24, %v5459_v37  ;;  %v1689_v48 = vmul.f32 %v1946_v7, %v5481_v52 }
 0x249   : > { %1244 = vst.msk [vmem:[#allocation2 + $0xa9] sm:$0xff] %vm1175_vm10, %v1116_v4  ;;  %v5490_v4 = vperm.slane %v5453_v36, 5  ;;  %v1719_v5 = vadd.f32 %v1687_v29, %v1622_v32  ;;  %v2044_v36 = vld [vmem:[#allocation2 + $0x3a] sm:$0xff]  ;;  %v1401_v32 = vmul.f32 %v1947_v9, %v5462_v39 }
 0x24b   : > { %v1883_v44 = vmul.f32 %v5490_v4, %v1850_v59  ;;  %v1882_v56 = vmul.f32 %v5490_v4, %v1849_v53  ;;  %v1816_v21 = vadd.f32 %v1784_v43, %v1719_v5  ;;  %v1786_v53 = vmul.f32 %v2043_v15, %v5485_v17  ;;  %v1948_v5 = vld [vmem:[#allocation2 + $0x49] sm:$0xff] }
 0x24c   : > { %4260 = vmatmul.msk.f32.gmra.mxu0 %vm182_vm0, %v947_v45  ;;  %v1334_v45 = vadd.f32 %v1302_v16, %v5459_v37  ;;  %v1884_v29 = vmul.f32 %v5490_v4, %v1851_v61  ;;  %v1594_v43 = vmul.f32 %v1851_v61, %v5474_v42 }
 0x24e   : > { %v1118_v57 = vpop.f32.mrf.mxu0  ;;  %v1431_v63 = vadd.f32 %v1399_v30, %v1334_v45  ;;  %v1852_v45 = vld [vmem:[#allocation2 + $0x50] sm:$0xff]  ;;  %v1305_v30 = vmul.f32 %v1851_v61, %v5447_v49  ;;  %v1563_v61 = vld [vmem:[#allocation2 + $0x60] sm:$0xff] }
 0x24f   : > { %v1119_v11 = vadd.f32 %v1118_v57, %v4998_v51  ;;  %v1720_v57 = vadd.f32 %v1688_v18, %v1623_v58  ;;  %v1979_v58 = vmul.f32 %v5502_v35, %v1946_v7  ;;  %v1914_v18 = vadd.f32 %v1882_v56, %v1816_v21  ;;  %v2045_v56 = vld [vmem:[#allocation2 + $0x4a] sm:$0xff] }
 0x250   : > { %v1528_v16 = vadd.f32 %v1496_v40, %v1431_v63  ;;  %v1690_v63 = vmul.f32 %v1947_v9, %v5481_v52  ;;  %v1595_v40 = vmul.f32 %v1852_v45, %v5474_v42 }
 0x251   : > { %1245 = vst.msk [vmem:[#allocation2 + $0xb1] sm:$0xff] %vm1175_vm10, %v1119_v11  ;;  %v1398_v11 = vmul.f32 %v1654_v31, %v5462_v39  ;;  %v1817_v3 = vadd.f32 %v1785_v13, %v1720_v57  ;;  %v1336_v31 = vadd.f32 %v1304_v10, %v5459_v37  ;;  %v1497_v57 = vmul.f32 %v2043_v15, %v5468_v2 }
 0x252   : > { %v1625_v59 = vadd.f32 %v1593_v1, %v1528_v16  ;;  %v2011_v24 = vadd.f32 %v1979_v58, %v1914_v18  ;;  %v1306_v10 = vmul.f32 %v1852_v45, %v5447_v49  ;;  %v1949_v16 = vld [vmem:[#allocation2 + $0x51] sm:$0xff]  ;;  %v1402_v18 = vmul.f32 %v1948_v5, %v5462_v39 }
 0x253   : > { %v1430_v12 = vadd.f32 %v1398_v11, %v1333_v25  ;;  %v1915_v62 = vadd.f32 %v1883_v44, %v1817_v3  ;;  %v1400_v25 = vmul.f32 %v1946_v7, %v5462_v39 }
 0x254   : > { %4261 = vmatmul.msk.f32.gmra.mxu0 %vm182_vm0, %v948_v28  ;;  %v1495_v28 = vmul.f32 %v1751_v27, %v5468_v2  ;;  %v1980_v27 = vmul.f32 %v5502_v35, %v1947_v9  ;;  %v1722_v1 = vadd.f32 %v1690_v63, %v1625_v59  ;;  %v1691_v59 = vmul.f32 %v1948_v5, %v5481_v52 }
 0x255   : > { %v1432_v44 = vadd.f32 %v1400_v25, %v1335_v34  ;;  %v1338_v25 = vadd.f32 %v1306_v10, %v5459_v37 }
 0x256   : > { %v1527_v60 = vadd.f32 %v1495_v28, %v1430_v12  ;;  %v2012_v11 = vadd.f32 %v1980_v27, %v1915_v62  ;;  %v2076_v28 = vmul.f32 %v5510_v33, %v2043_v15  ;;  %v1433_v12 = vadd.f32 %v1401_v32, %v1336_v31 }
 0x257   : > { %v1529_v7 = vadd.f32 %v1497_v57, %v1432_v44  ;;  %v1787_v62 = vmul.f32 %v2044_v36, %v5485_v17  ;;  %v1337_v15 = vadd.f32 %v1305_v30, %v5459_v37  ;;  %v1885_v27 = vmul.f32 %v5490_v4, %v1852_v45 }
 0x258   : > { %v1624_v23 = vadd.f32 %v1592_v0, %v1527_v60  ;;  %v2077_v0 = vmul.f32 %v5510_v33, %v2044_v36  ;;  %v1498_v60 = vmul.f32 %v2044_v36, %v5468_v2  ;;  %v5531_v21 = vadd.f32 %v2076_v28, %v2011_v24  ;;  %v1951_v24 = vld [vmem:[#allocation2 + $0x69] sm:$0xff] }
 0x259   : > { %v1626_v34 = vadd.f32 %v1594_v43, %v1529_v7  ;;  %v1981_v36 = vmul.f32 %v5502_v35, %v1948_v5  ;;  %v1819_v32 = vadd.f32 %v1787_v62, %v1722_v1  ;;  %v1434_v28 = vadd.f32 %v1402_v18, %v1337_v15  ;;  %v1660_v5 = vld [vmem:[#allocation2 + $0x61] sm:$0xff] }
 0x25a   : > { %v1721_v13 = vadd.f32 %v1689_v48, %v1624_v23  ;;  %v1854_v23 = vld [vmem:[#allocation2 + $0x68] sm:$0xff]  ;;  %v5534_v9 = vadd.f32 %v2077_v0, %v2012_v11  ;;  %v1530_v31 = vadd.f32 %v1498_v60, %v1433_v12  ;;  %v1499_v48 = vmul.f32 %v2045_v56, %v5468_v2  ;;  %v2046_v11 = vld [vmem:[#allocation2 + $0x52] sm:$0xff] }
 0x25b   : > { %v1308_v57 = vmul.f32 %v1854_v23, %v5447_v49  ;;  %v1403_v45 = vmul.f32 %v1949_v16, %v5462_v39  ;;  %v1788_v44 = vmul.f32 %v2045_v56, %v5485_v17  ;;  %v1692_v43 = vmul.f32 %v1949_v16, %v5481_v52  ;;  %v1757_v62 = vld [vmem:[#allocation2 + $0x62] sm:$0xff] }
 0x25c   : > { %v1818_v3 = vadd.f32 %v1786_v53, %v1721_v13  ;;  %v1627_v53 = vadd.f32 %v1595_v40, %v1530_v31  ;;  %v1596_v13 = vmul.f32 %v5474_v42, %v1563_v61  ;;  %v1917_v12 = vadd.f32 %v1885_v27, %v1819_v32 }
 0x25d   : > { %v1982_v0 = vmul.f32 %v5502_v35, %v1949_v16  ;;  %v1531_v63 = vadd.f32 %v1499_v48, %v1434_v28  ;;  %v1435_v10 = vadd.f32 %v1403_v45, %v1338_v25  ;;  %v1886_v7 = vmul.f32 %v5490_v4, %v1563_v61 }
 0x25e   : > { %v1916_v58 = vadd.f32 %v1884_v29, %v1818_v3  ;;  %v1723_v29 = vadd.f32 %v1691_v59, %v1626_v34  ;;  %v2079_v3 = vmul.f32 %v5510_v33, %v2046_v11  ;;  %v1724_v60 = vadd.f32 %v1692_v43, %v1627_v53  ;;  %v1855_v59 = vld [vmem:[#allocation2 + $0x78] sm:$0xff]  ;;  %v2048_v53 = vld [vmem:[#allocation2 + $0x6a] sm:$0xff] }
 0x25f   : > { %v1340_v40 = vadd.f32 %v1308_v57, %v5459_v37  ;;  %v1628_v1 = vadd.f32 %v1596_v13, %v1531_v63  ;;  %v1500_v15 = vmul.f32 %v2046_v11, %v5468_v2  ;;  %v1307_v34 = vmul.f32 %v1563_v61, %v5447_v49  ;;  %v5559_v57 = vld [vmem:[#allocation2 + $0x80] sm:$0xff] }
 0x260   : > { %v2013_v30 = vadd.f32 %v1981_v36, %v1916_v58  ;;  %v1597_v58 = vmul.f32 %v1854_v23, %v5474_v42  ;;  %v1820_v16 = vadd.f32 %v1788_v44, %v1723_v29  ;;  %v1789_v31 = vmul.f32 %v2046_v11, %v5485_v17 }
 0x261   : > { %v1887_v27 = vmul.f32 %v5490_v4, %v1854_v23  ;;  %v1405_v18 = vmul.f32 %v1951_v24, %v5462_v39  ;;  %v2014_v48 = vadd.f32 %v1982_v0, %v1917_v12  ;;  %v2078_v25 = vmul.f32 %v5510_v33, %v2045_v56 }
 0x262   : > { %v1693_v36 = vmul.f32 %v5481_v52, %v1660_v5  ;;  %v1532_v32 = vadd.f32 %v1500_v15, %v1435_v10  ;;  %v1790_v28 = vmul.f32 %v5485_v17, %v1757_v62  ;;  %v1918_v61 = vadd.f32 %v1886_v7, %v1820_v16  ;;  %v2049_v16 = vld [vmem:[#allocation2 + $0x7a] sm:$0xff] }
 0x263   : > { %v1821_v13 = vadd.f32 %v1789_v31, %v1724_v60  ;;  %v1437_v45 = vadd.f32 %v1405_v18, %v1340_v40  ;;  %v1983_v23 = vmul.f32 %v5502_v35, %v1660_v5  ;;  %v1339_v44 = vadd.f32 %v1307_v34, %v5459_v37  ;;  %v1952_v34 = vld [vmem:[#allocation2 + $0x79] sm:$0xff] }
 0x264   : > { %v1725_v11 = vadd.f32 %v1693_v36, %v1628_v1  ;;  %v1629_v29 = vadd.f32 %v1597_v58, %v1532_v32  ;;  %v1888_v56 = vmul.f32 %v5490_v4, %v1855_v59  ;;  %v1502_v12 = vmul.f32 %v2048_v53, %v5468_v2 }
 0x265   : > { %v1919_v43 = vadd.f32 %v1887_v27, %v1821_v13  ;;  %v1599_v0 = vmul.f32 %v5474_v42, %v5559_v57  ;;  %v5568_v63 = vadd.f32 %v2079_v3, %v2014_v48  ;;  %v5570_v10 = vadd.f32 %v2078_v25, %v2013_v30  ;;  %v1663_v27 = vld [vmem:[#allocation2 + $0x81] sm:$0xff] }
 0x266   : > { %v1694_v7 = vmul.f32 %v1951_v24, %v5481_v52  ;;  %v1404_v60 = vmul.f32 %v1660_v5, %v5462_v39  ;;  %v1822_v40 = vadd.f32 %v1790_v28, %v1725_v11  ;;  %v2015_v1 = vadd.f32 %v1983_v23, %v1918_v61 }
 0x267   : > { %v1984_v15 = vmul.f32 %v5502_v35, %v1951_v24  ;;  %v1534_v58 = vadd.f32 %v1502_v12, %v1437_v45  ;;  %v2080_v31 = vmul.f32 %v5510_v33, %v1757_v62  ;;  %v1501_v3 = vmul.f32 %v1757_v62, %v5468_v2 }
 0x268   : > { %v1726_v18 = vadd.f32 %v1694_v7, %v1629_v29  ;;  %v1436_v36 = vadd.f32 %v1404_v60, %v1339_v44  ;;  %v1920_v25 = vadd.f32 %v1888_v56, %v1822_v40  ;;  %v1791_v5 = vmul.f32 %v2048_v53, %v5485_v17 }
 0x269   : > { %v2016_v32 = vadd.f32 %v1984_v15, %v1919_v43  ;;  %v1631_v13 = vadd.f32 %v1599_v0, %v1534_v58  ;;  %v1889_v61 = vmul.f32 %v5490_v4, %v5559_v57  ;;  %v1598_v45 = vmul.f32 %v1855_v59, %v5474_v42  ;;  %v5591_v43 = vld [vmem:[#allocation2 + $0x82] sm:$0xff] }
 0x26a   : > { %v1985_v11 = vmul.f32 %v5502_v35, %v1952_v34  ;;  %v2082_v62 = vmul.f32 %v5510_v33, %v2049_v16  ;;  %v2081_v23 = vmul.f32 %v5510_v33, %v2048_v53  ;;  %v1696_v29 = vmul.f32 %v5481_v52, %v1663_v27 }
 0x26b   : > { %v1823_v12 = vadd.f32 %v1791_v5, %v1726_v18  ;;  %v1533_v0 = vadd.f32 %v1501_v3, %v1436_v36  ;;  %v5593_v60 = vadd.f32 %v2080_v31, %v2015_v1  ;;  %v1309_v15 = vmul.f32 %v1855_v59, %v5447_v49  ;;  %v1857_v3 = vld [vmem:[#allocation2 + $0x90] sm:$0xff] }
 0x26c   : > { %v2017_v7 = vadd.f32 %v1985_v11, %v1920_v25  ;;  %v1728_v40 = vadd.f32 %v1696_v29, %v1631_v13  ;;  %v5597_v58 = vadd.f32 %v2081_v23, %v2016_v32  ;;  %v1793_v18 = vmul.f32 %v5485_v17, %v5591_v43 }
 0x26d   : > { %v1921_v53 = vadd.f32 %v1889_v61, %v1823_v12  ;;  %v1695_v36 = vmul.f32 %v1952_v34, %v5481_v52  ;;  %v1986_v1 = vmul.f32 %v5502_v35, %v1663_v27  ;;  %v2083_v59 = vmul.f32 %v5510_v33, %v5591_v43 }
 0x26e   : > { %v1792_v31 = vmul.f32 %v2049_v16, %v5485_v17  ;;  %v1310_v25 = vmul.f32 %v5559_v57, %v5447_v49  ;;  %v5611_v5 = vadd.f32 %v1793_v18, %v1728_v40  ;;  %v1406_v61 = vmul.f32 %v1952_v34, %v5462_v39 }
 0x26f   : > { %v2018_v29 = vadd.f32 %v1986_v1, %v1921_v53  ;;  %v1407_v40 = vmul.f32 %v1663_v27, %v5462_v39  ;;  %v1600_v27 = vmul.f32 %v1857_v3, %v5474_v42 }
 0x270   : > { %v1342_v53 = vadd.f32 %v1310_v25, %v5459_v37 }
 0x289   : > { %v453_v30 = vpop.xlane.xlu1 %452  ;;  %v447_v48 = vpop.xlane.xlu0 %446 }
 0x28a   : > { %v501_v28 = vmul.f32 %v453_v30, %v4619_v20  ;;  %v499_v24 = vmul.f32 %v447_v48, %v4619_v20  ;;  %v1630_v30 = vadd.f32 %v1598_v45, %v1533_v0  ;;  %v5600_v48 = vadd.f32 %v2082_v62, %v2017_v7 }
 0x28b   : > { %v1503_v45 = vmul.f32 %v2049_v16, %v5468_v2  ;;  %v1890_v0 = vmul.f32 %v5490_v4, %v1857_v3  ;;  %v1311_v7 = vmul.f32 %v1857_v3, %v5447_v49 }
 0x28c   : > { %v5587_v44 = vadd.f32 1e-06, %v501_v28  ;;  %v5589_v56 = vadd.f32 1e-06, %v499_v24  ;;  %v1954_v28 = vld [vmem:[#allocation2 + $0x91] sm:$0xff]  ;;  %v1341_v24 = vadd.f32 %v1309_v15, %v5459_v37  ;;  %v1727_v12 = vadd.f32 %v1695_v36, %v1630_v30 }
 0x28d   : > { %v1987_v18 = vmul.f32 %v5502_v35, %v1954_v28 }
 0x28e   : > { %4434 = vrsqrt.f32 %v5587_v44  ;;  %v1824_v1 = vadd.f32 %v1792_v31, %v1727_v12  ;;  %v1343_v31 = vadd.f32 %v1311_v7, %v5459_v37  ;;  %v5650_v12 = vadd.f32 %v2083_v59, %v2018_v29 }
 0x28f   : > { %4436 = vrsqrt.f32 %v5589_v56  ;;  %vm758_vm1 = vweird.f32 %v5589_v56  ;;  %vm778_vm4 = vweird.f32 %v5587_v44 }
 0x291   : > { %v275_v32 = vpop.xlane.xlu1 %274  ;;  %v269_v13 = vpop.xlane.xlu0 %268 }
 0x292   : > { %v316_v11 = vmul.f32 %v4619_v20, %v275_v32  ;;  %v450_v62 = vpop.xlane.xlu2 %449  ;;  %v314_v23 = vmul.f32 %v4619_v20, %v269_v13  ;;  %v1438_v32 = vadd.f32 %v1406_v61, %v1341_v24 }
 0x293   : > { %v500_v57 = vmul.f32 %v450_v62, %v4619_v20 }
 0x294   : > { %v5622_v15 = vpop.eup %4434  ;;  %v5625_v34 = vsub.f32 %v5280_v26, %v316_v11  ;;  %v5628_v16 = vsub.f32 %v5277_v46, %v314_v23  ;;  %v1922_v11 = vadd.f32 %v1890_v0, %v1824_v1  ;;  %v1535_v24 = vadd.f32 %v1503_v45, %v1438_v32 }
 0x295   : > { %v5632_v30 = vpop.eup %4436  ;;  %v5634_v36 = vadd.f32 1e-06, %v500_v57  ;;  %v773_v13 = vmul.f32 %v5622_v15, %v5587_v44  ;;  %v1439_v23 = vadd.f32 %v1407_v40, %v1342_v53  ;;  %v1408_v57 = vmul.f32 %v1954_v28, %v5462_v39 }
 0x296   : > { %7878 = vst [vmem:[#allocation5_spill] sm:$0xff] %v5625_v34  ;;  %v753_v26 = vmul.f32 %v5632_v30, %v5589_v56  ;;  %v380_v46 = vmul.f32 %v5625_v34, %v5625_v34  ;;  %v378_v25 = vmul.f32 %v5628_v16, %v5628_v16  ;;  %v1632_v34 = vadd.f32 %v1600_v27, %v1535_v24 }
 0x297   : > { %7879 = vst [vmem:[#allocation6_spill] sm:$0xff] %v5628_v16  ;;  %4438 = vrsqrt.f32 %v5634_v36  ;;  %v774_v16 = vmul.f32 %v5622_v15, %v773_v13  ;;  %v1697_v45 = vmul.f32 %v1954_v28, %v5481_v52  ;;  %v1504_v32 = vmul.f32 %v5591_v43, %v5468_v2 }
 0x298   : > { %v754_v3 = vmul.f32 %v5632_v30, %v753_v26  ;;  %v472_v61 = vsel %vm182_vm0, %v380_v46, 0.0  ;;  %v466_v62 = vsel %vm182_vm0, %v378_v25, 0.0  ;;  %v5659_v59 = vadd.f32 %v1987_v18, %v1922_v11  ;;  %v1858_v46 = vld [vmem:[#allocation2 + $0x98] sm:$0xff] }
 0x299   : > { %473 = vadd.xlane.f32.xlu2 %v472_v61  ;;  %467 = vadd.xlane.f32.xlu0 %v466_v62  ;;  %v462_v26 = vpop.xlane.xlu1 %461  ;;  %v5661_v29 = vadd.f32 %v1408_v57, %v1343_v31  ;;  %vm759_vm15 = vweird.f32 %v5632_v30  ;;  %v5665_v25 = vld [vmem:[#allocation2 + $0x99] sm:$0xff]  ;;  %v1536_v28 = vadd.f32 %v1504_v32, %v1439_v23  ;;  %v5677_v31 = vadd.f32 %v1697_v45, %v1632_v34 }
 0x29a   : > { %v755_v0 = vmul.f32 0.5, %v754_v3  ;;  %v272_v1 = vpop.xlane.xlu2 %271  ;;  %v456_v7 = vpop.xlane.xlu0 %455  ;;  %v504_v13 = vmul.f32 %v462_v26, %v4619_v20  ;;  %v5675_v11 = vld [vmem:[#allocation2 + $0x9a] sm:$0xff]  ;;  %v775_v3 = vmul.f32 0.5, %v774_v16  ;;  %vm760_vm3 = vmor %vm758_vm1, %vm759_vm15  ;;  %v1891_v56 = vmul.f32 %v5490_v4, %v1858_v46  ;;  %v2051_v16 = vld [vmem:[#allocation2 + $0x92] sm:$0xff] }
 0x29b   : > { %v315_v40 = vmul.f32 %v4619_v20, %v272_v1  ;;  %v502_v53 = vmul.f32 %v456_v7, %v4619_v20  ;;  %v1988_v34 = vmul.f32 %v5502_v35, %v5665_v25  ;;  %v5697_v7 = vmul.f32 %v5510_v33, %v5675_v11 }
 0x29c   : > { %v756_v27 = vsub.f32 1.5, %v755_v0  ;;  %v5682_v23 = vadd.f32 1e-06, %v504_v13  ;;  %v2084_v13 = vmul.f32 %v5510_v33, %v2051_v16  ;;  %vm779_vm5 = vweird.f32 %v5622_v15 }
 0x29d   : > { %v5667_v24 = vpop.eup %4438  ;;  %v5671_v43 = vsub.f32 %v5313_v19, %v315_v40  ;;  %v5673_v18 = vadd.f32 1e-06, %v502_v53  ;;  %v1601_v40 = vmul.f32 %v1858_v46, %v5474_v42  ;;  %v776_v53 = vsub.f32 1.5, %v775_v3  ;;  %vm5729_vm8 = vmor %vm778_vm4, %vm779_vm5 }
 0x29e   : > { %v757_v61 = vmul.f32 %v5632_v30, %v756_v27  ;;  %v763_v62 = vmul.f32 %v5667_v24, %v5634_v36  ;;  %vm769_vm6 = vweird.f32 %v5667_v24  ;;  %vm768_vm7 = vweird.f32 %v5634_v36 }
 0x29f   : > { %7880 = vst [vmem:[#allocation7_spill] sm:$0xff] %v5671_v43  ;;  %4440 = vrsqrt.f32 %v5673_v18  ;;  %v379_v19 = vmul.f32 %v5671_v43, %v5671_v43  ;;  %vm770_vm9 = vmor %vm768_vm7, %vm769_vm6  ;;  %v1633_v44 = vadd.f32 %v1601_v40, %v1536_v28  ;;  %v1569_v40 = vld [vmem:[#allocation2 + $0xa8] sm:$0xff]  ;;  %vm788_vm11 = vweird.f32 %v5673_v18 }
 0x2a0   : > { %v761_v57 = vsel %vm760_vm3, %v5632_v30, %v757_v61  ;;  %v764_v0 = vmul.f32 %v5667_v24, %v763_v62  ;;  %4442 = vrsqrt.f32 %v5682_v23  ;;  %v1121_v1 = vpop.f32.mrf.mxu0  ;;  %v1505_v61 = vmul.f32 %v2051_v16, %v5468_v2 }
 0x2a1   : > { %v1122_v45 = vadd.f32 %v1121_v1, %v4998_v51  ;;  %v469_v32 = vsel %vm182_vm0, %v379_v19, 0.0  ;;  %v883_v26 = vmul.f32 %v761_v57, %v5255_v47  ;;  %vm808_vm1 = vweird.f32 %v5682_v23 }
 0x2a2   : > { %v765_v27 = vmul.f32 0.5, %v764_v0  ;;  %470 = vadd.xlane.f32.xlu1 %v469_v32  ;;  %v278_v30 = vpop.xlane.xlu0 %277  ;;  %v459_v62 = vpop.xlane.xlu2 %458  ;;  %v1794_v0 = vmul.f32 %v2051_v16, %v5485_v17 }
 0x2a3   : > { %1246 = vst.msk [vmem:[#allocation2 + $0xc1] sm:$0xff] %vm1175_vm10, %v1122_v45  ;;  %v317_v19 = vmul.f32 %v4619_v20, %v278_v30  ;;  %v916_v47 = vmul.f32 %v4757_v50, %v883_v26  ;;  %v503_v3 = vmul.f32 %v459_v62, %v4619_v20  ;;  %v1698_v30 = vmul.f32 %v5665_v25, %v5481_v52 }
 0x2a4   : > { %v766_v57 = vsub.f32 1.5, %v765_v27  ;;  %v777_v27 = vmul.f32 %v5622_v15, %v776_v53 }
 0x2a5   : > { %v5713_v1 = vpop.eup %4440  ;;  %v5717_v32 = vsub.f32 %v5362_v22, %v317_v19  ;;  %v949_v45 = vadd.f32 %v4764_v8, %v916_v47  ;;  %v5736_v62 = vadd.f32 1e-06, %v503_v3  ;;  %v1923_v19 = vadd.f32 %v1891_v56, %v5611_v5 }
 0x2a6   : > { %v5722_v26 = vpop.eup %4442  ;;  %v767_v22 = vmul.f32 %v5667_v24, %v766_v57  ;;  %v783_v36 = vmul.f32 %v5713_v1, %v5673_v18  ;;  %v1312_v47 = vmul.f32 %v1858_v46, %v5447_v49  ;;  %v1795_v5 = vmul.f32 %v5675_v11, %v5485_v17 }
 0x2a7   : > { %7881 = vst [vmem:[#allocation8_spill] sm:$0xff] %v5717_v32  ;;  %4262 = vmatmul.msk.f32.gmra.mxu0 %vm182_vm0, %v949_v45  ;;  %v381_v53 = vmul.f32 %v5717_v32, %v5717_v32  ;;  %v803_v57 = vmul.f32 %v5722_v26, %v5682_v23  ;;  %4444 = vrsqrt.f32 %v5736_v62  ;;  %v5751_v32 = vadd.f32 %v2084_v13, %v5659_v59 }
 0x2a8   : > { %v771_v43 = vsel %vm770_vm9, %v5667_v24, %v767_v22  ;;  %v784_v55 = vmul.f32 %v5713_v1, %v783_v36  ;;  %v781_v46 = vsel %vm5729_vm8, %v5622_v15, %v777_v27  ;;  %v1537_v56 = vadd.f32 %v1505_v61, %v5661_v29 }
 0x2a9   : > { %v475_v3 = vsel %vm182_vm0, %v381_v53, 0.0  ;;  %v884_v45 = vmul.f32 %v771_v43, %v5287_v14  ;;  %v1124_v24 = vpop.f32.mrf.mxu0  ;;  %v1409_v22 = vmul.f32 %v5665_v25, %v5462_v39  ;;  %v2020_v13 = vadd.f32 %v1988_v34, %v1923_v19 }
 0x2aa   : > { %v785_v28 = vmul.f32 0.5, %v784_v55  ;;  %476 = vadd.xlane.f32.xlu0 %v475_v3  ;;  %v1125_v14 = vadd.f32 %v1124_v24, %v4998_v51  ;;  %v465_v59 = vpop.xlane.xlu2 %464  ;;  %v1344_v36 = vadd.f32 %v1312_v47, %v5459_v37  ;;  %v804_v16 = vmul.f32 %v5722_v26, %v803_v57 }
 0x2ab   : > { %v917_v43 = vmul.f32 %v4757_v50, %v884_v45  ;;  %v505_v55 = vmul.f32 %v465_v59, %v4619_v20  ;;  %v1730_v27 = vadd.f32 %v1698_v30, %v1633_v44  ;;  %v885_v25 = vmul.f32 %v781_v46, %v5258_v38  ;;  %v1666_v30 = vld [vmem:[#allocation2 + $0xa9] sm:$0xff] }
 0x2ac   : > { %v786_v15 = vsub.f32 1.5, %v785_v28  ;;  %1247 = vst.msk [vmem:[#allocation2 + $0xc9] sm:$0xff] %vm1175_vm10, %v1125_v14  ;;  %v1602_v61 = vmul.f32 %v5474_v42, %v1569_v40  ;;  %v1892_v53 = vmul.f32 %v5490_v4, %v1569_v40  ;;  %vm789_vm12 = vweird.f32 %v5713_v1 }
 0x2ad   : > { %v950_v29 = vadd.f32 %v4764_v8, %v917_v43  ;;  %v5771_v3 = vpop.eup %4444  ;;  %v5776_v19 = vadd.f32 1e-06, %v505_v55  ;;  %v1826_v38 = vadd.f32 %v1794_v0, %v5677_v31  ;;  %v1441_v47 = vadd.f32 %v1409_v22, %v1344_v36  ;;  %vm5788_vm13 = vmor %vm788_vm11, %vm789_vm12  ;;  %v1860_v0 = vld [vmem:[#allocation2 + $0xb0] sm:$0xff] }
 0x2ae   : > { %v787_v34 = vmul.f32 %v5713_v1, %v786_v15  ;;  %v793_v44 = vmul.f32 %v5771_v3, %v5736_v62  ;;  %v1506_v57 = vmul.f32 %v5675_v11, %v5468_v2  ;;  %v805_v45 = vmul.f32 0.5, %v804_v16 }
 0x2af   : > { %4263 = vmatmul.msk.f32.gmra.mxu0 %vm182_vm0, %v950_v29  ;;  %4446 = vrsqrt.f32 %v5776_v19  ;;  %v5786_v18 = vadd.f32 %v5697_v7, %v2020_v13  ;;  %v1827_v46 = vadd.f32 %v1795_v5, %v1730_v27  ;;  %v918_v31 = vmul.f32 %v4757_v50, %v885_v25 }
 0x2b0   : > { %v794_v24 = vmul.f32 %v5771_v3, %v793_v44  ;;  %v1699_v11 = vmul.f32 %v5481_v52, %v1666_v30  ;;  %v1313_v22 = vmul.f32 %v1569_v40, %v5447_v49  ;;  %v791_v7 = vsel %vm5788_vm13, %v5713_v1, %v787_v34  ;;  %v1763_v40 = vld [vmem:[#allocation2 + $0xaa] sm:$0xff]  ;;  %v2054_v44 = vld [vmem:[#allocation2 + $0xb2] sm:$0xff] }
 0x2b1   : > { %2174 = vrot.lane.b32.xlu2 %v5534_v9, %s4567_s23  ;;  %v1127_v5 = vpop.f32.mrf.mxu0  ;;  %v1634_v14 = vadd.f32 %v1602_v61, %v1537_v56  ;;  %v1924_v59 = vadd.f32 %v1892_v53, %v1826_v38  ;;  %v1989_v43 = vmul.f32 %v5502_v35, %v1666_v30  ;;  %v1538_v16 = vadd.f32 %v1506_v57, %v1441_v47 }
 0x2b2   : > { %v795_v13 = vmul.f32 0.5, %v794_v24  ;;  %v1128_v36 = vadd.f32 %v1127_v5, %v4998_v51  ;;  %v1410_v15 = vmul.f32 %v1666_v30, %v5462_v39  ;;  %v806_v55 = vsub.f32 1.5, %v805_v45  ;;  %v1957_v30 = vld [vmem:[#allocation2 + $0xb1] sm:$0xff] }
 0x2b3   : > { %vm798_vm14 = vweird.f32 %v5736_v62  ;;  %vm799_vm15 = vweird.f32 %v5771_v3  ;;  %v1314_v27 = vmul.f32 %v1860_v0, %v5447_v49  ;;  %v886_v1 = vmul.f32 %v791_v7, %v5322_v6 }
 0x2b4   : > { %v796_v56 = vsub.f32 1.5, %v795_v13  ;;  %1248 = vst.msk [vmem:[#allocation2 + $0xd9] sm:$0xff] %vm1175_vm10, %v1128_v36  ;;  %v951_v29 = vadd.f32 %v4764_v8, %v918_v31  ;;  %v1345_v25 = vadd.f32 %v1313_v22, %v5459_v37  ;;  %vm809_vm3 = vweird.f32 %v5722_v26  ;;  %vm5820_vm4 = vmor %vm798_vm14, %vm799_vm15 }
 0x2b5   : > { %v5811_v61 = vpop.eup %4446  ;;  %v1731_v53 = vadd.f32 %v1699_v11, %v1634_v14  ;;  %v2021_v34 = vadd.f32 %v1989_v43, %v1924_v59  ;;  %v1796_v57 = vmul.f32 %v5485_v17, %v1763_v40  ;;  %v1893_v45 = vmul.f32 %v5490_v4, %v1860_v0  ;;  %vm5837_vm5 = vmor %vm808_vm1, %vm809_vm3  ;;  %v1861_v43 = vld [vmem:[#allocation2 + $0xc0] sm:$0xff] }
 0x2b6   : > { %v797_v38 = vmul.f32 %v5771_v3, %v796_v56  ;;  %v813_v47 = vmul.f32 %v5811_v61, %v5776_v19  ;;  %v807_v28 = vmul.f32 %v5722_v26, %v806_v55  ;;  %v2086_v24 = vmul.f32 %v5510_v33, %v1763_v40 }
 0x2b7   : > { %4264 = vmatmul.msk.f32.gmra.mxu0 %vm182_vm0, %v951_v29  ;;  %v1346_v31 = vadd.f32 %v1314_v27, %v5459_v37  ;;  %v1603_v62 = vmul.f32 %v1860_v0, %v5474_v42  ;;  %v919_v22 = vmul.f32 %v4757_v50, %v886_v1  ;;  %v1990_v7 = vmul.f32 %v5502_v35, %v1957_v30 }
 0x2b8   : > { %v5846_v5 = vmul.f32 %v5510_v33, %v2054_v44  ;;  %v1442_v14 = vadd.f32 %v1410_v15, %v1345_v25  ;;  %v801_v0 = vsel %vm5820_vm4, %v5771_v3, %v797_v38  ;;  %v814_v23 = vmul.f32 %v5811_v61, %v813_v47 }
 0x2b9   : > { %2178 = vrot.lane.b32.xlu2 %v5568_v63, %s4567_s23  ;;  %v1130_v59 = vpop.f32.mrf.mxu0  ;;  %v1411_v13 = vmul.f32 %v1957_v30, %v5462_v39  ;;  %v1508_v36 = vmul.f32 %v2054_v44, %v5468_v2  ;;  %v1828_v27 = vadd.f32 %v1796_v57, %v1731_v53  ;;  %v1925_v1 = vadd.f32 %v1893_v45, %v1827_v46  ;;  %v1958_v53 = vld [vmem:[#allocation2 + $0xc1] sm:$0xff] }
 0x2ba   : > { %v1131_v55 = vadd.f32 %v1130_v59, %v4998_v51  ;;  %v1507_v15 = vmul.f32 %v1763_v40, %v5468_v2  ;;  %v811_v3 = vsel %vm5837_vm5, %v5722_v26, %v807_v28  ;;  %v5861_v56 = vadd.f32 %v2086_v24, %v2021_v34  ;;  %v1572_v40 = vld [vmem:[#allocation2 + $0xc8] sm:$0xff] }
 0x2bb   : > { %2172 = vrot.lane.b32.xlu1 %v5531_v21, %s4567_s23  ;;  %v1443_v29 = vadd.f32 %v1411_v13, %v1346_v31  ;;  %v1635_v25 = vadd.f32 %v1603_v62, %v1538_v16  ;;  %v5863_v38 = vld [vmem:[#allocation2 + $0xd8] sm:$0xff]  ;;  %v887_v6 = vmul.f32 %v801_v0, %v5380_v41  ;;  %v952_v47 = vadd.f32 %v4764_v8, %v919_v22 }
 0x2bc   : > { %1249 = vst.msk [vmem:[#allocation2 + $0xe1] sm:$0xff] %vm1175_vm10, %v1131_v55  ;;  %v1894_v46 = vmul.f32 %v5490_v4, %v1861_v43  ;;  %v1700_v57 = vmul.f32 %v1957_v30, %v5481_v52  ;;  %v815_v45 = vmul.f32 0.5, %v814_v23  ;;  %v1797_v26 = vmul.f32 %v2054_v44, %v5485_v17  ;;  %v5874_v34 = vld [vmem:[#allocation2 + $0xd9] sm:$0xff]  ;;  %v2055_v23 = vld [vmem:[#allocation2 + $0xc2] sm:$0xff] }
 0x2bd   : > { %v1604_v16 = vmul.f32 %v1861_v43, %v5474_v42  ;;  %v1315_v41 = vmul.f32 %v1861_v43, %v5447_v49  ;;  %v888_v28 = vmul.f32 %v811_v3, %v5329_v54  ;;  %v5879_v24 = vadd.f32 %v1990_v7, %v1925_v1 }
 0x2be   : > { %2176 = vrot.lane.b32.xlu0 %v5570_v10, %s4567_s23  ;;  %v1539_v31 = vadd.f32 %v1507_v15, %v1442_v14  ;;  %v1317_v30 = vmul.f32 %v5863_v38, %v5447_v49  ;;  %v1991_v62 = vmul.f32 %v5502_v35, %v1958_v53  ;;  %v1540_v11 = vadd.f32 %v1508_v36, %v1443_v29  ;;  %v1669_v15 = vld [vmem:[#allocation2 + $0xc9] sm:$0xff] }
 0x2bf   : > { %4265 = vmatmul.msk.f32.gmra.mxu0 %vm182_vm0, %v952_v47  ;;  %v1605_v44 = vmul.f32 %v5474_v42, %v1572_v40  ;;  %v1732_v22 = vadd.f32 %v1700_v57, %v1635_v25  ;;  %v920_v0 = vmul.f32 %v4757_v50, %v887_v6  ;;  %v1926_v54 = vadd.f32 %v1894_v46, %v1828_v27  ;;  %v1766_v46 = vld [vmem:[#allocation2 + $0xca] sm:$0xff] }
 0x2c0   : > { %v1349_v7 = vadd.f32 %v1317_v30, %v5459_v37  ;;  %v1414_v14 = vmul.f32 %v5874_v34, %v5462_v39  ;;  %v816_v59 = vsub.f32 1.5, %v815_v45  ;;  %v1636_v13 = vadd.f32 %v1604_v16, %v1539_v31 }
 0x2c1   : > { %2184 = vrot.lane.b32.xlu2 %v5600_v48, %s4567_s23  ;;  %v1133_v43 = vpop.f32.mrf.mxu0  ;;  %v1701_v36 = vmul.f32 %v1958_v53, %v5481_v52  ;;  %v1347_v55 = vadd.f32 %v1315_v41, %v5459_v37  ;;  %v921_v27 = vmul.f32 %v4757_v50, %v888_v28  ;;  %v1316_v3 = vmul.f32 %v1572_v40, %v5447_v49 }
 0x2c2   : > { %v1134_v1 = vadd.f32 %v1133_v43, %v4998_v51  ;;  %v1446_v29 = vadd.f32 %v1414_v14, %v1349_v7  ;;  %vm818_vm6 = vweird.f32 %v5776_v19  ;;  %vm819_vm7 = vweird.f32 %v5811_v61 }
 0x2c3   : > { %2180 = vrot.lane.b32.xlu1 %v5593_v60, %s4567_s23  ;;  %v2088_v25 = vmul.f32 %v5510_v33, %v2055_v23  ;;  %v1637_v6 = vadd.f32 %v1605_v44, %v1540_v11  ;;  %v953_v47 = vadd.f32 %v4764_v8, %v920_v0  ;;  %v1864_v57 = vld [vmem:[#allocation2 + $0xe0] sm:$0xff]  ;;  %v1829_v45 = vadd.f32 %v1797_v26, %v1732_v22  ;;  %vm5915_vm8 = vmor %vm818_vm6, %vm819_vm7  ;;  %v7892_v26 = vld [vmem:[#allocation4_spill] sm:$0xff] }
 0x2c4   : > { %1250 = vst.msk [vmem:[#allocation2 + $0xf1] sm:$0xff] %vm1175_vm10, %v1134_v1  ;;  %v1895_v16 = vmul.f32 %v5490_v4, %v1572_v40  ;;  %v5904_v41 = vld [vmem:[#allocation2 + $0xda] sm:$0xff]  ;;  %v1412_v28 = vmul.f32 %v1958_v53, %v5462_v39  ;;  %v817_v31 = vmul.f32 %v5811_v61, %v816_v59  ;;  %v2023_v30 = vadd.f32 %v1991_v62, %v1926_v54  ;;  %v5932_v59 = vld [vmem:[#allocation2 + $0xe2] sm:$0xff] }
 0x2c5   : > { %v1702_v11 = vmul.f32 %v5481_v52, %v1669_v15  ;;  %v1733_v44 = vadd.f32 %v1701_v36, %v1636_v13  ;;  %v954_v53 = vadd.f32 %v4764_v8, %v921_v27  ;;  %v5921_v40 = vld [vmem:[#allocation2 + $0xe1] sm:$0xff]  ;;  %v1348_v62 = vadd.f32 %v1316_v3, %v5459_v37 }
 0x2c6   : > { %2182 = vrot.lane.b32.xlu0 %v5597_v58, %s4567_s23  ;;  %v1444_v22 = vadd.f32 %v1412_v28, %v1347_v55  ;;  %v1511_v0 = vmul.f32 %v5904_v41, %v5468_v2  ;;  %v5926_v54 = vadd.f32 %v2088_v25, %v2023_v30  ;;  %v1799_v19 = vmul.f32 %v5485_v17, %v1766_v46 }
 0x2c7   : > { %4266 = vmatmul.msk.f32.gmra.mxu0 %vm182_vm0, %v953_v47  ;;  %v1734_v7 = vadd.f32 %v1702_v11, %v1637_v6  ;;  %v1318_v14 = vmul.f32 %v1864_v57, %v5447_v49  ;;  %v1927_v43 = vadd.f32 %v1895_v16, %v1829_v45  ;;  %v1992_v13 = vmul.f32 %v5502_v35, %v1669_v15 }
 0x2c8   : > { %v1413_v36 = vmul.f32 %v1669_v15, %v5462_v39  ;;  %v1543_v55 = vadd.f32 %v1511_v0, %v1446_v29  ;;  %v821_v1 = vsel %vm5915_vm8, %v5811_v61, %v817_v31  ;;  %v2089_v3 = vmul.f32 %v5510_v33, %v1766_v46 }
 0x2c9   : > { %2190 = vrot.lane.b32.xlu2 %v5786_v18, %s4567_s23  ;;  %v1136_v27 = vpop.f32.mrf.mxu0  ;;  %v1350_v25 = vadd.f32 %v1318_v14, %v5459_v37  ;;  %v1415_v6 = vmul.f32 %v5921_v40, %v5462_v39  ;;  %v1897_v15 = vmul.f32 %v5490_v4, %v1864_v57  ;;  %v1798_v29 = vmul.f32 %v2055_v23, %v5485_v17 }
 0x2ca   : > { %v1137_v47 = vadd.f32 %v1136_v27, %v4998_v51  ;;  %v1445_v45 = vadd.f32 %v1413_v36, %v1348_v62  ;;  %v1831_v16 = vadd.f32 %v1799_v19, %v1734_v7  ;;  %v1509_v61 = vmul.f32 %v2055_v23, %v5468_v2 }
 0x2cb   : > { %2186 = vrot.lane.b32.xlu1 %v5650_v12, %s4567_s23  ;;  %v1865_v28 = vld [vmem:[#allocation2 + $0xf0] sm:$0xff]  ;;  %v1447_v30 = vadd.f32 %v1415_v6, %v1350_v25  ;;  %v1512_v11 = vmul.f32 %v5932_v59, %v5468_v2  ;;  %v889_v0 = vmul.f32 %v821_v1, %v7892_v26  ;;  %v1510_v14 = vmul.f32 %v1766_v46, %v5468_v2 }
 0x2cc   : > { %v5949_v31 = vld [vmem:[#allocation2 + $0xf1] sm:$0xff]  ;;  %1251 = vst.msk [vmem:[#allocation2 + $0xf9] sm:$0xff] %vm1175_vm10, %v1137_v47  ;;  %v1607_v27 = vmul.f32 %v1864_v57, %v5474_v42  ;;  %v1608_v62 = vmul.f32 %v1865_v28, %v5474_v42  ;;  %v2024_v23 = vadd.f32 %v1992_v13, %v1927_v43  ;;  %v1606_v7 = vmul.f32 %v5863_v38, %v5474_v42 }
 0x2cd   : > { %v1544_v19 = vadd.f32 %v1512_v11, %v1447_v30  ;;  %v1319_v36 = vmul.f32 %v1865_v28, %v5447_v49  ;;  %v1929_v1 = vadd.f32 %v1897_v15, %v1831_v16  ;;  %v1542_v25 = vadd.f32 %v1510_v14, %v1445_v45 }
 0x2ce   : > { %2188 = vrot.lane.b32.xlu0 %v5751_v32, %s4567_s23  ;;  %v1640_v6 = vadd.f32 %v1608_v62, %v1543_v55  ;;  %v1705_v46 = vmul.f32 %v5949_v31, %v5481_v52  ;;  %v1896_v57 = vmul.f32 %v5490_v4, %v5863_v38  ;;  %v1541_v47 = vadd.f32 %v1509_v61, %v1444_v22 }
 0x2cf   : > { %4267 = vmatmul.msk.f32.gmra.mxu0 %vm182_vm0, %v954_v53  ;;  %v1351_v43 = vadd.f32 %v1319_v36, %v5459_v37  ;;  %v1416_v13 = vmul.f32 %v5949_v31, %v5462_v39  ;;  %v922_v53 = vmul.f32 %v4757_v50, %v889_v0  ;;  %v1994_v55 = vmul.f32 %v5502_v35, %v5921_v40 }
 0x2d0   : > { %v1639_v15 = vadd.f32 %v1607_v27, %v1542_v25  ;;  %v1737_v45 = vadd.f32 %v1705_v46, %v1640_v6  ;;  %v5978_v38 = vadd.f32 %v5846_v5, %v5879_v24  ;;  %v1830_v22 = vadd.f32 %v1798_v29, %v1733_v44 }
 0x2d1   : > { %2196 = vrot.lane.b32.xlu2 %v5926_v54, %s4567_s23  ;;  %v1139_v16 = vpop.f32.mrf.mxu0  ;;  %v1638_v61 = vadd.f32 %v1606_v7, %v1541_v47  ;;  %v1448_v30 = vadd.f32 %v1416_v13, %v1351_v43  ;;  %v2026_v26 = vadd.f32 %v1994_v55, %v1929_v1  ;;  %v5983_v0 = vadd.f32 %v2089_v3, %v2024_v23 }
 0x2d2   : > { %v1140_v11 = vadd.f32 %v1139_v16, %v4998_v51  ;;  %v1704_v14 = vmul.f32 %v5921_v40, %v5481_v52  ;;  %v2091_v27 = vmul.f32 %v5510_v33, %v5932_v59  ;;  %v1928_v62 = vadd.f32 %v1896_v57, %v1830_v22 }
 0x2d3   : > { %2192 = vrot.lane.b32.xlu1 %v5861_v56, %s4567_s23  ;;  %v1993_v5 = vmul.f32 %v5502_v35, %v5874_v34  ;;  %v1703_v24 = vmul.f32 %v5874_v34, %v5481_v52  ;;  %v2059_v44 = vld [vmem:[#allocation2 + $0xf2] sm:$0xff]  ;;  %v955_v3 = vadd.f32 %v4764_v8, %v922_v53  ;;  %v1800_v23 = vmul.f32 %v5904_v41, %v5485_v17  ;;  %v2060_v47 = vld [vmem:[#allocation2 + $0xfa] sm:$0xff] }
 0x2d4   : > { %v1866_v29 = vld [vmem:[#allocation2 + $0xf8] sm:$0xff]  ;;  %1252 = vst.msk [vmem:[#allocation2 + $0x109] sm:$0xff] %vm1175_vm10, %v1140_v11  ;;  %v1736_v40 = vadd.f32 %v1704_v14, %v1639_v15  ;;  %v1802_v36 = vmul.f32 %v2059_v44, %v5485_v17  ;;  %v2090_v1 = vmul.f32 %v5510_v33, %v5904_v41  ;;  %v1801_v25 = vmul.f32 %v5932_v59, %v5485_v17 }
 0x2d5   : > { %v1963_v7 = vld [vmem:[#allocation2 + $0xf9] sm:$0xff]  ;;  %v1735_v34 = vadd.f32 %v1703_v24, %v1638_v61  ;;  %v1609_v6 = vmul.f32 %v1866_v29, %v5474_v42  ;;  %v6006_v46 = vadd.f32 %v2091_v27, %v2026_v26  ;;  %v1898_v57 = vmul.f32 %v5490_v4, %v1865_v28 }
 0x2d6   : > { %2194 = vrot.lane.b32.xlu0 %v5978_v38, %s4567_s23  ;;  %v6009_v43 = vadd.f32 %v1802_v36, %v1737_v45  ;;  %v1513_v13 = vmul.f32 %v2059_v44, %v5468_v2  ;;  %v1899_v53 = vmul.f32 %v5490_v4, %v1866_v29  ;;  %v1706_v55 = vmul.f32 %v1963_v7, %v5481_v52 }
 0x2d7   : > { %4268 = vmatmul.msk.f32.gmra.mxu0 %vm182_vm0, %v955_v3  ;;  %v1641_v41 = vadd.f32 %v1609_v6, %v1544_v19  ;;  %v1320_v59 = vmul.f32 %v1866_v29, %v5447_v49  ;;  %v2025_v15 = vadd.f32 %v1993_v5, %v1928_v62  ;;  %v1832_v16 = vadd.f32 %v1800_v23, %v1735_v34 }
 0x2d8   : > { %v1833_v22 = vadd.f32 %v1801_v25, %v1736_v40  ;;  %v6017_v61 = vadd.f32 %v1513_v13, %v1448_v30  ;;  %v1803_v45 = vmul.f32 %v2060_v47, %v5485_v17  ;;  %v1417_v26 = vmul.f32 %v1963_v7, %v5462_v39 }
 0x2d9   : > { %2202 = vrot.lane.b32.xlu2 %v6006_v46, %s4567_s23  ;;  %v1738_v28 = vadd.f32 %v1706_v55, %v1641_v41  ;;  %v1352_v11 = vadd.f32 %v1320_v59, %v5459_v37  ;;  %v6024_v19 = vadd.f32 %v2090_v1, %v2025_v15  ;;  %v1930_v14 = vadd.f32 %v1898_v57, %v1832_v16 }
 0x2da   : > { %v1931_v27 = vadd.f32 %v1899_v53, %v1833_v22  ;;  %v1514_v30 = vmul.f32 %v2060_v47, %v5468_v2  ;;  %v1995_v5 = vmul.f32 %v5502_v35, %v5949_v31  ;;  %v2092_v29 = vmul.f32 %v5510_v33, %v2059_v44 }
 0x2db   : > { %2198 = vrot.lane.b32.xlu1 %v5983_v0, %s4567_s23  ;;  %v6026_v24 = vadd.f32 %v1803_v45, %v1738_v28  ;;  %v1449_v62 = vadd.f32 %v1417_v26, %v1352_v11  ;;  %v1996_v3 = vmul.f32 %v5502_v35, %v1963_v7  ;;  %v2093_v34 = vmul.f32 %v5510_v33, %v2060_v47 }
 0x2dc   : > { %v2027_v40 = vadd.f32 %v1995_v5, %v1930_v14  ;;  %vm2441_vm8 = vcmask 1041408  }
 0x2dd   : > { %v6035_v23 = vadd.f32 %v1514_v30, %v1449_v62  ;;  %v2028_v36 = vadd.f32 %v1996_v3, %v1931_v27 }
 0x2de   : > { %2200 = vrot.lane.b32.xlu0 %v6024_v19, %s4567_s23  ;;  %v6037_v1 = vadd.f32 %v2092_v29, %v2027_v40 }
 0x2df   : > { %v6042_v25 = vadd.f32 %v2093_v34, %v2028_v36  ;;  %v7893_v36 = vld [vmem:[#allocation6_spill] sm:$0xff] }
 0x2e3   : > { %2204 = vrot.lane.b32.xlu1 %v6037_v1, %s4567_s23 }
 0x2e6   : > { %2206 = vrot.lane.b32.xlu0 %v6042_v25, %s4567_s23 }
 0x30c   : > { %v474_v31 = vpop.xlane.xlu2 %473  ;;  %v468_v44 = vpop.xlane.xlu0 %467 }
 0x30d   : > { %v508_v7 = vmul.f32 %v474_v31, %v4619_v20  ;;  %v506_v6 = vmul.f32 %v468_v44, %v4619_v20  ;;  %v6058_v44 = vld [vmem:[#allocation2 + $0x108] sm:$0xff] }
 0x30f   : > { %v540_v57 = vadd.f32 1e-06, %v508_v7  ;;  %v538_v13 = vadd.f32 1e-06, %v506_v6 }
 0x311   : > { %4448 = vrsqrt.f32 %v540_v57  ;;  %vm828_vm11 = vweird.f32 %v538_v13  ;;  %vm848_vm13 = vweird.f32 %v540_v57 }
 0x312   : > { %4450 = vrsqrt.f32 %v538_v13 }
 0x315   : > { %v471_v53 = vpop.xlane.xlu1 %470 }
 0x316   : > { %v507_v47 = vmul.f32 %v471_v53, %v4619_v20 }
 0x317   : > { %v6049_v41 = vpop.eup %4448 }
 0x318   : > { %v4451_v55 = vpop.eup %4450  ;;  %v539_v59 = vadd.f32 1e-06, %v507_v47  ;;  %v843_v15 = vmul.f32 %v6049_v41, %v540_v57  ;;  %vm849_vm14 = vweird.f32 %v6049_v41 }
 0x319   : > { %v823_v16 = vmul.f32 %v4451_v55, %v538_v13  ;;  %vm829_vm9 = vweird.f32 %v4451_v55  ;;  %vm6068_vm1 = vmor %vm848_vm13, %vm849_vm14 }
 0x31a   : > { %4452 = vrsqrt.f32 %v539_v59  ;;  %v844_v28 = vmul.f32 %v6049_v41, %v843_v15  ;;  %vm830_vm12 = vmor %vm828_vm11, %vm829_vm9  ;;  %vm838_vm3 = vweird.f32 %v539_v59 }
 0x31b   : > { %v824_v22 = vmul.f32 %v4451_v55, %v823_v16 }
 0x31c   : > { %v845_v30 = vmul.f32 0.5, %v844_v28 }
 0x31d   : > { %v825_v45 = vmul.f32 0.5, %v824_v22  ;;  %v477_v11 = vpop.xlane.xlu0 %476 }
 0x31e   : > { %v509_v26 = vmul.f32 %v477_v11, %v4619_v20  ;;  %v846_v7 = vsub.f32 1.5, %v845_v30  ;;  %v6074_v11 = vld [vmem:[#allocation2 + $0x109] sm:$0xff] }
 0x31f   : > { %v826_v14 = vsub.f32 1.5, %v825_v45 }
 0x320   : > { %v4453_v27 = vpop.eup %4452  ;;  %v6054_v62 = vadd.f32 1e-06, %v509_v26  ;;  %v847_v22 = vmul.f32 %v6049_v41, %v846_v7 }
 0x321   : > { %v827_v5 = vmul.f32 %v4451_v55, %v826_v14  ;;  %v833_v29 = vmul.f32 %v4453_v27, %v539_v59  ;;  %vm839_vm15 = vweird.f32 %v4453_v27 }
 0x322   : > { %4454 = vrsqrt.f32 %v6054_v62  ;;  %vm840_vm4 = vmor %vm838_vm3, %vm839_vm15  ;;  %vm858_vm5 = vweird.f32 %v6054_v62 }
 0x323   : > { %v831_v3 = vsel %vm830_vm12, %v4451_v55, %v827_v5  ;;  %v834_v40 = vmul.f32 %v4453_v27, %v833_v29  ;;  %v1900_v55 = vmul.f32 %v5490_v4, %v6058_v44  ;;  %v7896_v5 = vld [vmem:[#allocation7_spill] sm:$0xff] }
 0x324   : > { %v890_v34 = vmul.f32 %v831_v3, %v7893_v36  ;;  %v1142_v31 = vpop.f32.mrf.mxu0 }
 0x325   : > { %v835_v6 = vmul.f32 0.5, %v834_v40  ;;  %v1143_v53 = vadd.f32 %v1142_v31, %v4998_v51  ;;  %v1932_v30 = vadd.f32 %v1900_v55, %v6009_v43  ;;  %v851_v40 = vsel %vm6068_vm1, %v6049_v41, %v847_v22  ;;  %v7897_v55 = vld [vmem:[#allocation5_spill] sm:$0xff] }
 0x326   : > { %v923_v13 = vmul.f32 %v4757_v50, %v890_v34  ;;  %v1997_v34 = vmul.f32 %v5502_v35, %v6074_v11  ;;  %v1610_v43 = vmul.f32 %v6058_v44, %v5474_v42 }
 0x327   : > { %v836_v47 = vsub.f32 1.5, %v835_v6  ;;  %1253 = vst.msk [vmem:[#allocation2 + $0x111] sm:$0xff] %vm1175_vm10, %v1143_v53 }
 0x328   : > { %v4455_v15 = vpop.eup %4454  ;;  %v956_v16 = vadd.f32 %v4764_v8, %v923_v13  ;;  %v2029_v53 = vadd.f32 %v1997_v34, %v1932_v30  ;;  %v1707_v34 = vmul.f32 %v6074_v11, %v5481_v52 }
 0x329   : > { %v837_v57 = vmul.f32 %v4453_v27, %v836_v47  ;;  %v853_v45 = vmul.f32 %v4455_v15, %v6054_v62  ;;  %vm859_vm6 = vweird.f32 %v4455_v15 }
 0x32a   : > { %4269 = vmatmul.msk.f32.gmra.mxu0 %vm182_vm0, %v956_v16  ;;  %v892_v16 = vmul.f32 %v851_v40, %v7897_v55  ;;  %vm6104_vm7 = vmor %vm858_vm5, %vm859_vm6 }
 0x32b   : > { %v841_v26 = vsel %vm840_vm4, %v4453_v27, %v837_v57  ;;  %v854_v14 = vmul.f32 %v4455_v15, %v853_v45 }
 0x32c   : > { %v891_v29 = vmul.f32 %v841_v26, %v7896_v5  ;;  %v1145_v3 = vpop.f32.mrf.mxu0  ;;  %v1642_v5 = vadd.f32 %v1610_v43, %v6017_v61 }
 0x32d   : > { %v855_v36 = vmul.f32 0.5, %v854_v14  ;;  %v1146_v59 = vadd.f32 %v1145_v3, %v4998_v51 }
 0x32e   : > { %v924_v31 = vmul.f32 %v4757_v50, %v891_v29  ;;  %v2061_v7 = vld [vmem:[#allocation2 + $0x10a] sm:$0xff]  ;;  %v6095_v45 = vld [vmem:[#allocation2 + $0x112] sm:$0xff] }
 0x32f   : > { %v1868_v27 = vld [vmem:[#allocation2 + $0x110] sm:$0xff]  ;;  %v856_v6 = vsub.f32 1.5, %v855_v36  ;;  %1254 = vst.msk [vmem:[#allocation2 + $0x121] sm:$0xff] %vm1175_vm10, %v1146_v59  ;;  %v2094_v13 = vmul.f32 %v5510_v33, %v2061_v7  ;;  %v2095_v40 = vmul.f32 %v5510_v33, %v6095_v45  ;;  %v1804_v61 = vmul.f32 %v2061_v7, %v5485_v17 }
 0x330   : > { %v1901_v41 = vmul.f32 %v5490_v4, %v1868_v27  ;;  %v1965_v47 = vld [vmem:[#allocation2 + $0x111] sm:$0xff]  ;;  %v957_v22 = vadd.f32 %v4764_v8, %v924_v31  ;;  %v1611_v30 = vmul.f32 %v1868_v27, %v5474_v42 }
 0x331   : > { %v857_v28 = vmul.f32 %v4455_v15, %v856_v6  ;;  %v6093_v57 = vadd.f32 %v2094_v13, %v2029_v53  ;;  %v1998_v14 = vmul.f32 %v5502_v35, %v1965_v47  ;;  %v1321_v53 = vmul.f32 %v6058_v44, %v5447_v49 }
 0x332   : > { %4270 = vmatmul.msk.f32.gmra.mxu0 %vm182_vm0, %v957_v22  ;;  %v1933_v26 = vadd.f32 %v1901_v41, %v6026_v24  ;;  %v925_v24 = vmul.f32 %v4757_v50, %v892_v16  ;;  %v1643_v6 = vadd.f32 %v1611_v30, %v6035_v23  ;;  %v1739_v13 = vadd.f32 %v1707_v34, %v1642_v5  ;;  %v7900_v41 = vld [vmem:[#allocation8_spill] sm:$0xff] }
 0x333   : > { %2208 = vrot.lane.b32.xlu2 %v6093_v57, %s4567_s23  ;;  %v861_v36 = vsel %vm6104_vm7, %v4455_v15, %v857_v28  ;;  %v1708_v22 = vmul.f32 %v1965_v47, %v5481_v52  ;;  %v1353_v44 = vadd.f32 %v1321_v53, %v5459_v37 }
 0x334   : > { %v1148_v29 = vpop.f32.mrf.mxu0  ;;  %v2030_v3 = vadd.f32 %v1998_v14, %v1933_v26  ;;  %v893_v55 = vmul.f32 %v861_v36, %v7900_v41  ;;  %v958_v16 = vadd.f32 %v4764_v8, %v925_v24  ;;  %v1836_v28 = vadd.f32 %v1804_v61, %v1739_v13 }
 0x335   : > { %v1149_v59 = vadd.f32 %v1148_v29, %v4998_v51  ;;  %v1740_v26 = vadd.f32 %v1708_v22, %v1643_v6  ;;  %v1322_v14 = vmul.f32 %v1868_v27, %v5447_v49  ;;  %v1805_v29 = vmul.f32 %v6095_v45, %v5485_v17 }
 0x336   : > { %v6117_v31 = vadd.f32 %v2095_v40, %v2030_v3  ;;  %v1869_v43 = vld [vmem:[#allocation2 + $0x120] sm:$0xff]  ;;  %v926_v62 = vmul.f32 %v4757_v50, %v893_v55  ;;  %v1418_v3 = vmul.f32 %v6074_v11, %v5462_v39  ;;  %v1515_v40 = vmul.f32 %v2061_v7, %v5468_v2 }
 0x337   : > { %1255 = vst.msk [vmem:[#allocation2 + $0x129] sm:$0xff] %vm1175_vm10, %v1149_v59  ;;  %v1902_v15 = vmul.f32 %v5490_v4, %v1869_v43  ;;  %v1966_v23 = vld [vmem:[#allocation2 + $0x121] sm:$0xff]  ;;  %v1354_v59 = vadd.f32 %v1322_v14, %v5459_v37  ;;  %v1837_v27 = vadd.f32 %v1805_v29, %v1740_v26  ;;  %v1612_v50 = vmul.f32 %v1869_v43, %v5474_v42 }
 0x338   : > { %2210 = vrot.lane.b32.xlu1 %v6117_v31, %s4567_s23  ;;  %v1999_v36 = vmul.f32 %v5502_v35, %v1966_v23  ;;  %v1450_v53 = vadd.f32 %v1418_v3, %v1353_v44  ;;  %v959_v41 = vadd.f32 %v4764_v8, %v926_v62  ;;  %v1516_v8 = vmul.f32 %v6095_v45, %v5468_v2 }
 0x339   : > { %v1934_v30 = vadd.f32 %v1902_v15, %v1836_v28  ;;  %v1419_v15 = vmul.f32 %v1965_v47, %v5462_v39  ;;  %v1709_v29 = vmul.f32 %v1966_v23, %v5481_v52 }
 0x33a   : > { %4271 = vmatmul.msk.f32.gmra.mxu0 %vm182_vm0, %v958_v16  ;;  %v1547_v16 = vadd.f32 %v1515_v40, %v1450_v53 }
 0x33b   : > { %v2031_v13 = vadd.f32 %v1999_v36, %v1934_v30  ;;  %v1451_v44 = vadd.f32 %v1419_v15, %v1354_v59 }
 0x33c   : > { %v1151_v5 = vpop.f32.mrf.mxu0  ;;  %v1644_v14 = vadd.f32 %v1612_v50, %v1547_v16 }
 0x33d   : > { %v1152_v24 = vadd.f32 %v1151_v5, %v4998_v51  ;;  %v1548_v36 = vadd.f32 %v1516_v8, %v1451_v44  ;;  %v1420_v44 = vmul.f32 %v1966_v23, %v5462_v39 }
 0x33e   : > { %v2063_v34 = vld [vmem:[#allocation2 + $0x122] sm:$0xff]  ;;  %v2064_v55 = vld [vmem:[#allocation2 + $0x12a] sm:$0xff]  ;;  %v1741_v45 = vadd.f32 %v1709_v29, %v1644_v14 }
 0x33f   : > { %v1870_v61 = vld [vmem:[#allocation2 + $0x128] sm:$0xff]  ;;  %1256 = vst.msk [vmem:[#allocation2 + $0x139] sm:$0xff] %vm1175_vm10, %v1152_v24  ;;  %v2096_v11 = vmul.f32 %v5510_v33, %v2063_v34  ;;  %v2097_v5 = vmul.f32 %v5510_v33, %v2064_v55  ;;  %v1806_v24 = vmul.f32 %v2063_v34, %v5485_v17 }
 0x340   : > { %v1967_v6 = vld [vmem:[#allocation2 + $0x129] sm:$0xff]  ;;  %v1903_v7 = vmul.f32 %v5490_v4, %v1870_v61  ;;  %v1613_v47 = vmul.f32 %v1870_v61, %v5474_v42 }
 0x341   : > { %v6147_v22 = vadd.f32 %v2096_v11, %v2031_v13  ;;  %v2000_v26 = vmul.f32 %v5502_v35, %v1967_v6  ;;  %v1324_v13 = vmul.f32 %v1870_v61, %v5447_v49  ;;  %v1838_v11 = vadd.f32 %v1806_v24, %v1741_v45 }
 0x342   : > { %v1935_v28 = vadd.f32 %v1903_v7, %v1837_v27  ;;  %4272 = vmatmul.msk.f32.gmra.mxu0 %vm182_vm0, %v959_v41  ;;  %v1323_v27 = vmul.f32 %v1869_v43, %v5447_v49  ;;  %v1645_v50 = vadd.f32 %v1613_v47, %v1548_v36  ;;  %v1710_v15 = vmul.f32 %v1967_v6, %v5481_v52 }
 0x343   : > { %2212 = vrot.lane.b32.xlu0 %v6147_v22, %s4567_s23  ;;  %v1356_v14 = vadd.f32 %v1324_v13, %v5459_v37  ;;  %v1807_v47 = vmul.f32 %v2064_v55, %v5485_v17 }
 0x344   : > { %v2032_v30 = vadd.f32 %v2000_v26, %v1935_v28  ;;  %v1154_v62 = vpop.f32.mrf.mxu0  ;;  %v1355_v41 = vadd.f32 %v1323_v27, %v5459_v37  ;;  %v1742_v28 = vadd.f32 %v1710_v15, %v1645_v50  ;;  %v1421_v27 = vmul.f32 %v1967_v6, %v5462_v39 }
 0x345   : > { %v1155_v3 = vadd.f32 %v1154_v62, %v4998_v51  ;;  %v1517_v62 = vmul.f32 %v2063_v34, %v5468_v2 }
 0x346   : > { %v6159_v40 = vadd.f32 %v2097_v5, %v2032_v30  ;;  %v1871_v59 = vld [vmem:[#allocation2 + $0x138] sm:$0xff]  ;;  %v1452_v36 = vadd.f32 %v1420_v44, %v1355_v41  ;;  %v1839_v13 = vadd.f32 %v1807_v47, %v1742_v28 }
 0x347   : > { %1257 = vst.msk [vmem:[#allocation2 + $0x141] sm:$0xff] %vm1175_vm10, %v1155_v3  ;;  %v1904_v53 = vmul.f32 %v5490_v4, %v1871_v59  ;;  %v1968_v7 = vld [vmem:[#allocation2 + $0x139] sm:$0xff]  ;;  %v1325_v16 = vmul.f32 %v1871_v59, %v5447_v49  ;;  %v1614_v23 = vmul.f32 %v1871_v59, %v5474_v42  ;;  %v1518_v59 = vmul.f32 %v2064_v55, %v5468_v2 }
 0x348   : > { %2214 = vrot.lane.b32.xlu2 %v6159_v40, %s4567_s23  ;;  %v1422_v5 = vmul.f32 %v1968_v7, %v5462_v39  ;;  %v2001_v8 = vmul.f32 %v5502_v35, %v1968_v7  ;;  %v1549_v44 = vadd.f32 %v1517_v62, %v1452_v36 }
 0x349   : > { %v1936_v43 = vadd.f32 %v1904_v53, %v1838_v11  ;;  %v1357_v30 = vadd.f32 %v1325_v16, %v5459_v37  ;;  %v1453_v16 = vadd.f32 %v1421_v27, %v1356_v14 }
 0x34b   : > { %v1454_v45 = vadd.f32 %v1422_v5, %v1357_v30  ;;  %v2033_v53 = vadd.f32 %v2001_v8, %v1936_v43  ;;  %v1646_v5 = vadd.f32 %v1614_v23, %v1549_v44  ;;  %v1711_v8 = vmul.f32 %v1968_v7, %v5481_v52 }
 0x34c   : > { %v1157_v26 = vpop.f32.mrf.mxu0  ;;  %v1550_v47 = vadd.f32 %v1518_v59, %v1453_v16 }
 0x34d   : > { %v1158_v61 = vadd.f32 %v1157_v26, %v4998_v51  ;;  %v1743_v7 = vadd.f32 %v1711_v8, %v1646_v5 }
 0x34e   : > { %v2065_v29 = vld [vmem:[#allocation2 + $0x13a] sm:$0xff]  ;;  %v2066_v15 = vld [vmem:[#allocation2 + $0x142] sm:$0xff] }
 0x34f   : > { %v1872_v3 = vld [vmem:[#allocation2 + $0x140] sm:$0xff]  ;;  %1258 = vst.msk [vmem:[#allocation2 + $0x151] sm:$0xff] %vm1175_vm10, %v1158_v61  ;;  %v2098_v50 = vmul.f32 %v5510_v33, %v2065_v29  ;;  %v1519_v30 = vmul.f32 %v2065_v29, %v5468_v2  ;;  %v2099_v28 = vmul.f32 %v5510_v33, %v2066_v15  ;;  %v1808_v27 = vmul.f32 %v2065_v29, %v5485_v17 }
 0x350   : > { %v1969_v24 = vld [vmem:[#allocation2 + $0x141] sm:$0xff]  ;;  %v1905_v11 = vmul.f32 %v5490_v4, %v1872_v3  ;;  %v1615_v6 = vmul.f32 %v1872_v3, %v5474_v42  ;;  %v1326_v14 = vmul.f32 %v1872_v3, %v5447_v49  ;;  %v1809_v8 = vmul.f32 %v2066_v15, %v5485_v17 }
 0x351   : > { %v6184_v34 = vadd.f32 %v2098_v50, %v2033_v53  ;;  %v2002_v41 = vmul.f32 %v5502_v35, %v1969_v24  ;;  %v1551_v62 = vadd.f32 %v1519_v30, %v1454_v45  ;;  %v1423_v23 = vmul.f32 %v1969_v24, %v5462_v39 }
 0x352   : > { %v1937_v26 = vadd.f32 %v1905_v11, %v1839_v13  ;;  %v1358_v53 = vadd.f32 %v1326_v14, %v5459_v37  ;;  %v1647_v11 = vadd.f32 %v1615_v6, %v1550_v47  ;;  %v1712_v16 = vmul.f32 %v1969_v24, %v5481_v52 }
 0x353   : > { %2216 = vrot.lane.b32.xlu1 %v6184_v34, %s4567_s23  ;;  %v1840_v44 = vadd.f32 %v1808_v27, %v1743_v7 }
 0x354   : > { %v2034_v43 = vadd.f32 %v2002_v41, %v1937_v26  ;;  %v1160_v61 = vpop.f32.mrf.mxu0  ;;  %v1455_v29 = vadd.f32 %v1423_v23, %v1358_v53  ;;  %v1520_v26 = vmul.f32 %v2066_v15, %v5468_v2  ;;  %v1744_v30 = vadd.f32 %v1712_v16, %v1647_v11 }
 0x355   : > { %v1161_v55 = vadd.f32 %v1160_v61, %v4998_v51 }
 0x356   : > { %v6196_v36 = vadd.f32 %v2099_v28, %v2034_v43  ;;  %v1873_v50 = vld [vmem:[#allocation2 + $0x150] sm:$0xff]  ;;  %v1552_v43 = vadd.f32 %v1520_v26, %v1455_v29  ;;  %v1841_v53 = vadd.f32 %v1809_v8, %v1744_v30 }
 0x357   : > { %v1970_v13 = vld [vmem:[#allocation2 + $0x151] sm:$0xff]  ;;  %1259 = vst.msk [vmem:[#allocation2 + $0x159] sm:$0xff] %vm1175_vm10, %v1161_v55  ;;  %v1906_v3 = vmul.f32 %v5490_v4, %v1873_v50  ;;  %v1616_v45 = vmul.f32 %v1873_v50, %v5474_v42  ;;  %v1327_v41 = vmul.f32 %v1873_v50, %v5447_v49 }
 0x358   : > { %2218 = vrot.lane.b32.xlu0 %v6196_v36, %s4567_s23  ;;  %v1713_v6 = vmul.f32 %v1970_v13, %v5481_v52  ;;  %v1424_v5 = vmul.f32 %v1970_v13, %v5462_v39  ;;  %v2003_v47 = vmul.f32 %v5502_v35, %v1970_v13 }
 0x359   : > { %v1648_v59 = vadd.f32 %v1616_v45, %v1551_v62  ;;  %v1359_v28 = vadd.f32 %v1327_v41, %v5459_v37  ;;  %v1938_v14 = vadd.f32 %v1906_v3, %v1840_v44 }
 0x35b   : > { %v1745_v61 = vadd.f32 %v1713_v6, %v1648_v59  ;;  %v1456_v24 = vadd.f32 %v1424_v5, %v1359_v28  ;;  %v2035_v62 = vadd.f32 %v2003_v47, %v1938_v14 }
 0x35e   : > { %v2067_v55 = vld [vmem:[#allocation2 + $0x152] sm:$0xff]  ;;  %v2068_v3 = vld [vmem:[#allocation2 + $0x15a] sm:$0xff] }
 0x35f   : > { %v1874_v50 = vld [vmem:[#allocation2 + $0x158] sm:$0xff]  ;;  %v2100_v23 = vmul.f32 %v5510_v33, %v2067_v55  ;;  %v1810_v7 = vmul.f32 %v2067_v55, %v5485_v17  ;;  %v1521_v26 = vmul.f32 %v2067_v55, %v5468_v2  ;;  %v2101_v30 = vmul.f32 %v5510_v33, %v2068_v3 }
 0x360   : > { %v1971_v27 = vld [vmem:[#allocation2 + $0x159] sm:$0xff]  ;;  %v1907_v11 = vmul.f32 %v5490_v4, %v1874_v50  ;;  %v1617_v16 = vmul.f32 %v1874_v50, %v5474_v42  ;;  %v1328_v59 = vmul.f32 %v1874_v50, %v5447_v49  ;;  %v1811_v14 = vmul.f32 %v2068_v3, %v5485_v17 }
 0x361   : > { %v2004_v45 = vmul.f32 %v5502_v35, %v1971_v27  ;;  %v6219_v15 = vadd.f32 %v2100_v23, %v2035_v62  ;;  %v1842_v13 = vadd.f32 %v1810_v7, %v1745_v61  ;;  %v1714_v44 = vmul.f32 %v1971_v27, %v5481_v52 }
 0x362   : > { %v1939_v29 = vadd.f32 %v1907_v11, %v1841_v53  ;;  %v1649_v41 = vadd.f32 %v1617_v16, %v1552_v43  ;;  %v1553_v28 = vadd.f32 %v1521_v26, %v1456_v24  ;;  %v1360_v8 = vadd.f32 %v1328_v59, %v5459_v37 }
 0x363   : > { %2220 = vrot.lane.b32.xlu2 %v6219_v15, %s4567_s23  ;;  %v1425_v61 = vmul.f32 %v1971_v27, %v5462_v39  ;;  %v1522_v53 = vmul.f32 %v2068_v3, %v5468_v2 }
 0x364   : > { %v2036_v6 = vadd.f32 %v2004_v45, %v1939_v29  ;;  %v1746_v5 = vadd.f32 %v1714_v44, %v1649_v41 }
 0x365   : > { %v1457_v55 = vadd.f32 %v1425_v61, %v1360_v8 }
 0x366   : > { %v6230_v47 = vadd.f32 %v2101_v30, %v2036_v6  ;;  %v1843_v43 = vadd.f32 %v1811_v14, %v1746_v5 }
 0x367   : > { %v1554_v50 = vadd.f32 %v1522_v53, %v1457_v55 }
 0x368   : > { %2222 = vrot.lane.b32.xlu1 %v6230_v47, %s4567_s23 }
 0x3a7   : > { %v1163_v62 = vpop.f32.mrf.mxu0 }
 0x3a8   : > { %v1164_v24 = vadd.f32 %v1163_v62, %v4998_v51 }
 0x3aa   : > { %1260 = vst.msk [vmem:[#allocation2 + $0x169] sm:$0xff] %vm1175_vm10, %v1164_v24 }
 0x3af   : > { %v1166_v23 = vpop.f32.mrf.mxu0 }
 0x3b0   : > { %v1167_v11 = vadd.f32 %v1166_v23, %v4998_v51 }
 0x3b1   : > { %v1875_v7 = vld [vmem:[#allocation2 + $0x168] sm:$0xff] }
 0x3b2   : > { %1261 = vst.msk [vmem:[#allocation2 + $0x171] sm:$0xff] %vm1175_vm10, %v1167_v11  ;;  %v1908_v27 = vmul.f32 %v5490_v4, %v1875_v7  ;;  %v1972_v45 = vld [vmem:[#allocation2 + $0x169] sm:$0xff]  ;;  %v1618_v14 = vmul.f32 %v1875_v7, %v5474_v42 }
 0x3b3   : > { %v2005_v26 = vmul.f32 %v5502_v35, %v1972_v45 }
 0x3b4   : > { %v1940_v16 = vadd.f32 %v1908_v27, %v1842_v13  ;;  %v1329_v13 = vmul.f32 %v1875_v7, %v5447_v49  ;;  %v1650_v23 = vadd.f32 %v1618_v14, %v1553_v28 }
 0x3b6   : > { %v2037_v6 = vadd.f32 %v2005_v26, %v1940_v16  ;;  %v1361_v16 = vadd.f32 %v1329_v13, %v5459_v37 }
 0x3b7   : > { %v1169_v3 = vpop.f32.mrf.mxu0 }
 0x3b8   : > { %v1170_v29 = vadd.f32 %v1169_v3, %v4998_v51 }
 0x3b9   : > { %v2069_v41 = vld [vmem:[#allocation2 + $0x16a] sm:$0xff]  ;;  %v2070_v8 = vld [vmem:[#allocation2 + $0x172] sm:$0xff] }
 0x3ba   : > { %v1876_v44 = vld [vmem:[#allocation2 + $0x170] sm:$0xff]  ;;  %1262 = vst.msk [vmem:[#allocation2 + $0x181] sm:$0xff] %vm1175_vm10, %v1170_v29  ;;  %v2102_v30 = vmul.f32 %v5510_v33, %v2069_v41  ;;  %v2103_v24 = vmul.f32 %v5510_v33, %v2070_v8  ;;  %v1812_v26 = vmul.f32 %v2069_v41, %v5485_v17  ;;  %v1523_v28 = vmul.f32 %v2069_v41, %v5468_v2 }
 0x3bb   : > { %v1973_v59 = vld [vmem:[#allocation2 + $0x171] sm:$0xff]  ;;  %v1909_v5 = vmul.f32 %v5490_v4, %v1876_v44  ;;  %v1619_v11 = vmul.f32 %v1876_v44, %v5474_v42  ;;  %v1330_v3 = vmul.f32 %v1876_v44, %v5447_v49 }
 0x3bc   : > { %v6247_v61 = vadd.f32 %v2102_v30, %v2037_v6  ;;  %v2006_v53 = vmul.f32 %v5502_v35, %v1973_v59  ;;  %v1426_v30 = vmul.f32 %v1972_v45, %v5462_v39  ;;  %v1427_v41 = vmul.f32 %v1973_v59, %v5462_v39 }
 0x3bd   : > { %v1941_v55 = vadd.f32 %v1909_v5, %v1843_v43  ;;  %v1715_v43 = vmul.f32 %v1972_v45, %v5481_v52  ;;  %v1362_v13 = vadd.f32 %v1330_v3, %v5459_v37 }
 0x3be   : > { %2224 = vrot.lane.b32.xlu0 %v6247_v61, %s4567_s23  ;;  %v1458_v44 = vadd.f32 %v1426_v30, %v1361_v16 }
 0x3bf   : > { %v2038_v62 = vadd.f32 %v2006_v53, %v1941_v55  ;;  %v1172_v27 = vpop.f32.mrf.mxu0  ;;  %v1747_v5 = vadd.f32 %v1715_v43, %v1650_v23  ;;  %v1716_v53 = vmul.f32 %v1973_v59, %v5481_v52  ;;  %v1459_v23 = vadd.f32 %v1427_v41, %v1362_v13 }
 0x3c0   : > { %v1173_v7 = vadd.f32 %v1172_v27, %v4998_v51  ;;  %v1651_v51 = vadd.f32 %v1619_v11, %v1554_v50  ;;  %v1813_v50 = vmul.f32 %v2070_v8, %v5485_v17 }
 0x3c1   : > { %v6257_v29 = vadd.f32 %v2103_v24, %v2038_v62  ;;  %v1877_v6 = vld [vmem:[#allocation2 + $0x180] sm:$0xff]  ;;  %v1844_v55 = vadd.f32 %v1812_v26, %v1747_v5  ;;  %v1555_v62 = vadd.f32 %v1523_v28, %v1458_v44  ;;  %v1524_v26 = vmul.f32 %v2070_v8, %v5468_v2 }
 0x3c2   : > { %1263 = vst.msk [vmem:[#allocation2 + $0x189] sm:$0xff] %vm1175_vm10, %v1173_v7  ;;  %v1910_v49 = vmul.f32 %v5490_v4, %v1877_v6  ;;  %v1620_v14 = vmul.f32 %v1877_v6, %v5474_v42  ;;  %v1974_v45 = vld [vmem:[#allocation2 + $0x181] sm:$0xff]  ;;  %v1748_v27 = vadd.f32 %v1716_v53, %v1651_v51  ;;  %v1879_v7 = vld [vmem:[#allocation2 + $0x198] sm:$0xff] }
 0x3c3   : > { %2226 = vrot.lane.b32.xlu2 %v6257_v29, %s4567_s23  ;;  %v2007_v43 = vmul.f32 %v5502_v35, %v1974_v45  ;;  %v1717_v37 = vmul.f32 %v1974_v45, %v5481_v52  ;;  %v1912_v3 = vmul.f32 %v5490_v4, %v1879_v7  ;;  %v1976_v5 = vld [vmem:[#allocation2 + $0x199] sm:$0xff]  ;;  %v1556_v13 = vadd.f32 %v1524_v26, %v1459_v23  ;;  %v1977_v23 = vld [vmem:[#allocation2 + $0x1a1] sm:$0xff] }
 0x3c4   : > { %v1942_v24 = vadd.f32 %v1910_v49, %v1844_v55  ;;  %v1652_v20 = vadd.f32 %v1620_v14, %v1555_v62  ;;  %v1845_v59 = vadd.f32 %v1813_v50, %v1748_v27  ;;  %v2073_v14 = vld [vmem:[#allocation2 + $0x19a] sm:$0xff]  ;;  %v2009_v41 = vmul.f32 %v5502_v35, %v1976_v5  ;;  %v2074_v26 = vld [vmem:[#allocation2 + $0x1a2] sm:$0xff]  ;;  %v2173_v5 = vpop.permute.xlu1 %2172 }
 0x3c5   : > { %v1880_v8 = vld [vmem:[#allocation2 + $0x1a0] sm:$0xff] }
 0x3c6   : > { %v2039_v30 = vadd.f32 %v2007_v43, %v1942_v24  ;;  %v1749_v51 = vadd.f32 %v1717_v37, %v1652_v20 }
 0x3c9   : > { %v2071_v11 = vld [vmem:[#allocation2 + $0x182] sm:$0xff]  ;;  %v2072_v49 = vld [vmem:[#allocation2 + $0x18a] sm:$0xff] }
 0x3ca   : > { %v1878_v16 = vld [vmem:[#allocation2 + $0x188] sm:$0xff]  ;;  %v2104_v39 = vmul.f32 %v5510_v33, %v2071_v11  ;;  %v1814_v44 = vmul.f32 %v2071_v11, %v5485_v17  ;;  %v2105_v7 = vmul.f32 %v5510_v33, %v2072_v49  ;;  %v1815_v11 = vmul.f32 %v2072_v49, %v5485_v17  ;;  %v2177_v49 = vpop.permute.xlu0 %2176 }
 0x3cb   : > { %v1975_v6 = vld [vmem:[#allocation2 + $0x189] sm:$0xff]  ;;  %v1911_v28 = vmul.f32 %v5490_v4, %v1878_v16  ;;  %v1621_v55 = vmul.f32 %v1878_v16, %v5474_v42  ;;  %v2106_v42 = vmul.f32 %v5510_v33, %v2073_v14  ;;  %v1913_v16 = vmul.f32 %v5490_v4, %v1880_v8 }
 0x3cc   : > { %v6280_v53 = vadd.f32 %v2104_v39, %v2039_v30  ;;  %v2008_v2 = vmul.f32 %v5502_v35, %v1975_v6  ;;  %v1846_v62 = vadd.f32 %v1814_v44, %v1749_v51  ;;  %v1718_v27 = vmul.f32 %v1975_v6, %v5481_v52 }
 0x3cd   : > { %v1943_v45 = vadd.f32 %v1911_v28, %v1845_v59  ;;  %v1653_v24 = vadd.f32 %v1621_v55, %v1556_v13  ;;  %v2010_v6 = vmul.f32 %v5502_v35, %v1977_v23  ;;  %v2175_v28 = vpop.permute.xlu2 %2174  ;;  %v6306_v35 = vmul.f32 %v2173_v5, %v5531_v21  ;;  %v2181_v21 = vpop.permute.xlu1 %2180 }
 0x3ce   : > { %2228 = vrot.lane.b32.xlu1 %v6280_v53, %s4567_s23  ;;  %v1944_v43 = vadd.f32 %v1912_v3, %v1846_v62  ;;  %v2107_v3 = vmul.f32 %v5510_v33, %v2074_v26  ;;  %v6309_v51 = vmul.f32 %v2175_v28, %v5534_v9  ;;  %v6314_v44 = vmul.f32 %v2177_v49, %v5570_v10 }
 0x3cf   : > { %v2040_v20 = vadd.f32 %v2008_v2, %v1943_v45  ;;  %v1750_v50 = vadd.f32 %v1718_v27, %v1653_v24  ;;  %v2300_v33 = vsel %vm182_vm0, %v6306_v35, 0.0  ;;  %v6324_v8 = vmul.f32 %v2181_v21, %v5593_v60 }
 0x3d0   : > { %v2041_v30 = vadd.f32 %v2009_v41, %v1944_v43  ;;  %v2301_v14 = vsel %vm182_vm0, %v6309_v51, 0.0  ;;  %v2303_v45 = vsel %vm182_vm0, %v6314_v44, 0.0 }
 0x3d1   : > { %v6291_v37 = vadd.f32 %v2105_v7, %v2040_v20  ;;  %v1847_v52 = vadd.f32 %v1815_v11, %v1750_v50  ;;  %v2302_v55 = vadd.f32 %v2301_v14, %v2300_v33  ;;  %v2307_v24 = vsel %vm182_vm0, %v6324_v8, 0.0 }
 0x3d2   : > { %v6296_v39 = vadd.f32 %v2106_v42, %v2041_v30  ;;  %v2183_v62 = vpop.permute.xlu0 %2182 }
 0x3d3   : > { %2230 = vrot.lane.b32.xlu0 %v6291_v37, %s4567_s23  ;;  %v1945_v59 = vadd.f32 %v1913_v16, %v1847_v52  ;;  %v2304_v9 = vadd.f32 %v2303_v45, %v2302_v55  ;;  %v6331_v27 = vmul.f32 %v2183_v62, %v5597_v58 }
 0x3d4   : > { %2232 = vrot.lane.b32.xlu2 %v6296_v39, %s4567_s23 }
 0x3d5   : > { %v2042_v17 = vadd.f32 %v2010_v6, %v1945_v59  ;;  %v2179_v13 = vpop.permute.xlu2 %2178  ;;  %v2187_v42 = vpop.permute.xlu1 %2186 }
 0x3d6   : > { %v6321_v2 = vmul.f32 %v2179_v13, %v5568_v63  ;;  %v2309_v63 = vsel %vm182_vm0, %v6331_v27, 0.0  ;;  %v6339_v43 = vmul.f32 %v2187_v42, %v5650_v12 }
 0x3d7   : > { %v6301_v4 = vadd.f32 %v2107_v3, %v2042_v17 }
 0x3d8   : > { %v2305_v10 = vsel %vm182_vm0, %v6321_v2, 0.0  ;;  %v2313_v58 = vsel %vm182_vm0, %v6339_v43, 0.0 }
 0x3d9   : > { %2234 = vrot.lane.b32.xlu1 %v6301_v4, %s4567_s23  ;;  %v2306_v41 = vadd.f32 %v2305_v10, %v2304_v9 }
 0x3da   : > { %v2189_v50 = vpop.permute.xlu0 %2188 }
 0x3db   : > { %v2308_v7 = vadd.f32 %v2307_v24, %v2306_v41  ;;  %v6346_v26 = vmul.f32 %v2189_v50, %v5751_v32 }
 0x3dd   : > { %v2185_v20 = vpop.permute.xlu2 %2184  ;;  %v2310_v23 = vadd.f32 %v2309_v63, %v2308_v7  ;;  %v2193_v6 = vpop.permute.xlu1 %2192 }
 0x3de   : > { %v6336_v60 = vmul.f32 %v2185_v20, %v5600_v48  ;;  %v2315_v48 = vsel %vm182_vm0, %v6346_v26, 0.0  ;;  %v6354_v3 = vmul.f32 %v2193_v6, %v5861_v56 }
 0x3e0   : > { %v2311_v11 = vsel %vm182_vm0, %v6336_v60, 0.0  ;;  %v2319_v32 = vsel %vm182_vm0, %v6354_v3, 0.0 }
 0x3e1   : > { %v2312_v16 = vadd.f32 %v2311_v11, %v2310_v23 }
 0x3e2   : > { %v2195_v17 = vpop.permute.xlu0 %2194 }
 0x3e3   : > { %v2314_v52 = vadd.f32 %v2313_v58, %v2312_v16  ;;  %v6361_v49 = vmul.f32 %v2195_v17, %v5978_v38 }
 0x3e5   : > { %v2191_v30 = vpop.permute.xlu2 %2190  ;;  %v2316_v59 = vadd.f32 %v2315_v48, %v2314_v52  ;;  %v2199_v13 = vpop.permute.xlu1 %2198 }
 0x3e6   : > { %v6351_v12 = vmul.f32 %v2191_v30, %v5786_v18  ;;  %v2321_v18 = vsel %vm182_vm0, %v6361_v49, 0.0  ;;  %v6369_v45 = vmul.f32 %v2199_v13, %v5983_v0 }
 0x3e8   : > { %v2317_v28 = vsel %vm182_vm0, %v6351_v12, 0.0  ;;  %v2325_v38 = vsel %vm182_vm0, %v6369_v45, 0.0 }
 0x3e9   : > { %v2318_v5 = vadd.f32 %v2317_v28, %v2316_v59 }
 0x3ea   : > { %v2201_v21 = vpop.permute.xlu0 %2200 }
 0x3eb   : > { %v2320_v14 = vadd.f32 %v2319_v32, %v2318_v5  ;;  %v6376_v10 = vmul.f32 %v2201_v21, %v6024_v19 }
 0x3ed   : > { %v2197_v33 = vpop.permute.xlu2 %2196  ;;  %v2322_v55 = vadd.f32 %v2321_v18, %v2320_v14  ;;  %v2205_v20 = vpop.permute.xlu1 %2204 }
 0x3ee   : > { %v6366_v56 = vmul.f32 %v2197_v33, %v5926_v54  ;;  %v2327_v54 = vsel %vm182_vm0, %v6376_v10, 0.0  ;;  %v6384_v42 = vmul.f32 %v2205_v20, %v6037_v1 }
 0x3f0   : > { %v2323_v9 = vsel %vm182_vm0, %v6366_v56, 0.0  ;;  %v2331_v11 = vsel %vm182_vm0, %v6384_v42, 0.0 }
 0x3f1   : > { %v2324_v62 = vadd.f32 %v2323_v9, %v2322_v55 }
 0x3f2   : > { %v2207_v63 = vpop.permute.xlu0 %2206 }
 0x3f3   : > { %v2326_v24 = vadd.f32 %v2325_v38, %v2324_v62  ;;  %v6391_v16 = vmul.f32 %v2207_v63, %v6042_v25 }
 0x3f5   : > { %v2203_v41 = vpop.permute.xlu2 %2202  ;;  %v2328_v7 = vadd.f32 %v2327_v54, %v2326_v24  ;;  %v2211_v58 = vpop.permute.xlu1 %2210  ;;  %v2333_v1 = vsel %vm182_vm0, %v6391_v16, 0.0 }
 0x3f6   : > { %v6381_v0 = vmul.f32 %v2203_v41, %v6006_v46  ;;  %v6399_v48 = vmul.f32 %v2211_v58, %v6117_v31 }
 0x3f8   : > { %v2329_v23 = vsel %vm182_vm0, %v6381_v0, 0.0  ;;  %v2337_v17 = vsel %vm182_vm0, %v6399_v48, 0.0 }
 0x3f9   : > { %v2330_v50 = vadd.f32 %v2329_v23, %v2328_v7 }
 0x3fa   : > { %v2213_v52 = vpop.permute.xlu0 %2212 }
 0x3fb   : > { %v2332_v30 = vadd.f32 %v2331_v11, %v2330_v50  ;;  %v6404_v59 = vmul.f32 %v2213_v52, %v6147_v22 }
 0x3fd   : > { %v2209_v19 = vpop.permute.xlu2 %2208  ;;  %v2334_v25 = vadd.f32 %v2333_v1, %v2332_v30  ;;  %v2217_v5 = vpop.permute.xlu1 %2216  ;;  %v2339_v32 = vsel %vm182_vm0, %v6404_v59, 0.0  ;;  %v4568_v1 = vmov 256.0  }
 0x3fe   : > { %v6394_v46 = vmul.f32 %v2209_v19, %v6093_v57  ;;  %v6414_v18 = vmul.f32 %v2217_v5, %v6184_v34  ;;  %v4523_v34 = vld [vmem:[%s7834_s1 + $0x10] sm:$0xff]  ;;  %4456 = vrcp.f32 %v4568_v1 }
 0x3ff   : > { %v2379_v1 = vrot.slane %v4523_v34, 5 }
 0x400   : > { %v2335_v6 = vsel %vm182_vm0, %v6394_v46, 0.0  ;;  %v2343_v21 = vsel %vm182_vm0, %v6414_v18, 0.0 }
 0x401   : > { %v2336_v57 = vadd.f32 %v2335_v6, %v2334_v25 }
 0x402   : > { %v2219_v14 = vpop.permute.xlu0 %2218 }
 0x403   : > { %v2338_v33 = vadd.f32 %v2337_v17, %v2336_v57  ;;  %v6417_v13 = vmul.f32 %v2219_v14, %v6196_v36  ;;  %v2378_v36 = vrot.slane %v4523_v34, 1 }
 0x405   : > { %v2215_v28 = vpop.permute.xlu2 %2214  ;;  %v2340_v22 = vadd.f32 %v2339_v32, %v2338_v33  ;;  %v2223_v38 = vpop.permute.xlu1 %2222  ;;  %4273 = vmatpush.msk.msra.mxu1 %vm1059_vm2, %v2378_v36 }
 0x406   : > { %v6411_v31 = vmul.f32 %v2215_v28, %v6159_v40  ;;  %v2345_v40 = vsel %vm182_vm0, %v6417_v13, 0.0  ;;  %v6432_v20 = vmul.f32 %v2223_v38, %v6230_v47 }
 0x408   : > { %v2341_v55 = vsel %vm182_vm0, %v6411_v31, 0.0  ;;  %v2349_v50 = vsel %vm182_vm0, %v6432_v20, 0.0 }
 0x409   : > { %v2342_v62 = vadd.f32 %v2341_v55, %v2340_v22 }
 0x40b   : > { %v2344_v41 = vadd.f32 %v2343_v21, %v2342_v62 }
 0x40d   : > { %v2221_v9 = vpop.permute.xlu2 %2220  ;;  %v2346_v7 = vadd.f32 %v2345_v40, %v2344_v41 }
 0x40e   : > { %v6429_v54 = vmul.f32 %v2221_v9, %v6219_v15 }
 0x410   : > { %v2347_v23 = vsel %vm182_vm0, %v6429_v54, 0.0 }
 0x411   : > { %v2348_v19 = vadd.f32 %v2347_v23, %v2346_v7 }
 0x413   : > { %v2350_v58 = vadd.f32 %v2349_v50, %v2348_v19 }
 0x41d   : > { %v2227_v11 = vpop.permute.xlu2 %2226 }
 0x41e   : > { %v6445_v47 = vmul.f32 %v2227_v11, %v6257_v29  ;;  %v4457_v29 = vpop.eup %4456 }
 0x41f   : > { %v2370_v22 = vmul.f32 256.0, %v4457_v29  ;;  %vm2374_vm10 = vweird.f32 %v4457_v29 }
 0x420   : > { %v2353_v6 = vsel %vm182_vm0, %v6445_v47, 0.0 }
 0x421   : > { %v2371_v38 = vsub.f32 1.0, %v2370_v22 }
 0x42e   : > { %v2233_v57 = vpop.permute.xlu2 %2232 }
 0x42f   : > { %v6460_v33 = vmul.f32 %v2233_v57, %v6296_v39 }
 0x430   : > { %v2225_v24 = vpop.permute.xlu0 %2224 }
 0x431   : > { %v6436_v63 = vmul.f32 %v2225_v24, %v6247_v61  ;;  %v2359_v21 = vsel %vm182_vm0, %v6460_v33, 0.0  ;;  %v2372_v24 = vmul.f32 %v4457_v29, %v2371_v38  ;;  %v4525_v38 = vld [vmem:[%s4600_s14 + $0x8] sm:$0xff] }
 0x433   : > { %v2351_v15 = vsel %vm182_vm0, %v6436_v63, 0.0  ;;  %v2373_v7 = vadd.f32 %v4457_v29, %v2372_v24 }
 0x434   : > { %v2352_v52 = vadd.f32 %v2351_v15, %v2350_v58  ;;  %v2442_v58 = vrot.slane %v4523_v34, 6 }
 0x435   : > { %v2375_v19 = vsel %vm2374_vm10, %v4457_v29, %v2373_v7  ;;  %v4526_v7 = vld [vmem:[%s4600_s14 + $0x10] sm:$0xff] }
 0x436   : > { %v2354_v28 = vadd.f32 %v2353_v6, %v2352_v52 }
 0x440   : > { %v2229_v30 = vpop.permute.xlu1 %2228 }
 0x441   : > { %v6448_v61 = vmul.f32 %v2229_v30, %v6280_v53 }
 0x443   : > { %v2355_v25 = vsel %vm182_vm0, %v6448_v61, 0.0 }
 0x444   : > { %v2356_v32 = vadd.f32 %v2355_v25, %v2354_v28 }
 0x445   : > { %v2231_v17 = vpop.permute.xlu0 %2230 }
 0x446   : > { %v6455_v5 = vmul.f32 %v2231_v17, %v6291_v37 }
 0x448   : > { %v2357_v53 = vsel %vm182_vm0, %v6455_v5, 0.0 }
 0x449   : > { %v2358_v14 = vadd.f32 %v2357_v53, %v2356_v32 }
 0x44b   : > { %v2235_v55 = vpop.permute.xlu1 %2234  ;;  %v2360_v62 = vadd.f32 %v2359_v21, %v2358_v14 }
 0x44c   : > { %v6465_v9 = vmul.f32 %v2235_v55, %v6301_v4  ;;  %v6473_v4 = vld [vmem:[%s7834_s1 + $0x18] sm:$0xff] }
 0x44d   : > { %v2443_v30 = vrot.slane %v6473_v4, 6  ;;  %v6533_v32 = vperm.slane %v6473_v4, 2 }
 0x44e   : > { %v2361_v37 = vsel %vm182_vm0, %v6465_v9, 0.0 }
 0x44f   : > { %v2362_v40 = vadd.f32 %v2361_v37, %v2360_v62  ;;  %v2444_v52 = vsel %vm2441_vm8, %v2442_v58, %v2443_v30  ;;  %v4527_v58 = vld [vmem:[%s4600_s14 + $0x18] sm:$0xff] }
 0x450   : > { %4275 = vmatpush.msk.msra.mxu2 %vm1059_vm2, %v2444_v52 }
 0x451   : > { %v2363_v41 = vrot.slane %v2362_v40, 4 }
 0x453   : > { %v2364_v36 = vadd.f32 %v2363_v41, %v2362_v40 }
 0x455   : > { %v2365_v39 = vrot.slane %v2364_v36, 2 }
 0x457   : > { %v2366_v23 = vadd.f32 %v2365_v39, %v2364_v36 }
 0x459   : > { %v2367_v50 = vrot.slane %v2366_v23, 1 }
 0x45b   : > { %v2368_v11 = vadd.f32 %v2367_v50, %v2366_v23 }
 0x45d   : > { %v2376_v15 = vmul.f32 %v2375_v19, %v2368_v11 }
 0x45f   : > { %4274 = vmatmul.msk.f32.vlgmr.msra.gmra.mxu1 %vm182_vm0, %v2376_v15 }
 0x4dc   : > { %v2403_v6 = vpop.f32.mrf.mxu1 }
 0x4dd   : > { %v2404_v25 = vadd.f32 %v2403_v6, %v2379_v1 }
 0x4df   : > { %v6480_v17 = vperm.slane %v2404_v25, 0 }
 0x4e1   : > { %v2407_v57 = vmul.f32 %v6480_v17, %v6306_v35  ;;  %v2408_v28 = vmul.f32 %v6480_v17, %v6309_v51  ;;  %v2409_v29 = vmul.f32 %v6480_v17, %v6314_v44  ;;  %v2410_v34 = vmul.f32 %v6480_v17, %v6321_v2 }
 0x4e2   : > { %v2411_v35 = vmul.f32 %v6480_v17, %v6324_v8  ;;  %v2412_v51 = vmul.f32 %v6480_v17, %v6331_v27  ;;  %v2413_v44 = vmul.f32 %v6480_v17, %v6336_v60  ;;  %v2414_v2 = vmul.f32 %v6480_v17, %v6339_v43 }
 0x4e3   : > { %4276 = vmatmul.msk.f32.vlgmr.msra.gmra.mxu2 %vm182_vm0, %v2407_v57  ;;  %v2415_v8 = vmul.f32 %v6480_v17, %v6346_v26  ;;  %v2416_v27 = vmul.f32 %v6480_v17, %v6351_v12  ;;  %v2417_v60 = vmul.f32 %v6480_v17, %v6354_v3  ;;  %v2418_v43 = vmul.f32 %v6480_v17, %v6361_v49 }
 0x4e4   : > { %v2419_v26 = vmul.f32 %v6480_v17, %v6366_v56  ;;  %v2420_v12 = vmul.f32 %v6480_v17, %v6369_v45  ;;  %v2421_v3 = vmul.f32 %v6480_v17, %v6376_v10  ;;  %v2422_v49 = vmul.f32 %v6480_v17, %v6381_v0 }
 0x4e5   : > { %v2423_v56 = vmul.f32 %v6480_v17, %v6384_v42  ;;  %v6537_v45 = vperm.slane %v6473_v4, 3  ;;  %v2424_v0 = vmul.f32 %v6480_v17, %v6391_v16  ;;  %v4524_v42 = vld [vmem:[%s4600_s14] sm:$0xff]  ;;  %v2425_v37 = vmul.f32 %v6480_v17, %v6394_v46 }
 0x4e6   : > { %v2426_v39 = vmul.f32 %v6480_v17, %v6399_v48  ;;  %v2427_v15 = vmul.f32 %v6480_v17, %v6404_v59  ;;  %v2428_v57 = vmul.f32 %v6480_v17, %v6411_v31 }
 0x4eb   : > { %4277 = vmatmul.msk.f32.gmra.mxu2 %vm182_vm0, %v2408_v28  ;;  %v4528_v28 = vld [vmem:[%s4600_s14 + $0x20] sm:$0xff] }
 0x4f3   : > { %4278 = vmatmul.msk.f32.gmra.mxu2 %vm182_vm0, %v2409_v29 }
 0x4fb   : > { %4279 = vmatmul.msk.f32.gmra.mxu2 %vm182_vm0, %v2410_v34 }
 0x503   : > { %4280 = vmatmul.msk.f32.gmra.mxu2 %vm182_vm0, %v2411_v35 }
 0x50b   : > { %4281 = vmatmul.msk.f32.gmra.mxu2 %vm182_vm0, %v2412_v51 }
 0x513   : > { %4282 = vmatmul.msk.f32.gmra.mxu2 %vm182_vm0, %v2413_v44  ;;  %v2429_v44 = vmul.f32 %v6480_v17, %v6414_v18  ;;  %v4530_v18 = vld [vmem:[%s4600_s14 + $0x30] sm:$0xff] }
 0x51b   : > { %4283 = vmatmul.msk.f32.gmra.mxu2 %vm182_vm0, %v2414_v2  ;;  %v4529_v2 = vld [vmem:[%s4600_s14 + $0x28] sm:$0xff] }
 0x523   : > { %4284 = vmatmul.msk.f32.gmra.mxu2 %vm182_vm0, %v2415_v8 }
 0x52b   : > { %4285 = vmatmul.msk.f32.gmra.mxu2 %vm182_vm0, %v2416_v27 }
 0x533   : > { %4286 = vmatmul.msk.f32.gmra.mxu2 %vm182_vm0, %v2417_v60 }
 0x53b   : > { %4287 = vmatmul.msk.f32.gmra.mxu2 %vm182_vm0, %v2418_v43 }
 0x543   : > { %4288 = vmatmul.msk.f32.gmra.mxu2 %vm182_vm0, %v2419_v26  ;;  %v2430_v26 = vmul.f32 %v6480_v17, %v6417_v13  ;;  %v2432_v13 = vmul.f32 %v6480_v17, %v6432_v20 }
 0x54b   : > { %4289 = vmatmul.msk.f32.gmra.mxu2 %vm182_vm0, %v2420_v12 }
 0x553   : > { %4290 = vmatmul.msk.f32.gmra.mxu2 %vm182_vm0, %v2421_v3 }
 0x55b   : > { %4291 = vmatmul.msk.f32.gmra.mxu2 %vm182_vm0, %v2422_v49 }
 0x563   : > { %4292 = vmatmul.msk.f32.gmra.mxu2 %vm182_vm0, %v2423_v56 }
 0x566   : > { %v2560_v10 = vpop.f32.mrf.mxu2 }
 0x567   : > { %v2561_v53 = vadd.f32 %v2560_v10, %v6533_v32  ;;  %v2431_v10 = vmul.f32 %v6480_v17, %v6429_v54 }
 0x569   : > { %v2657_v14 = vmul.f32 %v6537_v45, %v2561_v53 }
 0x56b   : > { %4293 = vmatmul.msk.f32.gmra.mxu2 %vm182_vm0, %v2424_v0  ;;  %v6545_v22 = vadd.f32 %v4524_v42, %v2657_v14  ;;  %v2433_v14 = vmul.f32 %v6480_v17, %v6436_v63 }
 0x56d   : > { %v2721_v55 = vsel %vm182_vm0, %v6545_v22, 0.0 }
 0x56e   : > { %v2563_v21 = vpop.f32.mrf.mxu2  ;;  %2722 = vadd.xlane.f32.xlu0 %v2721_v55  ;;  %v2434_v55 = vmul.f32 %v6480_v17, %v6445_v47 }
 0x56f   : > { %v2564_v62 = vadd.f32 %v2563_v21, %v6533_v32  ;;  %v2435_v21 = vmul.f32 %v6480_v17, %v6448_v61 }
 0x571   : > { %v2658_v16 = vmul.f32 %v6537_v45, %v2564_v62  ;;  %v2436_v62 = vmul.f32 %v6480_v17, %v6455_v5  ;;  %v7901_v5 = vld [vmem:[#allocation3_spill] sm:$0xff] }
 0x573   : > { %4294 = vmatmul.msk.f32.gmra.mxu2 %vm182_vm0, %v2425_v37  ;;  %v6555_v40 = vadd.f32 %v4525_v38, %v2658_v16  ;;  %v2437_v37 = vmul.f32 %v6480_v17, %v6460_v33  ;;  %v2438_v16 = vmul.f32 %v6480_v17, %v6465_v9 }
 0x575   : > { %v2724_v41 = vsel %vm182_vm0, %v6555_v40, 0.0 }
 0x576   : > { %v2566_v24 = vpop.f32.mrf.mxu2  ;;  %2725 = vadd.xlane.f32.xlu2 %v2724_v41 }
 0x577   : > { %v2567_v36 = vadd.f32 %v2566_v24, %v6533_v32 }
 0x579   : > { %v2659_v46 = vmul.f32 %v6537_v45, %v2567_v36 }
 0x57b   : > { %4295 = vmatmul.msk.f32.gmra.mxu2 %vm182_vm0, %v2426_v39  ;;  %v6565_v23 = vadd.f32 %v4526_v7, %v2659_v46 }
 0x57d   : > { %v2727_v50 = vsel %vm182_vm0, %v6565_v23, 0.0 }
 0x57e   : > { %v2569_v19 = vpop.f32.mrf.mxu2  ;;  %2728 = vadd.xlane.f32.xlu1 %v2727_v50 }
 0x57f   : > { %v2570_v11 = vadd.f32 %v2569_v19, %v6533_v32 }
 0x581   : > { %v2660_v48 = vmul.f32 %v6537_v45, %v2570_v11  ;;  %v4531_v11 = vld [vmem:[%s4600_s14 + $0x38] sm:$0xff] }
 0x583   : > { %4296 = vmatmul.msk.f32.gmra.mxu2 %vm182_vm0, %v2427_v15  ;;  %v6575_v52 = vadd.f32 %v4527_v58, %v2660_v48 }
 0x585   : > { %v2730_v1 = vsel %vm182_vm0, %v6575_v52, 0.0 }
 0x586   : > { %v2572_v6 = vpop.f32.mrf.mxu2  ;;  %2731 = vadd.xlane.f32.xlu0 %v2730_v1 }
 0x587   : > { %v2573_v25 = vadd.f32 %v2572_v6, %v6533_v32 }
 0x589   : > { %v2661_v59 = vmul.f32 %v6537_v45, %v2573_v25 }
 0x58b   : > { %4297 = vmatmul.msk.f32.gmra.mxu2 %vm182_vm0, %v2428_v57  ;;  %v6585_v29 = vadd.f32 %v4528_v28, %v2661_v59 }
 0x58d   : > { %v2733_v34 = vsel %vm182_vm0, %v6585_v29, 0.0 }
 0x58e   : > { %v2575_v35 = vpop.f32.mrf.mxu2  ;;  %2734 = vadd.xlane.f32.xlu2 %v2733_v34 }
 0x58f   : > { %v2576_v51 = vadd.f32 %v2575_v35, %v6533_v32  ;;  %v4532_v35 = vld [vmem:[%s4600_s14 + $0x40] sm:$0xff] }
 0x591   : > { %v2662_v31 = vmul.f32 %v6537_v45, %v2576_v51 }
 0x593   : > { %4298 = vmatmul.msk.f32.gmra.mxu2 %vm182_vm0, %v2429_v44  ;;  %v6595_v8 = vadd.f32 %v4529_v2, %v2662_v31 }
 0x595   : > { %v2736_v27 = vsel %vm182_vm0, %v6595_v8, 0.0 }
 0x596   : > { %v2578_v60 = vpop.f32.mrf.mxu2  ;;  %2737 = vadd.xlane.f32.xlu1 %v2736_v27  ;;  %v4533_v27 = vld [vmem:[%s4600_s14 + $0x50] sm:$0xff] }
 0x597   : > { %v2579_v43 = vadd.f32 %v2578_v60, %v6533_v32 }
 0x599   : > { %v2663_v12 = vmul.f32 %v6537_v45, %v2579_v43 }
 0x59b   : > { %4299 = vmatmul.msk.f32.gmra.mxu2 %vm182_vm0, %v2430_v26  ;;  %v6605_v3 = vadd.f32 %v4530_v18, %v2663_v12 }
 0x59d   : > { %v2739_v49 = vsel %vm182_vm0, %v6605_v3, 0.0 }
 0x59e   : > { %v2581_v56 = vpop.f32.mrf.mxu2  ;;  %2740 = vadd.xlane.f32.xlu2 %v2739_v49 }
 0x59f   : > { %v2582_v24 = vadd.f32 %v2581_v56, %v6533_v32 }
 0x5a1   : > { %v2664_v9 = vmul.f32 %v6537_v45, %v2582_v24 }
 0x5a3   : > { %4300 = vmatmul.msk.f32.gmra.mxu2 %vm182_vm0, %v2431_v10  ;;  %v6654_v15 = vadd.f32 %v4531_v11, %v2664_v9  ;;  %v4537_v11 = vld [vmem:[%s4600_s14 + $0x68] sm:$0xff] }
 0x5a5   : > { %v2742_v57 = vsel %vm182_vm0, %v6654_v15, 0.0 }
 0x5a6   : > { %v2584_v53 = vpop.f32.mrf.mxu2 }
 0x5a7   : > { %v2585_v50 = vadd.f32 %v2584_v53, %v6533_v32 }
 0x5a9   : > { %v2665_v6 = vmul.f32 %v6537_v45, %v2585_v50 }
 0x5ab   : > { %4301 = vmatmul.msk.f32.gmra.mxu2 %vm182_vm0, %v2432_v13  ;;  %v6668_v51 = vadd.f32 %v4532_v35, %v2665_v6 }
 0x5ad   : > { %v2745_v56 = vsel %vm182_vm0, %v6668_v51, 0.0 }
 0x5ae   : > { %v2587_v0 = vpop.f32.mrf.mxu2 }
 0x5af   : > { %v2588_v44 = vadd.f32 %v2587_v0, %v6533_v32  ;;  %v4534_v0 = vld [vmem:[%s4600_s14 + $0x48] sm:$0xff] }
 0x5b1   : > { %v2666_v12 = vmul.f32 %v6537_v45, %v2588_v44  ;;  %v4538_v44 = vld [vmem:[%s4600_s14 + $0x70] sm:$0xff] }
 0x5b3   : > { %4302 = vmatmul.msk.f32.gmra.mxu2 %vm182_vm0, %v2433_v14  ;;  %v6691_v14 = vadd.f32 %v4534_v0, %v2666_v12 }
 0x5b5   : > { %7903 = vst [vmem:[#allocation6_spill] sm:$0xff] %v6691_v14 }
 0x5b6   : > { %v2590_v42 = vpop.f32.mrf.mxu2 }
 0x5b7   : > { %v2591_v48 = vadd.f32 %v2590_v42, %v6533_v32  ;;  %v4535_v42 = vld [vmem:[%s4600_s14 + $0x58] sm:$0xff] }
 0x5b9   : > { %v2667_v59 = vmul.f32 %v6537_v45, %v2591_v48 }
 0x5bb   : > { %4303 = vmatmul.msk.f32.gmra.mxu2 %vm182_vm0, %v2434_v55  ;;  %v6676_v60 = vadd.f32 %v4533_v27, %v2667_v59 }
 0x5bd   : > { %7902 = vst [vmem:[#allocation4_spill] sm:$0xff] %v6676_v60  ;;  %v2751_v10 = vsel %vm182_vm0, %v6676_v60, 0.0 }
 0x5be   : > { %v2593_v54 = vpop.f32.mrf.mxu2 }
 0x5bf   : > { %v2594_v31 = vadd.f32 %v2593_v54, %v6533_v32 }
 0x5c1   : > { %v2668_v18 = vmul.f32 %v6537_v45, %v2594_v31 }
 0x5c3   : > { %4304 = vmatmul.msk.f32.gmra.mxu2 %vm182_vm0, %v2435_v21  ;;  %v6694_v55 = vadd.f32 %v4535_v42, %v2668_v18  ;;  %v4539_v18 = vld [vmem:[%s4600_s14 + $0x80] sm:$0xff] }
 0x5c5   : > { %7904 = vst [vmem:[#allocation7_spill] sm:$0xff] %v6694_v55  ;;  %v2754_v24 = vsel %vm182_vm0, %v6694_v55, 0.0 }
 0x5c6   : > { %v2596_v20 = vpop.f32.mrf.mxu2 }
 0x5c7   : > { %v2597_v54 = vadd.f32 %v2596_v20, %v6533_v32 }
 0x5cb   : > { %4305 = vmatmul.msk.f32.gmra.mxu2 %vm182_vm0, %v2436_v62 }
 0x5ce   : > { %v2599_v63 = vpop.f32.mrf.mxu2 }
 0x5cf   : > { %v2600_v62 = vadd.f32 %v2599_v63, %v6533_v32 }
 0x5d3   : > { %4306 = vmatmul.msk.f32.gmra.mxu2 %vm182_vm0, %v2437_v37 }
 0x5d6   : > { %v6630_v47 = vpop.f32.mrf.mxu2 }
 0x5db   : > { %4307 = vmatmul.msk.f32.gmra.mxu2 %vm182_vm0, %v2438_v16 }
 0x5de   : > { %v6635_v61 = vpop.f32.mrf.mxu2 }
 0x5df   : > { %v2606_v27 = vadd.f32 %v6635_v61, %v6533_v32 }
 0x5e1   : > { %v2723_v38 = vpop.xlane.xlu0 %2722 }
 0x5e2   : > { %v2817_v41 = vmul.f32 %v2723_v38, %v7901_v5  ;;  %v2669_v38 = vmul.f32 %v6537_v45, %v2597_v54 }
 0x5e4   : > { %v6640_v36 = vsub.f32 %v6545_v22, %v2817_v41  ;;  %v2748_v41 = vsel %vm182_vm0, %v6691_v14, 0.0 }
 0x5e6   : > { %v6642_v33 = vpop.f32.mrf.mxu2  ;;  %v2881_v39 = vmul.f32 %v6640_v36, %v6640_v36 }
 0x5e8   : > { %v2913_v17 = vsel %vm182_vm0, %v2881_v39, 0.0  ;;  %v2670_v39 = vmul.f32 %v6537_v45, %v2600_v62  ;;  %v4540_v62 = vld [vmem:[%s4600_s14 + $0x78] sm:$0xff] }
 0x5e9   : > { %v2726_v46 = vpop.xlane.xlu2 %2725  ;;  %2914 = vadd.xlane.f32.xlu0 %v2913_v17  ;;  %v4536_v17 = vld [vmem:[%s4600_s14 + $0x60] sm:$0xff] }
 0x5ea   : > { %v2818_v7 = vmul.f32 %v2726_v46, %v7901_v5  ;;  %v6712_v46 = vadd.f32 %v4536_v17, %v2669_v38  ;;  %v6720_v48 = vadd.f32 %v4537_v11, %v2670_v39  ;;  %v4541_v38 = vld [vmem:[%s4600_s14 + $0x88] sm:$0xff] }
 0x5ec   : > { %v6651_v19 = vsub.f32 %v6555_v40, %v2818_v7  ;;  %7905 = vst [vmem:[#allocation5_spill] sm:$0xff] %v6712_v46  ;;  %v2603_v7 = vadd.f32 %v6630_v47, %v6533_v32  ;;  %v2757_v47 = vsel %vm182_vm0, %v6712_v46, 0.0 }
 0x5ee   : > { %v6657_v58 = vpop.f32.mrf.mxu2  ;;  %v2882_v1 = vmul.f32 %v6651_v19, %v6651_v19 }
 0x5f0   : > { %v2916_v25 = vsel %vm182_vm0, %v2882_v1, 0.0  ;;  %v2609_v1 = vadd.f32 %v6642_v33, %v6533_v32  ;;  %v2760_v33 = vsel %vm182_vm0, %v6720_v48, 0.0 }
 0x5f1   : > { %v2729_v28 = vpop.xlane.xlu1 %2728  ;;  %2917 = vadd.xlane.f32.xlu1 %v2916_v25  ;;  %2743 = vadd.xlane.f32.xlu0 %v2742_v57  ;;  %v2671_v57 = vmul.f32 %v6537_v45, %v2603_v7 }
 0x5f2   : > { %v2819_v34 = vmul.f32 %v2729_v28, %v7901_v5  ;;  %v2673_v28 = vmul.f32 %v6537_v45, %v2609_v1 }
 0x5f3   : > { %v6737_v31 = vadd.f32 %v4538_v44, %v2671_v57  ;;  %v4543_v57 = vld [vmem:[%s4600_s14 + $0x98] sm:$0xff] }
 0x5f4   : > { %v6673_v2 = vsub.f32 %v6565_v23, %v2819_v34 }
 0x5f6   : > { %v6678_v43 = vpop.f32.mrf.mxu2  ;;  %v2883_v26 = vmul.f32 %v6673_v2, %v6673_v2 }
 0x5f8   : > { %v2919_v49 = vsel %vm182_vm0, %v2883_v26, 0.0  ;;  %v2612_v26 = vadd.f32 %v6657_v58, %v6533_v32  ;;  %v2763_v58 = vsel %vm182_vm0, %v6737_v31, 0.0 }
 0x5f9   : > { %2920 = vadd.xlane.f32.xlu2 %v2919_v49  ;;  %2746 = vadd.xlane.f32.xlu1 %v2745_v56  ;;  %v2732_v53 = vpop.xlane.xlu0 %2731  ;;  %v6747_v49 = vadd.f32 %v4539_v18, %v2673_v28 }
 0x5fa   : > { %2752 = vadd.xlane.f32.xlu0 %v2751_v10  ;;  %v2820_v13 = vmul.f32 %v2732_v53, %v7901_v5  ;;  %v2672_v10 = vmul.f32 %v6537_v45, %v2606_v27  ;;  %v2674_v53 = vmul.f32 %v6537_v45, %v2612_v26 }
 0x5fb   : > { %7906 = vst [vmem:[#allocation8_spill] sm:$0xff] %v6747_v49  ;;  %v2769_v42 = vsel %vm182_vm0, %v6747_v49, 0.0 }
 0x5fc   : > { %v6698_v21 = vsub.f32 %v6575_v52, %v2820_v13 }
 0x5fe   : > { %v2617_v37 = vpop.f32.mrf.mxu2  ;;  %v2884_v16 = vmul.f32 %v6698_v21, %v6698_v21 }
 0x5ff   : > { %v2618_v39 = vadd.f32 %v2617_v37, %v6533_v32  ;;  %v4542_v37 = vld [vmem:[%s4600_s14 + $0x90] sm:$0xff] }
 0x600   : > { %v2922_v20 = vsel %vm182_vm0, %v2884_v16, 0.0  ;;  %v6762_v16 = vadd.f32 %v4540_v62, %v2672_v10 }
 0x601   : > { %2749 = vadd.xlane.f32.xlu2 %v2748_v41  ;;  %2755 = vadd.xlane.f32.xlu1 %v2754_v24  ;;  %v2735_v63 = vpop.xlane.xlu2 %2734  ;;  %v6765_v41 = vadd.f32 %v4541_v38, %v2674_v53  ;;  %v2615_v24 = vadd.f32 %v6678_v43, %v6533_v32  ;;  %v2676_v43 = vmul.f32 %v6537_v45, %v2618_v39  ;;  %v6811_v38 = vld [vmem:[%s7834_s1 + $0x20] sm:$0xff] }
 0x602   : > { %v2821_v9 = vmul.f32 %v2735_v63, %v7901_v5  ;;  %2923 = vadd.xlane.f32.xlu0 %v2922_v20  ;;  %v2766_v17 = vsel %vm182_vm0, %v6762_v16, 0.0 }
 0x603   : > { %7907 = vst [vmem:[#allocation3_spill] sm:$0xff] %v6765_v41  ;;  %v2772_v7 = vsel %vm182_vm0, %v6765_v41, 0.0 }
 0x604   : > { %v6717_v50 = vsub.f32 %v6585_v29, %v2821_v9  ;;  %v2675_v9 = vmul.f32 %v6537_v45, %v2615_v24  ;;  %v3493_v24 = vrot.slane %v6811_v38, 6 }
 0x606   : > { %v6724_v6 = vpop.f32.mrf.mxu2  ;;  %v2885_v25 = vmul.f32 %v6717_v50, %v6717_v50 }
 0x608   : > { %v2925_v59 = vsel %vm182_vm0, %v2885_v25, 0.0  ;;  %v6783_v25 = vadd.f32 %v4542_v37, %v2675_v9 }
 0x609   : > { %v2738_v34 = vpop.xlane.xlu1 %2737  ;;  %2758 = vadd.xlane.f32.xlu2 %v2757_v47  ;;  %2926 = vadd.xlane.f32.xlu1 %v2925_v59  ;;  %v6786_v47 = vadd.f32 %v4543_v57, %v2676_v43 }
 0x60a   : > { %v2822_v35 = vmul.f32 %v2738_v34, %v7901_v5  ;;  %2761 = vadd.xlane.f32.xlu0 %v2760_v33  ;;  %7908 = vst [vmem:[#allocation9_spill] sm:$0xff] %v6783_v25  ;;  %v2775_v28 = vsel %vm182_vm0, %v6783_v25, 0.0 }
 0x60b   : > { %7909 = vst [vmem:[#allocation10_spill] sm:$0xff] %v6786_v47  ;;  %v2778_v33 = vsel %vm182_vm0, %v6786_v47, 0.0 }
 0x60c   : > { %v6744_v12 = vsub.f32 %v6595_v8, %v2822_v35  ;;  %v4544_v35 = vld [vmem:[%s4600_s14 + $0xb0] sm:$0xff] }
 0x60e   : > { %v2886_v56 = vmul.f32 %v6744_v12, %v6744_v12  ;;  %v6753_v13 = vpop.f32.mrf.mxu2 }
 0x610   : > { %v2928_v61 = vsel %vm182_vm0, %v2886_v56, 0.0 }
 0x611   : > { %2929 = vadd.xlane.f32.xlu2 %v2928_v61  ;;  %2764 = vadd.xlane.f32.xlu1 %v2763_v58  ;;  %v2741_v0 = vpop.xlane.xlu2 %2740 }
 0x612   : > { %v2823_v54 = vmul.f32 %v2741_v0, %v7901_v5  ;;  %2770 = vadd.xlane.f32.xlu0 %v2769_v42 }
 0x614   : > { %v6770_v20 = vsub.f32 %v6605_v3, %v2823_v54 }
 0x616   : > { %v2887_v63 = vmul.f32 %v6770_v20, %v6770_v20  ;;  %v2626_v1 = vpop.f32.mrf.mxu2 }
 0x617   : > { %v2627_v59 = vadd.f32 %v2626_v1, %v6533_v32 }
 0x618   : > { %v2931_v11 = vsel %vm182_vm0, %v2887_v63, 0.0  ;;  %v2621_v63 = vadd.f32 %v6724_v6, %v6533_v32 }
 0x619   : > { %2767 = vadd.xlane.f32.xlu2 %v2766_v17  ;;  %2773 = vadd.xlane.f32.xlu1 %v2772_v7  ;;  %v2679_v34 = vmul.f32 %v6537_v45, %v2627_v59 }
 0x61a   : > { %2932 = vadd.xlane.f32.xlu0 %v2931_v11  ;;  %v3494_v11 = vsel %vm2441_vm8, %v2443_v30, %v3493_v24  ;;  %v2677_v6 = vmul.f32 %v6537_v45, %v2621_v63  ;;  %v2624_v30 = vadd.f32 %v6753_v13, %v6533_v32  ;;  %v6846_v13 = vperm.slane %v6473_v4, 4 }
 0x61b   : > { %v6795_v44 = vadd.f32 %v4544_v35, %v2679_v34  ;;  %4308 = vmatpush.msk.msra.mxu3 %vm1059_vm2, %v3494_v11 }
 0x61d   : > { %7910 = vst [vmem:[#allocation11_spill] sm:$0xff] %v6795_v44  ;;  %v2787_v27 = vsel %vm182_vm0, %v6795_v44, 0.0 }
 0x61e   : > { %v2629_v26 = vpop.f32.mrf.mxu2 }
 0x621   : > { %2776 = vadd.xlane.f32.xlu2 %v2775_v28 }
 0x622   : > { %2779 = vadd.xlane.f32.xlu0 %v2778_v33  ;;  %v2630_v33 = vadd.f32 %v2629_v26, %v6533_v32 }
 0x624   : > { %v2680_v11 = vmul.f32 %v6537_v45, %v2630_v33 }
 0x626   : > { %v6799_v18 = vpop.f32.mrf.mxu2 }
 0x62a   : > { %2788 = vadd.xlane.f32.xlu0 %v2787_v27 }
 0x62e   : > { %v6801_v56 = vpop.f32.mrf.mxu2 }
 0x636   : > { %v6804_v58 = vpop.f32.mrf.mxu2 }
 0x63e   : > { %v6829_v37 = vpop.f32.mrf.mxu2 }
 0x65c   : > { %v2915_v10 = vpop.xlane.xlu0 %2914 }
 0x65d   : > { %v3009_v53 = vmul.f32 %v2915_v10, %v7901_v5 }
 0x65f   : > { %v3041_v61 = vadd.f32 1e-06, %v3009_v53 }
 0x661   : > { %4458 = vrsqrt.f32 %v3041_v61  ;;  %vm3079_vm11 = vweird.f32 %v3041_v61 }
 0x664   : > { %v2918_v0 = vpop.xlane.xlu1 %2917  ;;  %v2744_v42 = vpop.xlane.xlu0 %2743 }
 0x665   : > { %v3010_v54 = vmul.f32 %v2918_v0, %v7901_v5  ;;  %v2824_v62 = vmul.f32 %v2744_v42, %v7901_v5  ;;  %v4545_v42 = vld [vmem:[%s4600_s14 + $0xa0] sm:$0xff] }
 0x667   : > { %v4459_v39 = vpop.eup %4458  ;;  %v6816_v9 = vadd.f32 1e-06, %v3010_v54  ;;  %v6819_v17 = vsub.f32 %v6654_v15, %v2824_v62  ;;  %v6838_v54 = vadd.f32 %v4545_v42, %v2677_v6 }
 0x668   : > { %v3074_v7 = vmul.f32 %v4459_v39, %v3041_v61  ;;  %vm3080_vm9 = vweird.f32 %v4459_v39 }
 0x669   : > { %4460 = vrsqrt.f32 %v6816_v9  ;;  %v2888_v43 = vmul.f32 %v6819_v17, %v6819_v17  ;;  %7911 = vst [vmem:[#allocation12_spill] sm:$0xff] %v6838_v54  ;;  %vm3081_vm12 = vmor %vm3079_vm11, %vm3080_vm9  ;;  %vm3089_vm14 = vweird.f32 %v6816_v9 }
 0x66a   : > { %v3075_v1 = vmul.f32 %v4459_v39, %v3074_v7  ;;  %v2678_v7 = vmul.f32 %v6537_v45, %v2624_v30 }
 0x66b   : > { %v2934_v57 = vsel %vm182_vm0, %v2888_v43, 0.0 }
 0x66c   : > { %v3076_v59 = vmul.f32 0.5, %v3075_v1  ;;  %v2747_v28 = vpop.xlane.xlu1 %2746  ;;  %v2921_v34 = vpop.xlane.xlu2 %2920  ;;  %2935 = vadd.xlane.f32.xlu1 %v2934_v57  ;;  %v6855_v57 = vperm.slane %v6473_v4, 5 }
 0x66d   : > { %v2825_v35 = vmul.f32 %v2747_v28, %v7901_v5  ;;  %v3011_v27 = vmul.f32 %v2921_v34, %v7901_v5  ;;  %v2753_v10 = vpop.xlane.xlu0 %2752  ;;  %v6867_v4 = vpop.f32.mrf.mxu2 }
 0x66e   : > { %v3077_v53 = vsub.f32 1.5, %v3076_v59  ;;  %v2781_v59 = vsel %vm182_vm0, %v6838_v54, 0.0 }
 0x66f   : > { %v4461_v0 = vpop.eup %4460  ;;  %v6841_v62 = vsub.f32 %v6668_v51, %v2825_v35  ;;  %v6843_v24 = vadd.f32 1e-06, %v3011_v27  ;;  %v4546_v35 = vld [vmem:[%s4600_s14 + $0xa8] sm:$0xff] }
 0x670   : > { %v3078_v26 = vmul.f32 %v4459_v39, %v3077_v53  ;;  %v3084_v63 = vmul.f32 %v4461_v0, %v6816_v9  ;;  %v6862_v27 = vadd.f32 %v4546_v35, %v2678_v7  ;;  %vm3090_vm13 = vweird.f32 %v4461_v0 }
 0x671   : > { %4462 = vrsqrt.f32 %v6843_v24  ;;  %v2889_v43 = vmul.f32 %v6841_v62, %v6841_v62  ;;  %v2636_v7 = vadd.f32 %v6801_v56, %v6533_v32  ;;  %vm3091_vm15 = vmor %vm3089_vm14, %vm3090_vm13  ;;  %vm3099_vm3 = vweird.f32 %v6843_v24 }
 0x672   : > { %v3082_v1 = vsel %vm3081_vm12, %v4459_v39, %v3078_v26  ;;  %v3085_v6 = vmul.f32 %v4461_v0, %v3084_v63  ;;  %7912 = vst [vmem:[#allocation13_spill] sm:$0xff] %v6862_v27  ;;  %v4547_v39 = vld [vmem:[%s4600_s14 + $0xb8] sm:$0xff] }
 0x673   : > { %v2937_v61 = vsel %vm182_vm0, %v2889_v43, 0.0  ;;  %v3393_v28 = vmul.f32 %v3082_v1, %v6640_v36  ;;  %v6865_v53 = vadd.f32 %v4547_v39, %v2680_v11  ;;  %v2633_v36 = vadd.f32 %v6799_v18, %v6533_v32 }
 0x674   : > { %v3086_v34 = vmul.f32 0.5, %v3085_v6  ;;  %2938 = vadd.xlane.f32.xlu2 %v2937_v61  ;;  %v2756_v30 = vpop.xlane.xlu1 %2755  ;;  %v2750_v33 = vpop.xlane.xlu2 %2749  ;;  %2782 = vadd.xlane.f32.xlu1 %v2781_v59  ;;  %v2827_v18 = vmul.f32 %v2753_v10, %v7901_v5  ;;  %v2682_v39 = vmul.f32 %v6537_v45, %v2636_v7  ;;  %v2784_v10 = vsel %vm182_vm0, %v6862_v27, 0.0 }
 0x675   : > { %7913 = vst [vmem:[#allocation14_spill] sm:$0xff] %v6865_v53  ;;  %v2826_v42 = vmul.f32 %v2750_v33, %v7901_v5  ;;  %v2924_v26 = vpop.xlane.xlu0 %2923  ;;  %v3426_v63 = vmul.f32 %v6846_v13, %v3393_v28  ;;  %v2681_v9 = vmul.f32 %v6537_v45, %v2633_v36 }
 0x676   : > { %v3087_v43 = vsub.f32 1.5, %v3086_v34  ;;  %v3012_v1 = vmul.f32 %v2924_v26, %v7901_v5 }
 0x677   : > { %v4463_v6 = vpop.eup %4462  ;;  %v6878_v11 = vsub.f32 %v6691_v14, %v2826_v42  ;;  %v3459_v61 = vadd.f32 %v6855_v57, %v3426_v63  ;;  %v4551_v14 = vld [vmem:[%s4600_s14 + $0xd8] sm:$0xff] }
 0x678   : > { %v3088_v59 = vmul.f32 %v4461_v0, %v3087_v43  ;;  %v3094_v28 = vmul.f32 %v4463_v6, %v6843_v24  ;;  %v6883_v34 = vadd.f32 1e-06, %v3012_v1  ;;  %v6896_v43 = vsub.f32 %v6676_v60, %v2827_v18 }
 0x679   : > { %4309 = vmatmul.msk.f32.vlgmr.msra.gmra.mxu3 %vm182_vm0, %v3459_v61  ;;  %v2890_v56 = vmul.f32 %v6878_v11, %v6878_v11  ;;  %v2790_v1 = vsel %vm182_vm0, %v6865_v53, 0.0  ;;  %vm3100_vm1 = vweird.f32 %v4463_v6  ;;  %v2828_v18 = vmul.f32 %v2756_v30, %v7901_v5 }
 0x67a   : > { %v3092_v33 = vsel %vm3091_vm15, %v4461_v0, %v3088_v59  ;;  %v3095_v35 = vmul.f32 %v4463_v6, %v3094_v28  ;;  %4464 = vrsqrt.f32 %v6883_v34  ;;  %v4548_v28 = vld [vmem:[%s4600_s14 + $0xc0] sm:$0xff]  ;;  %v2891_v30 = vmul.f32 %v6896_v43, %v6896_v43  ;;  %vm3101_vm4 = vmor %vm3099_vm3, %vm3100_vm1 }
 0x67b   : > { %v2940_v42 = vsel %vm182_vm0, %v2890_v56, 0.0  ;;  %v3394_v26 = vmul.f32 %v3092_v33, %v6651_v19  ;;  %v6903_v19 = vadd.f32 %v4548_v28, %v2681_v9  ;;  %v4549_v33 = vld [vmem:[%s4600_s14 + $0xc8] sm:$0xff]  ;;  %v2639_v9 = vadd.f32 %v6804_v58, %v6533_v32 }
 0x67c   : > { %v3096_v63 = vmul.f32 0.5, %v3095_v35  ;;  %2785 = vadd.xlane.f32.xlu2 %v2784_v10  ;;  %v2927_v0 = vpop.xlane.xlu1 %2926  ;;  %v2759_v36 = vpop.xlane.xlu2 %2758  ;;  %2941 = vadd.xlane.f32.xlu0 %v2940_v42  ;;  %v6907_v35 = vadd.f32 %v4549_v33, %v2682_v39  ;;  %v2943_v33 = vsel %vm182_vm0, %v2891_v30, 0.0  ;;  %vm3109_vm6 = vweird.f32 %v6883_v34 }
 0x67d   : > { %v3013_v7 = vmul.f32 %v2927_v0, %v7901_v5  ;;  %2791 = vadd.xlane.f32.xlu1 %v2790_v1  ;;  %v2762_v61 = vpop.xlane.xlu0 %2761  ;;  %v3427_v59 = vmul.f32 %v6846_v13, %v3394_v26  ;;  %7914 = vst [vmem:[#allocation15_spill] sm:$0xff] %v6903_v19  ;;  %v6909_v10 = vpop.f32.mrf.mxu2  ;;  %v2829_v0 = vmul.f32 %v2759_v36, %v7901_v5  ;;  %v2793_v58 = vsel %vm182_vm0, %v6903_v19, 0.0 }
 0x67e   : > { %v3097_v56 = vsub.f32 1.5, %v3096_v63  ;;  %7915 = vst [vmem:[#allocation16_spill] sm:$0xff] %v6907_v35  ;;  %v6924_v36 = vsub.f32 %v6694_v55, %v2828_v18 }
 0x67f   : > { %v6911_v42 = vadd.f32 1e-06, %v3013_v7  ;;  %v3460_v1 = vadd.f32 %v6855_v57, %v3427_v59  ;;  %v6929_v24 = vsub.f32 %v6712_v46, %v2829_v0  ;;  %v2796_v59 = vsel %vm182_vm0, %v6907_v35, 0.0 }
 0x680   : > { %v4465_v60 = vpop.eup %4464  ;;  %v3098_v26 = vmul.f32 %v4463_v6, %v3097_v56  ;;  %v2683_v56 = vmul.f32 %v6537_v45, %v2639_v9  ;;  %v2645_v0 = vadd.f32 %v6867_v4, %v6533_v32 }
 0x681   : > { %v3104_v39 = vmul.f32 %v4465_v60, %v6883_v34  ;;  %4466 = vrsqrt.f32 %v6911_v42  ;;  %4310 = vmatmul.msk.f32.gmra.mxu3 %vm182_vm0, %v3460_v1  ;;  %vm3110_vm5 = vweird.f32 %v4465_v60  ;;  %v2893_v4 = vmul.f32 %v6929_v24, %v6929_v24 }
 0x682   : > { %v3102_v63 = vsel %vm3101_vm4, %v4463_v6, %v3098_v26  ;;  %v2642_v6 = vadd.f32 %v6829_v37, %v6533_v32  ;;  %v2892_v37 = vmul.f32 %v6924_v36, %v6924_v36  ;;  %v2685_v46 = vmul.f32 %v6537_v45, %v2645_v0  ;;  %vm3111_vm7 = vmor %vm3109_vm6, %vm3110_vm5 }
 0x683   : > { %v3105_v7 = vmul.f32 %v4465_v60, %v3104_v39  ;;  %v3395_v28 = vmul.f32 %v3102_v63, %v6673_v2  ;;  %vm3119_vm8 = vweird.f32 %v6911_v42 }
 0x684   : > { %2794 = vadd.xlane.f32.xlu2 %v2793_v58  ;;  %v2930_v18 = vpop.xlane.xlu2 %2929  ;;  %2797 = vadd.xlane.f32.xlu0 %v2796_v59 }
 0x685   : > { %v3106_v1 = vmul.f32 0.5, %v3105_v7  ;;  %v3014_v26 = vmul.f32 %v2930_v18, %v7901_v5  ;;  %2944 = vadd.xlane.f32.xlu1 %v2943_v33  ;;  %v6941_v39 = vpop.xlane.xlu0 %2770  ;;  %v3428_v2 = vmul.f32 %v6846_v13, %v3395_v28  ;;  %v4550_v7 = vld [vmem:[%s4600_s14 + $0xd0] sm:$0xff]  ;;  %v2684_v18 = vmul.f32 %v6537_v45, %v2642_v6  ;;  %v2650_v55 = vpop.f32.mrf.mxu2 }
 0x686   : > { %v6952_v59 = vadd.f32 %v4550_v7, %v2683_v56  ;;  %v2830_v33 = vmul.f32 %v2762_v61, %v7901_v5  ;;  %v2949_v61 = vsel %vm182_vm0, %v2893_v4, 0.0 }
 0x687   : > { %v4467_v9 = vpop.eup %4466  ;;  %v3107_v63 = vsub.f32 1.5, %v3106_v1  ;;  %v6946_v58 = vadd.f32 1e-06, %v3014_v26  ;;  %v3461_v30 = vadd.f32 %v6855_v57, %v3428_v2  ;;  %v2946_v26 = vsel %vm182_vm0, %v2892_v37, 0.0 }
 0x688   : > { %7916 = vst [vmem:[#allocation17_spill] sm:$0xff] %v6952_v59  ;;  %v3114_v28 = vmul.f32 %v4467_v9, %v6911_v42  ;;  %v6965_v0 = vsub.f32 %v6720_v48, %v2830_v33  ;;  %vm3120_vm10 = vweird.f32 %v4467_v9 }
 0x689   : > { %v3108_v1 = vmul.f32 %v4465_v60, %v3107_v63  ;;  %4468 = vrsqrt.f32 %v6946_v58  ;;  %4311 = vmatmul.msk.f32.gmra.mxu3 %vm182_vm0, %v3461_v30  ;;  %v2765_v63 = vpop.xlane.xlu1 %2764  ;;  %v2799_v30 = vsel %vm182_vm0, %v6952_v59, 0.0  ;;  %vm3121_vm9 = vmor %vm3119_vm8, %vm3120_vm10  ;;  %vm3129_vm12 = vweird.f32 %v6946_v58 }
 0x68a   : > { %v3115_v56 = vmul.f32 %v4467_v9, %v3114_v28  ;;  %v6971_v28 = vadd.f32 %v4551_v14, %v2684_v18  ;;  %v2831_v14 = vmul.f32 %v2765_v63, %v7901_v5 }
 0x68b   : > { %v3112_v6 = vsel %vm3111_vm7, %v4465_v60, %v3108_v1  ;;  %v4552_v60 = vld [vmem:[%s4600_s14 + $0xe0] sm:$0xff] }
 0x68c   : > { %v3116_v2 = vmul.f32 0.5, %v3115_v56  ;;  %2947 = vadd.xlane.f32.xlu2 %v2946_v26  ;;  %v2768_v34 = vpop.xlane.xlu2 %2767  ;;  %2950 = vadd.xlane.f32.xlu0 %v2949_v61  ;;  %v3396_v7 = vmul.f32 %v3112_v6, %v6698_v21  ;;  %7917 = vst [vmem:[#allocation18_spill] sm:$0xff] %v6971_v28  ;;  %v6974_v37 = vadd.f32 %v4552_v60, %v2685_v46 }
 0x68d   : > { %2800 = vadd.xlane.f32.xlu1 %v2799_v30  ;;  %v2933_v4 = vpop.xlane.xlu0 %2932  ;;  %v2648_v61 = vadd.f32 %v6909_v10, %v6533_v32  ;;  %v2832_v21 = vmul.f32 %v2768_v34, %v7901_v5  ;;  %v2802_v10 = vsel %vm182_vm0, %v6971_v28, 0.0  ;;  %v2653_v42 = vpop.f32.mrf.mxu2  ;;  %v6993_v63 = vsub.f32 %v6737_v31, %v2831_v14 }
 0x68e   : > { %v3117_v1 = vsub.f32 1.5, %v3116_v2  ;;  %v3015_v33 = vmul.f32 %v2933_v4, %v7901_v5  ;;  %v3429_v56 = vmul.f32 %v6846_v13, %v3396_v7  ;;  %v2894_v2 = vmul.f32 %v6965_v0, %v6965_v0 }
 0x68f   : > { %v4469_v26 = vpop.eup %4468  ;;  %v6996_v34 = vsub.f32 %v6762_v16, %v2832_v21  ;;  %v2805_v4 = vsel %vm182_vm0, %v6974_v37, 0.0  ;;  %v2651_v21 = vadd.f32 %v2650_v55, %v6533_v32 }
 0x690   : > { %v3118_v46 = vmul.f32 %v4467_v9, %v3117_v1  ;;  %v3124_v18 = vmul.f32 %v4469_v26, %v6946_v58  ;;  %v6984_v6 = vadd.f32 1e-06, %v3015_v33  ;;  %v3462_v30 = vadd.f32 %v6855_v57, %v3429_v56 }
 0x691   : > { %v2686_v1 = vmul.f32 %v6537_v45, %v2648_v61  ;;  %v2952_v56 = vsel %vm182_vm0, %v2894_v2, 0.0  ;;  %vm3130_vm11 = vweird.f32 %v4469_v26  ;;  %v2896_v61 = vmul.f32 %v6996_v34, %v6996_v34 }
 0x692   : > { %v3122_v7 = vsel %vm3121_vm9, %v4467_v9, %v3118_v46  ;;  %v3125_v60 = vmul.f32 %v4469_v26, %v3124_v18  ;;  %4470 = vrsqrt.f32 %v6984_v6  ;;  %4312 = vmatmul.msk.f32.gmra.mxu3 %vm182_vm0, %v3462_v30  ;;  %v2654_v46 = vadd.f32 %v2653_v42, %v6533_v32  ;;  %vm3131_vm13 = vmor %vm3129_vm12, %vm3130_vm11 }
 0x693   : > { %v3397_v9 = vmul.f32 %v3122_v7, %v6717_v50  ;;  %v2895_v50 = vmul.f32 %v6993_v63, %v6993_v63  ;;  %v2833_v32 = vmul.f32 %v6941_v39, %v7901_v5  ;;  %v2687_v42 = vmul.f32 %v6537_v45, %v2651_v21 }
 0x694   : > { %v3126_v33 = vmul.f32 0.5, %v3125_v60  ;;  %2803 = vadd.xlane.f32.xlu2 %v2802_v10  ;;  %2806 = vadd.xlane.f32.xlu0 %v2805_v4  ;;  %v4553_v60 = vld [vmem:[%s4600_s14 + $0xe8] sm:$0xff]  ;;  %v2688_v4 = vmul.f32 %v6537_v45, %v2654_v46  ;;  %v2777_v21 = vpop.xlane.xlu2 %2776  ;;  %vm3139_vm15 = vweird.f32 %v6984_v6 }
 0x695   : > { %2953 = vadd.xlane.f32.xlu1 %v2952_v56  ;;  %v3430_v14 = vmul.f32 %v6846_v13, %v3397_v9  ;;  %v7013_v2 = vadd.f32 %v4553_v60, %v2686_v1  ;;  %v2780_v1 = vpop.xlane.xlu0 %2779  ;;  %v2955_v58 = vsel %vm182_vm0, %v2895_v50, 0.0  ;;  %v4555_v50 = vld [vmem:[%s4600_s14 + $0xf8] sm:$0xff] }
 0x696   : > { %v3127_v18 = vsub.f32 1.5, %v3126_v33  ;;  %v2774_v33 = vpop.xlane.xlu1 %2773 }
 0x697   : > { %v3463_v30 = vadd.f32 %v6855_v57, %v3430_v14  ;;  %7918 = vst [vmem:[#allocation19_spill] sm:$0xff] %v7013_v2  ;;  %v2958_v14 = vsel %vm182_vm0, %v2896_v61, 0.0  ;;  %v2808_v45 = vsel %vm182_vm0, %v7013_v2, 0.0  ;;  %v7035_v61 = vadd.f32 %v4555_v50, %v2688_v4 }
 0x698   : > { %v4471_v7 = vpop.eup %4470  ;;  %v3128_v10 = vmul.f32 %v4469_v26, %v3127_v18  ;;  %v7026_v18 = vsub.f32 %v6747_v49, %v2833_v32  ;;  %v2835_v32 = vmul.f32 %v2777_v21, %v7901_v5 }
 0x699   : > { %v3134_v55 = vmul.f32 %v4471_v7, %v6984_v6  ;;  %vm3140_vm14 = vweird.f32 %v4471_v7 }
 0x69a   : > { %v3132_v9 = vsel %vm3131_vm13, %v4469_v26, %v3128_v10  ;;  %4313 = vmatmul.msk.f32.gmra.mxu3 %vm182_vm0, %v3463_v30  ;;  %v4554_v30 = vld [vmem:[%s4600_s14 + $0xf0] sm:$0xff]  ;;  %vm3141_vm1 = vmor %vm3139_vm15, %vm3140_vm14 }
 0x69b   : > { %v3135_v56 = vmul.f32 %v4471_v7, %v3134_v55  ;;  %v3398_v39 = vmul.f32 %v3132_v9, %v6744_v12  ;;  %v7032_v60 = vadd.f32 %v4554_v30, %v2687_v42  ;;  %v2834_v12 = vmul.f32 %v2774_v33, %v7901_v5 }
 0x69c   : > { %2956 = vadd.xlane.f32.xlu2 %v2955_v58  ;;  %2959 = vadd.xlane.f32.xlu0 %v2958_v14  ;;  %v2836_v9 = vmul.f32 %v2780_v1, %v7901_v5  ;;  %v7050_v14 = vsub.f32 %v6783_v25, %v2835_v32  ;;  %v2814_v1 = vsel %vm182_vm0, %v7035_v61, 0.0 }
 0x69d   : > { %v3136_v26 = vmul.f32 0.5, %v3135_v56  ;;  %2809 = vadd.xlane.f32.xlu1 %v2808_v45  ;;  %v3431_v46 = vmul.f32 %v6846_v13, %v3398_v39  ;;  %v2897_v56 = vmul.f32 %v7026_v18, %v7026_v18  ;;  %v2811_v42 = vsel %vm182_vm0, %v7032_v60, 0.0  ;;  %v2789_v45 = vpop.xlane.xlu0 %2788 }
 0x69e   : > { %v7047_v4 = vsub.f32 %v6765_v41, %v2834_v12  ;;  %v7056_v39 = vsub.f32 %v6786_v47, %v2836_v9  ;;  %v2839_v30 = vmul.f32 %v2789_v45, %v7901_v5 }
 0x69f   : > { %v3137_v10 = vsub.f32 1.5, %v3136_v26  ;;  %v3464_v55 = vadd.f32 %v6855_v57, %v3431_v46  ;;  %v2961_v6 = vsel %vm182_vm0, %v2897_v56, 0.0  ;;  %v2899_v46 = vmul.f32 %v7050_v14, %v7050_v14 }
 0x6a0   : > { %v2898_v26 = vmul.f32 %v7047_v4, %v7047_v4  ;;  %v2900_v12 = vmul.f32 %v7056_v39, %v7056_v39  ;;  %v7073_v32 = vsub.f32 %v6795_v44, %v2839_v30 }
 0x6a1   : > { %v3138_v58 = vmul.f32 %v4471_v7, %v3137_v10  ;;  %v2967_v10 = vsel %vm182_vm0, %v2899_v46, 0.0 }
 0x6a2   : > { %4314 = vmatmul.msk.f32.gmra.mxu3 %vm182_vm0, %v3464_v55  ;;  %v2970_v55 = vsel %vm182_vm0, %v2900_v12, 0.0  ;;  %v2903_v9 = vmul.f32 %v7073_v32, %v7073_v32 }
 0x6a3   : > { %v3142_v33 = vsel %vm3141_vm1, %v4471_v7, %v3138_v58 }
 0x6a4   : > { %2812 = vadd.xlane.f32.xlu2 %v2811_v42  ;;  %2815 = vadd.xlane.f32.xlu0 %v2814_v1  ;;  %v3399_v21 = vmul.f32 %v3142_v33, %v6770_v20  ;;  %v2964_v20 = vsel %vm182_vm0, %v2898_v26, 0.0  ;;  %v2979_v56 = vsel %vm182_vm0, %v2903_v9, 0.0 }
 0x6a5   : > { %2962 = vadd.xlane.f32.xlu1 %v2961_v6 }
 0x6a6   : > { %v3432_v7 = vmul.f32 %v6846_v13, %v3399_v21 }
 0x6a8   : > { %v3465_v50 = vadd.f32 %v6855_v57, %v3432_v7 }
 0x6aa   : > { %4315 = vmatmul.msk.f32.gmra.mxu3 %vm182_vm0, %v3465_v50 }
 0x6ac   : > { %2965 = vadd.xlane.f32.xlu2 %v2964_v20  ;;  %2968 = vadd.xlane.f32.xlu0 %v2967_v10 }
 0x6ad   : > { %2971 = vadd.xlane.f32.xlu1 %v2970_v55 }
 0x6b5   : > { %2980 = vadd.xlane.f32.xlu1 %v2979_v56 }
 0x6df   : > { %v2936_v58 = vpop.xlane.xlu1 %2935 }
 0x6e0   : > { %v3016_v42 = vmul.f32 %v2936_v58, %v7901_v5 }
 0x6e2   : > { %v3048_v33 = vadd.f32 1e-06, %v3016_v42 }
 0x6e4   : > { %4472 = vrsqrt.f32 %v3048_v33  ;;  %vm3149_vm4 = vweird.f32 %v3048_v33 }
 0x6e7   : > { %v2939_v1 = vpop.xlane.xlu2 %2938  ;;  %v2783_v6 = vpop.xlane.xlu1 %2782 }
 0x6e8   : > { %v3017_v21 = vmul.f32 %v2939_v1, %v7901_v5  ;;  %v2837_v45 = vmul.f32 %v2783_v6, %v7901_v5 }
 0x6ea   : > { %v4473_v7 = vpop.eup %4472  ;;  %v3049_v26 = vadd.f32 1e-06, %v3017_v21  ;;  %v7083_v46 = vsub.f32 %v6838_v54, %v2837_v45 }
 0x6eb   : > { %v3144_v30 = vmul.f32 %v4473_v7, %v3048_v33  ;;  %vm3150_vm3 = vweird.f32 %v4473_v7 }
 0x6ec   : > { %4474 = vrsqrt.f32 %v3049_v26  ;;  %v2901_v50 = vmul.f32 %v7083_v46, %v7083_v46  ;;  %vm3151_vm5 = vmor %vm3149_vm4, %vm3150_vm3  ;;  %vm3159_vm7 = vweird.f32 %v3049_v26 }
 0x6ed   : > { %v3145_v12 = vmul.f32 %v4473_v7, %v3144_v30 }
 0x6ee   : > { %v2973_v20 = vsel %vm182_vm0, %v2901_v50, 0.0 }
 0x6ef   : > { %v3146_v10 = vmul.f32 0.5, %v3145_v12  ;;  %v2786_v55 = vpop.xlane.xlu2 %2785  ;;  %2974 = vadd.xlane.f32.xlu2 %v2973_v20  ;;  %v2942_v9 = vpop.xlane.xlu0 %2941 }
 0x6f0   : > { %v2838_v56 = vmul.f32 %v2786_v55, %v7901_v5  ;;  %v2792_v58 = vpop.xlane.xlu1 %2791  ;;  %v3018_v42 = vmul.f32 %v2942_v9, %v7901_v5 }
 0x6f1   : > { %v3147_v1 = vsub.f32 1.5, %v3146_v10  ;;  %v2840_v6 = vmul.f32 %v2792_v58, %v7901_v5 }
 0x6f2   : > { %v4475_v21 = vpop.eup %4474  ;;  %v7092_v45 = vsub.f32 %v6862_v27, %v2838_v56  ;;  %v7094_v30 = vadd.f32 1e-06, %v3018_v42 }
 0x6f3   : > { %v3148_v50 = vmul.f32 %v4473_v7, %v3147_v1  ;;  %v3154_v12 = vmul.f32 %v4475_v21, %v3049_v26  ;;  %v7097_v20 = vsub.f32 %v6865_v53, %v2840_v6  ;;  %vm3160_vm6 = vweird.f32 %v4475_v21 }
 0x6f4   : > { %4476 = vrsqrt.f32 %v7094_v30  ;;  %v2902_v10 = vmul.f32 %v7092_v45, %v7092_v45  ;;  %vm3161_vm10 = vmor %vm3159_vm7, %vm3160_vm6  ;;  %vm3169_vm9 = vweird.f32 %v7094_v30 }
 0x6f5   : > { %v3152_v55 = vsel %vm3151_vm5, %v4473_v7, %v3148_v50  ;;  %v3155_v9 = vmul.f32 %v4475_v21, %v3154_v12  ;;  %v2904_v56 = vmul.f32 %v7097_v20, %v7097_v20 }
 0x6f6   : > { %v2976_v58 = vsel %vm182_vm0, %v2902_v10, 0.0  ;;  %v3400_v42 = vmul.f32 %v3152_v55, %v6819_v17 }
 0x6f7   : > { %v3156_v33 = vmul.f32 0.5, %v3155_v9  ;;  %v2795_v1 = vpop.xlane.xlu2 %2794  ;;  %2977 = vadd.xlane.f32.xlu0 %v2976_v58  ;;  %v2982_v6 = vsel %vm182_vm0, %v2904_v56, 0.0  ;;  %v2798_v53 = vpop.xlane.xlu0 %2797 }
 0x6f8   : > { %v2841_v44 = vmul.f32 %v2795_v1, %v7901_v5  ;;  %2983 = vadd.xlane.f32.xlu2 %v2982_v6  ;;  %v2945_v27 = vpop.xlane.xlu1 %2944  ;;  %v2842_v7 = vmul.f32 %v2798_v53, %v7901_v5  ;;  %v3433_v50 = vmul.f32 %v6846_v13, %v3400_v42 }
 0x6f9   : > { %v3157_v12 = vsub.f32 1.5, %v3156_v33  ;;  %v3019_v10 = vmul.f32 %v2945_v27, %v7901_v5 }
 0x6fa   : > { %v4477_v54 = vpop.eup %4476  ;;  %v7112_v17 = vsub.f32 %v6903_v19, %v2841_v44  ;;  %v7115_v55 = vsub.f32 %v6907_v35, %v2842_v7  ;;  %v3466_v9 = vadd.f32 %v6855_v57, %v3433_v50 }
 0x6fb   : > { %v3158_v56 = vmul.f32 %v4475_v21, %v3157_v12  ;;  %v3164_v58 = vmul.f32 %v4477_v54, %v7094_v30  ;;  %v3051_v53 = vadd.f32 1e-06, %v3019_v10  ;;  %vm3170_vm8 = vweird.f32 %v4477_v54 }
 0x6fc   : > { %4316 = vmatmul.msk.f32.gmra.mxu3 %vm182_vm0, %v3466_v9  ;;  %v2905_v27 = vmul.f32 %v7112_v17, %v7112_v17  ;;  %v2906_v44 = vmul.f32 %v7115_v55, %v7115_v55  ;;  %vm3171_vm11 = vmor %vm3169_vm9, %vm3170_vm8 }
 0x6fd   : > { %v3162_v42 = vsel %vm3161_vm10, %v4475_v21, %v3158_v56  ;;  %v3165_v33 = vmul.f32 %v4477_v54, %v3164_v58  ;;  %4478 = vrsqrt.f32 %v3051_v53  ;;  %vm3179_vm13 = vweird.f32 %v3051_v53 }
 0x6fe   : > { %v2985_v1 = vsel %vm182_vm0, %v2905_v27, 0.0  ;;  %v2988_v6 = vsel %vm182_vm0, %v2906_v44, 0.0  ;;  %v3401_v26 = vmul.f32 %v3162_v42, %v6841_v62 }
 0x6ff   : > { %v3166_v7 = vmul.f32 0.5, %v3165_v33  ;;  %v2948_v50 = vpop.xlane.xlu2 %2947  ;;  %2986 = vadd.xlane.f32.xlu0 %v2985_v1  ;;  %2989 = vadd.xlane.f32.xlu1 %v2988_v6  ;;  %v2951_v12 = vpop.xlane.xlu0 %2950 }
 0x700   : > { %v3020_v10 = vmul.f32 %v2948_v50, %v7901_v5  ;;  %v2801_v9 = vpop.xlane.xlu1 %2800  ;;  %v3021_v35 = vmul.f32 %v2951_v12, %v7901_v5  ;;  %v3434_v21 = vmul.f32 %v6846_v13, %v3401_v26  ;;  %v3610_v26 = vpop.f32.mrf.mxu3 }
 0x701   : > { %v3167_v56 = vsub.f32 1.5, %v3166_v7  ;;  %v2843_v58 = vmul.f32 %v2801_v9, %v7901_v5 }
 0x702   : > { %v7131_v27 = vadd.f32 1e-06, %v3020_v10  ;;  %v7133_v44 = vadd.f32 1e-06, %v3021_v35  ;;  %v3467_v62 = vadd.f32 %v6855_v57, %v3434_v21 }
 0x703   : > { %v4479_v42 = vpop.eup %4478  ;;  %v3168_v33 = vmul.f32 %v4477_v54, %v3167_v56  ;;  %v7138_v1 = vsub.f32 %v6952_v59, %v2843_v58  ;;  %v7153_v59 = vperm.slane %v6811_v38, 2 }
 0x704   : > { %v3174_v6 = vmul.f32 %v4479_v42, %v3051_v53  ;;  %4480 = vrsqrt.f32 %v7131_v27  ;;  %4317 = vmatmul.msk.f32.gmra.mxu3 %vm182_vm0, %v3467_v62  ;;  %vm3180_vm12 = vweird.f32 %v4479_v42  ;;  %vm3189_vm1 = vweird.f32 %v7131_v27 }
 0x705   : > { %v3172_v7 = vsel %vm3171_vm11, %v4477_v54, %v3168_v33  ;;  %4482 = vrsqrt.f32 %v7133_v44  ;;  %v2907_v50 = vmul.f32 %v7138_v1, %v7138_v1  ;;  %vm3181_vm14 = vmor %vm3179_vm13, %vm3180_vm12  ;;  %vm3199_vm5 = vweird.f32 %v7133_v44 }
 0x706   : > { %v3175_v35 = vmul.f32 %v4479_v42, %v3174_v6  ;;  %v3402_v12 = vmul.f32 %v3172_v7, %v6878_v11 }
 0x707   : > { %v2804_v30 = vpop.xlane.xlu2 %2803  ;;  %v7146_v10 = vpop.xlane.xlu0 %2806  ;;  %v2991_v58 = vsel %vm182_vm0, %v2907_v50, 0.0 }
 0x708   : > { %v3176_v9 = vmul.f32 0.5, %v3175_v35  ;;  %v2844_v21 = vmul.f32 %v2804_v30, %v7901_v5  ;;  %v2954_v56 = vpop.xlane.xlu1 %2953  ;;  %2992 = vadd.xlane.f32.xlu1 %v2991_v58  ;;  %v3435_v54 = vmul.f32 %v6846_v13, %v3402_v12  ;;  %v7171_v58 = vadd.f32 %v3610_v26, %v7153_v59 }
 0x709   : > { %v3022_v62 = vmul.f32 %v2954_v56, %v7901_v5 }
 0x70a   : > { %v4481_v33 = vpop.eup %4480  ;;  %v3177_v6 = vsub.f32 1.5, %v3176_v9  ;;  %v7156_v11 = vsub.f32 %v6971_v28, %v2844_v21  ;;  %v3468_v50 = vadd.f32 %v6855_v57, %v3435_v54  ;;  %v7174_v54 = vpop.f32.mrf.mxu3 }
 0x70b   : > { %v7158_v7 = vpop.eup %4482  ;;  %v3184_v35 = vmul.f32 %v4481_v33, %v7131_v27  ;;  %v7161_v30 = vadd.f32 1e-06, %v3022_v62  ;;  %vm3190_vm15 = vweird.f32 %v4481_v33 }
 0x70c   : > { %v3178_v56 = vmul.f32 %v4479_v42, %v3177_v6  ;;  %v3194_v12 = vmul.f32 %v7158_v7, %v7133_v44  ;;  %v2908_v38 = vmul.f32 %v7156_v11, %v7156_v11  ;;  %4318 = vmatmul.msk.f32.gmra.mxu3 %vm182_vm0, %v3468_v50  ;;  %vm3191_vm3 = vmor %vm3189_vm1, %vm3190_vm15  ;;  %vm3200_vm4 = vweird.f32 %v7158_v7 }
 0x70d   : > { %v3185_v9 = vmul.f32 %v4481_v33, %v3184_v35  ;;  %4484 = vrsqrt.f32 %v7161_v30  ;;  %vm7203_vm6 = vmor %vm3199_vm5, %vm3200_vm4  ;;  %vm3209_vm10 = vweird.f32 %v7161_v30 }
 0x70e   : > { %v3182_v21 = vsel %vm3181_vm14, %v4479_v42, %v3178_v56  ;;  %v3195_v62 = vmul.f32 %v7158_v7, %v3194_v12  ;;  %v2994_v53 = vsel %vm182_vm0, %v2908_v38, 0.0 }
 0x70f   : > { %v3186_v6 = vmul.f32 0.5, %v3185_v9  ;;  %v2957_v28 = vpop.xlane.xlu2 %2956  ;;  %v2960_v19 = vpop.xlane.xlu0 %2959  ;;  %v3403_v47 = vmul.f32 %v3182_v21, %v6896_v43 }
 0x710   : > { %v3196_v35 = vmul.f32 0.5, %v3195_v62  ;;  %v3023_v25 = vmul.f32 %v2957_v28, %v7901_v5  ;;  %3738 = vrot.lane.b32.xlu2 %v7171_v58, %s4567_s23  ;;  %v2810_v42 = vpop.xlane.xlu1 %2809  ;;  %v3024_v26 = vmul.f32 %v2960_v19, %v7901_v5  ;;  %2995 = vadd.xlane.f32.xlu1 %v2994_v53 }
 0x711   : > { %v3187_v50 = vsub.f32 1.5, %v3186_v6  ;;  %v2846_v56 = vmul.f32 %v2810_v42, %v7901_v5  ;;  %v3436_v12 = vmul.f32 %v6846_v13, %v3403_v47 }
 0x712   : > { %v3197_v38 = vsub.f32 1.5, %v3196_v35  ;;  %v7184_v9 = vadd.f32 1e-06, %v3023_v25  ;;  %v7186_v43 = vadd.f32 1e-06, %v3024_v26 }
 0x713   : > { %v4485_v21 = vpop.eup %4484  ;;  %v3188_v28 = vmul.f32 %v4481_v33, %v3187_v50  ;;  %v7190_v62 = vsub.f32 %v7013_v2, %v2846_v56  ;;  %v3469_v19 = vadd.f32 %v6855_v57, %v3436_v12 }
 0x714   : > { %v3198_v6 = vmul.f32 %v7158_v7, %v3197_v38  ;;  %v3204_v47 = vmul.f32 %v4485_v21, %v7161_v30  ;;  %4486 = vrsqrt.f32 %v7184_v9  ;;  %v3616_v38 = vpop.f32.mrf.mxu3  ;;  %vm3210_vm7 = vweird.f32 %v4485_v21 }
 0x715   : > { %v3192_v25 = vsel %vm3191_vm3, %v4481_v33, %v3188_v28  ;;  %4488 = vrsqrt.f32 %v7186_v43  ;;  %4319 = vmatmul.msk.f32.gmra.mxu3 %vm182_vm0, %v3469_v19  ;;  %v2910_v53 = vmul.f32 %v7190_v62, %v7190_v62  ;;  %vm3211_vm8 = vmor %vm3209_vm10, %vm3210_vm7  ;;  %vm3219_vm11 = vweird.f32 %v7184_v9 }
 0x716   : > { %v3205_v27 = vmul.f32 %v4485_v21, %v3204_v47  ;;  %v3404_v35 = vmul.f32 %v3192_v25, %v6924_v36  ;;  %v3202_v33 = vsel %vm7203_vm6, %v7158_v7, %v3198_v6  ;;  %vm3229_vm14 = vweird.f32 %v7186_v43 }
 0x717   : > { %v7207_v26 = vpop.xlane.xlu2 %2812  ;;  %v7209_v50 = vpop.xlane.xlu0 %2815  ;;  %v3000_v44 = vsel %vm182_vm0, %v2910_v53, 0.0  ;;  %v3405_v6 = vmul.f32 %v3202_v33, %v6929_v24 }
 0x718   : > { %v3206_v56 = vmul.f32 0.5, %v3205_v27  ;;  %v2963_v12 = vpop.xlane.xlu1 %2962  ;;  %3001 = vadd.xlane.f32.xlu0 %v3000_v44  ;;  %v3437_v28 = vmul.f32 %v6846_v13, %v3404_v35 }
 0x719   : > { %v3025_v36 = vmul.f32 %v2963_v12, %v7901_v5  ;;  %v3438_v44 = vmul.f32 %v6846_v13, %v3405_v6 }
 0x71a   : > { %v4487_v19 = vpop.eup %4486  ;;  %v3207_v47 = vsub.f32 1.5, %v3206_v56  ;;  %v3470_v7 = vadd.f32 %v6855_v57, %v3437_v28 }
 0x71b   : > { %v7217_v25 = vpop.eup %4488  ;;  %v3214_v2 = vmul.f32 %v4487_v19, %v7184_v9  ;;  %v7220_v41 = vadd.f32 1e-06, %v3025_v36  ;;  %vm3220_vm9 = vweird.f32 %v4487_v19  ;;  %v2845_v9 = vmul.f32 %v7146_v10, %v7901_v5 }
 0x71c   : > { %v3208_v27 = vmul.f32 %v4485_v21, %v3207_v47  ;;  %v3224_v53 = vmul.f32 %v7217_v25, %v7186_v43  ;;  %vm3221_vm12 = vmor %vm3219_vm11, %vm3220_vm9  ;;  %vm3230_vm13 = vweird.f32 %v7217_v25 }
 0x71d   : > { %v3215_v42 = vmul.f32 %v4487_v19, %v3214_v2  ;;  %4490 = vrsqrt.f32 %v7220_v41  ;;  %4320 = vmatmul.msk.f32.gmra.mxu3 %vm182_vm0, %v3470_v7  ;;  %v3619_v7 = vpop.f32.mrf.mxu3  ;;  %v7270_v10 = vsub.f32 %v6974_v37, %v2845_v9  ;;  %vm3231_vm15 = vmor %vm3229_vm14, %vm3230_vm13  ;;  %vm3239_vm3 = vweird.f32 %v7220_v41 }
 0x71e   : > { %v3212_v12 = vsel %vm3211_vm8, %v4485_v21, %v3208_v27  ;;  %v3225_v24 = vmul.f32 %v7217_v25, %v3224_v53  ;;  %v7283_v43 = vadd.f32 %v3619_v7, %v7153_v59 }
 0x71f   : > { %v3216_v35 = vmul.f32 0.5, %v3215_v42  ;;  %v2966_v56 = vpop.xlane.xlu2 %2965  ;;  %v2969_v36 = vpop.xlane.xlu0 %2968  ;;  %v3471_v42 = vadd.f32 %v6855_v57, %v3438_v44  ;;  %v3406_v49 = vmul.f32 %v3212_v12, %v6965_v0 }
 0x720   : > { %v3026_v33 = vmul.f32 %v2966_v56, %v7901_v5  ;;  %v3027_v30 = vmul.f32 %v2969_v36, %v7901_v5  ;;  %v3226_v21 = vmul.f32 0.5, %v3225_v24  ;;  %v7248_v56 = vadd.f32 %v3616_v38, %v7153_v59  ;;  %v2972_v24 = vpop.xlane.xlu1 %2971 }
 0x721   : > { %v3217_v28 = vsub.f32 1.5, %v3216_v35  ;;  %v3439_v35 = vmul.f32 %v6846_v13, %v3406_v49  ;;  %v7253_v36 = vadd.f32 %v7174_v54, %v7153_v59  ;;  %v3028_v49 = vmul.f32 %v2972_v24, %v7901_v5 }
 0x722   : > { %v7232_v47 = vadd.f32 1e-06, %v3026_v33  ;;  %v7244_v53 = vadd.f32 1e-06, %v3027_v30  ;;  %v3227_v44 = vsub.f32 1.5, %v3226_v21 }
 0x723   : > { %v7234_v2 = vpop.eup %4490  ;;  %v3218_v6 = vmul.f32 %v4487_v19, %v3217_v28  ;;  %v3472_v38 = vadd.f32 %v6855_v57, %v3439_v35 }
 0x724   : > { %v3234_v27 = vmul.f32 %v7234_v2, %v7220_v41  ;;  %4492 = vrsqrt.f32 %v7232_v47  ;;  %v3228_v28 = vmul.f32 %v7217_v25, %v3227_v44  ;;  %vm3240_vm1 = vweird.f32 %v7234_v2 }
 0x725   : > { %4321 = vmatmul.msk.f32.gmra.mxu3 %vm182_vm0, %v3471_v42  ;;  %v3222_v0 = vsel %vm3221_vm12, %v4487_v19, %v3218_v6  ;;  %4494 = vrsqrt.f32 %v7244_v53  ;;  %v3622_v42 = vpop.f32.mrf.mxu3  ;;  %vm3241_vm4 = vmor %vm3239_vm3, %vm3240_vm1  ;;  %vm3249_vm6 = vweird.f32 %v7232_v47  ;;  %vm3259_vm8 = vweird.f32 %v7244_v53 }
 0x726   : > { %v3235_v12 = vmul.f32 %v7234_v2, %v3234_v27  ;;  %v3407_v19 = vmul.f32 %v3222_v0, %v6993_v63  ;;  %v3060_v63 = vadd.f32 1e-06, %v3028_v49  ;;  %v3232_v21 = vsel %vm3231_vm15, %v7217_v25, %v3228_v28 }
 0x727   : > { %v7276_v35 = vadd.f32 %v3622_v42, %v7153_v59  ;;  %v3408_v25 = vmul.f32 %v3232_v21, %v6996_v34 }
 0x728   : > { %v3236_v54 = vmul.f32 0.5, %v3235_v12  ;;  %v3440_v6 = vmul.f32 %v6846_v13, %v3407_v19  ;;  %v2909_v12 = vmul.f32 %v7270_v10, %v7270_v10  ;;  %4496 = vrsqrt.f32 %v3060_v63 }
 0x729   : > { %3742 = vrot.lane.b32.xlu1 %v7248_v56, %s4567_s23  ;;  %v3441_v7 = vmul.f32 %v6846_v13, %v3408_v25  ;;  %vm3269_vm12 = vweird.f32 %v3060_v63 }
 0x72a   : > { %v4493_v33 = vpop.eup %4492  ;;  %v3237_v27 = vsub.f32 1.5, %v3236_v54  ;;  %v3473_v24 = vadd.f32 %v6855_v57, %v3440_v6  ;;  %v2997_v54 = vsel %vm182_vm0, %v2909_v12, 0.0 }
 0x72b   : > { %v3244_v30 = vmul.f32 %v4493_v33, %v7232_v47  ;;  %v4495_v44 = vpop.eup %4494  ;;  %v3474_v42 = vadd.f32 %v6855_v57, %v3441_v7  ;;  %vm3250_vm5 = vweird.f32 %v4493_v33 }
 0x72c   : > { %3740 = vrot.lane.b32.xlu0 %v7253_v36, %s4567_s23  ;;  %v3238_v9 = vmul.f32 %v7234_v2, %v3237_v27  ;;  %vm3251_vm7 = vmor %vm3249_vm6, %vm3250_vm5  ;;  %vm3260_vm10 = vweird.f32 %v4495_v44 }
 0x72d   : > { %4322 = vmatmul.msk.f32.gmra.mxu3 %vm182_vm0, %v3472_v38  ;;  %v3245_v0 = vmul.f32 %v4493_v33, %v3244_v30  ;;  %v3254_v38 = vmul.f32 %v4495_v44, %v7244_v53  ;;  %vm3261_vm9 = vmor %vm3259_vm8, %vm3260_vm10 }
 0x72e   : > { %v3242_v19 = vsel %vm3241_vm4, %v7234_v2, %v3238_v9  ;;  %v4497_v30 = vpop.eup %4496 }
 0x72f   : > { %v3246_v49 = vmul.f32 0.5, %v3245_v0  ;;  %v3255_v28 = vmul.f32 %v4495_v44, %v3254_v38  ;;  %v3409_v6 = vmul.f32 %v3242_v19, %v7026_v18  ;;  %v3264_v27 = vmul.f32 %v4497_v30, %v3060_v63 }
 0x730   : > { %vm3270_vm11 = vweird.f32 %v4497_v30 }
 0x731   : > { %3746 = vrot.lane.b32.xlu1 %v7276_v35, %s4567_s23  ;;  %v3247_v34 = vsub.f32 1.5, %v3246_v49  ;;  %v3256_v0 = vmul.f32 0.5, %v3255_v28  ;;  %v3442_v41 = vmul.f32 %v6846_v13, %v3409_v6  ;;  %v3625_v28 = vpop.f32.mrf.mxu3  ;;  %vm3271_vm13 = vmor %vm3269_vm12, %vm3270_vm11 }
 0x732   : > { %v7313_v53 = vadd.f32 %v3625_v28, %v7153_v59 }
 0x733   : > { %v3248_v21 = vmul.f32 %v4493_v33, %v3247_v34  ;;  %v3257_v12 = vsub.f32 1.5, %v3256_v0  ;;  %v3475_v25 = vadd.f32 %v6855_v57, %v3442_v41 }
 0x734   : > { %3744 = vrot.lane.b32.xlu0 %v7283_v43, %s4567_s23 }
 0x735   : > { %4323 = vmatmul.msk.f32.gmra.mxu3 %vm182_vm0, %v3473_v24  ;;  %v3252_v2 = vsel %vm3251_vm7, %v4493_v33, %v3248_v21  ;;  %v3265_v24 = vmul.f32 %v4497_v30, %v3264_v27  ;;  %v3258_v18 = vmul.f32 %v4495_v44, %v3257_v12  ;;  %v2981_v27 = vpop.xlane.xlu1 %2980 }
 0x736   : > { %v3410_v9 = vmul.f32 %v3252_v2, %v7047_v4  ;;  %v2847_v4 = vmul.f32 %v7207_v26, %v7901_v5 }
 0x737   : > { %v3266_v49 = vmul.f32 0.5, %v3265_v24  ;;  %v3262_v7 = vsel %vm3261_vm9, %v4495_v44, %v3258_v18 }
 0x738   : > { %v3443_v47 = vmul.f32 %v6846_v13, %v3410_v9  ;;  %v3411_v19 = vmul.f32 %v3262_v7, %v7050_v14  ;;  %v2848_v14 = vmul.f32 %v7209_v50, %v7901_v5  ;;  %v7345_v9 = vld [vmem:[%s7834_s1 + $0x20] sm:$0xff] }
 0x739   : > { %2998 = vadd.xlane.f32.xlu2 %v2997_v54  ;;  %v3267_v38 = vsub.f32 1.5, %v3266_v49  ;;  %v3867_v49 = vrot.slane %v7345_v9, 3 }
 0x73a   : > { %v3476_v33 = vadd.f32 %v6855_v57, %v3443_v47  ;;  %v3444_v54 = vmul.f32 %v6846_v13, %v3411_v19  ;;  %v7327_v6 = vsub.f32 %v7035_v61, %v2848_v14 }
 0x73b   : > { %v3268_v34 = vmul.f32 %v4497_v30, %v3267_v38  ;;  %4341 = vmatpush.msk.msrb.mxu1 %vm1059_vm2, %v3867_v49 }
 0x73c   : > { %v3477_v63 = vadd.f32 %v6855_v57, %v3444_v54  ;;  %v2912_v50 = vmul.f32 %v7327_v6, %v7327_v6 }
 0x73d   : > { %4324 = vmatmul.msk.f32.gmra.mxu3 %vm182_vm0, %v3474_v42  ;;  %v3272_v44 = vsel %vm3271_vm13, %v4497_v30, %v3268_v34  ;;  %v7321_v42 = vsub.f32 %v7032_v60, %v2847_v4  ;;  %v3628_v4 = vpop.f32.mrf.mxu3 }
 0x73e   : > { %v3412_v26 = vmul.f32 %v3272_v44, %v7056_v39  ;;  %v3031_v39 = vmul.f32 %v2981_v27, %v7901_v5  ;;  %v3006_v2 = vsel %vm182_vm0, %v2912_v50, 0.0 }
 0x73f   : > { %v2911_v30 = vmul.f32 %v7321_v42, %v7321_v42 }
 0x740   : > { %v3445_v21 = vmul.f32 %v6846_v13, %v3412_v26  ;;  %v7339_v24 = vadd.f32 1e-06, %v3031_v39  ;;  %v7360_v26 = vadd.f32 %v3628_v4, %v7153_v59 }
 0x741   : > { %v3003_v0 = vsel %vm182_vm0, %v2911_v30, 0.0 }
 0x742   : > { %v3478_v41 = vadd.f32 %v6855_v57, %v3445_v21  ;;  %4498 = vrsqrt.f32 %v7339_v24  ;;  %vm3299_vm6 = vweird.f32 %v7339_v24 }
 0x745   : > { %4325 = vmatmul.msk.f32.gmra.mxu3 %vm182_vm0, %v3475_v25 }
 0x74d   : > { %4326 = vmatmul.msk.f32.gmra.mxu3 %vm182_vm0, %v3476_v33  ;;  %v7351_v33 = vpop.eup %4498 }
 0x74e   : > { %v3294_v14 = vmul.f32 %v7351_v33, %v7339_v24  ;;  %vm3300_vm4 = vweird.f32 %v7351_v33 }
 0x74f   : > { %vm3301_vm7 = vmor %vm3299_vm6, %vm3300_vm4 }
 0x750   : > { %v3295_v27 = vmul.f32 %v7351_v33, %v3294_v14 }
 0x751   : > { %3748 = vrot.lane.b32.xlu2 %v7313_v53, %s4567_s23 }
 0x755   : > { %4327 = vmatmul.msk.f32.gmra.mxu3 %vm182_vm0, %v3477_v63 }
 0x75b   : > { %3004 = vadd.xlane.f32.xlu1 %v3003_v0 }
 0x75d   : > { %4328 = vmatmul.msk.f32.gmra.mxu3 %vm182_vm0, %v3478_v41 }
 0x75e   : > { %3007 = vadd.xlane.f32.xlu0 %v3006_v2 }
 0x762   : > { %v2975_v12 = vpop.xlane.xlu2 %2974 }
 0x763   : > { %v3029_v25 = vmul.f32 %v2975_v12, %v7901_v5 }
 0x765   : > { %v3061_v18 = vadd.f32 1e-06, %v3029_v25 }
 0x767   : > { %4500 = vrsqrt.f32 %v3061_v18  ;;  %vm3279_vm14 = vweird.f32 %v3061_v18 }
 0x76a   : > { %v2978_v47 = vpop.xlane.xlu0 %2977 }
 0x76b   : > { %v2984_v38 = vpop.xlane.xlu2 %2983  ;;  %v3030_v7 = vmul.f32 %v2978_v47, %v7901_v5 }
 0x76c   : > { %v3032_v19 = vmul.f32 %v2984_v38, %v7901_v5 }
 0x76d   : > { %v4501_v34 = vpop.eup %4500  ;;  %v3062_v28 = vadd.f32 1e-06, %v3030_v7 }
 0x76e   : > { %v3274_v54 = vmul.f32 %v4501_v34, %v3061_v18  ;;  %v7354_v44 = vadd.f32 1e-06, %v3032_v19  ;;  %vm3280_vm2 = vweird.f32 %v4501_v34  ;;  %v3296_v19 = vmul.f32 0.5, %v3295_v27 }
 0x76f   : > { %4502 = vrsqrt.f32 %v3062_v28  ;;  %vm3281_vm15 = vmor %vm3279_vm14, %vm3280_vm2  ;;  %vm3289_vm3 = vweird.f32 %v3062_v28 }
 0x770   : > { %v3275_v63 = vmul.f32 %v4501_v34, %v3274_v54  ;;  %4504 = vrsqrt.f32 %v7354_v44  ;;  %v3297_v18 = vsub.f32 1.5, %v3296_v19  ;;  %vm3309_vm8 = vweird.f32 %v7354_v44 }
 0x772   : > { %v3276_v30 = vmul.f32 0.5, %v3275_v63  ;;  %v2990_v21 = vpop.xlane.xlu1 %2989  ;;  %v2987_v50 = vpop.xlane.xlu0 %2986  ;;  %3750 = vrot.lane.b32.xlu0 %v7360_v26, %s4567_s23 }
 0x773   : > { %v3739_v0 = vpop.permute.xlu2 %3738  ;;  %v3033_v41 = vmul.f32 %v2987_v50, %v7901_v5  ;;  %v3034_v7 = vmul.f32 %v2990_v21, %v7901_v5 }
 0x774   : > { %v3277_v39 = vsub.f32 1.5, %v3276_v30  ;;  %v3834_v2 = vmul.f32 %v3739_v0, %v7171_v58 }
 0x775   : > { %v4503_v12 = vpop.eup %4502  ;;  %v7367_v25 = vadd.f32 1e-06, %v3033_v41  ;;  %v7377_v30 = vadd.f32 1e-06, %v3034_v7 }
 0x776   : > { %v7369_v49 = vpop.eup %4504  ;;  %v3278_v47 = vmul.f32 %v4501_v34, %v3277_v39  ;;  %v3284_v38 = vmul.f32 %v4503_v12, %v3062_v28  ;;  %4342 = vmatmul.msk.f32.vlgmr.msrb.gmra.mxu1 %vm182_vm0, %v3834_v2  ;;  %vm3290_vm1 = vweird.f32 %v4503_v12  ;;  %v3298_v2 = vmul.f32 %v7351_v33, %v3297_v18 }
 0x777   : > { %v3304_v4 = vmul.f32 %v7369_v49, %v7354_v44  ;;  %4506 = vrsqrt.f32 %v7367_v25  ;;  %vm3291_vm5 = vmor %vm3289_vm3, %vm3290_vm1  ;;  %vm3310_vm10 = vweird.f32 %v7369_v49  ;;  %vm3319_vm12 = vweird.f32 %v7367_v25 }
 0x778   : > { %v3282_v54 = vsel %vm3281_vm15, %v4501_v34, %v3278_v47  ;;  %v3285_v14 = vmul.f32 %v4503_v12, %v3284_v38  ;;  %4508 = vrsqrt.f32 %v7377_v30  ;;  %vm3311_vm9 = vmor %vm3309_vm8, %vm3310_vm10  ;;  %vm3329_vm14 = vweird.f32 %v7377_v30 }
 0x779   : > { %v3413_v58 = vmul.f32 %v3282_v54, %v7083_v46  ;;  %v3305_v50 = vmul.f32 %v7369_v49, %v3304_v4 }
 0x77a   : > { %v3286_v63 = vmul.f32 0.5, %v3285_v14  ;;  %v3302_v14 = vsel %vm3301_vm7, %v7351_v33, %v3298_v2 }
 0x77b   : > { %v3446_v21 = vmul.f32 %v6846_v13, %v3413_v58  ;;  %v2993_v27 = vpop.xlane.xlu1 %2992  ;;  %v3306_v47 = vmul.f32 0.5, %v3305_v50 }
 0x77c   : > { %v3287_v0 = vsub.f32 1.5, %v3286_v63  ;;  %v3035_v46 = vmul.f32 %v2993_v27, %v7901_v5 }
 0x77d   : > { %v3479_v41 = vadd.f32 %v6855_v57, %v3446_v21  ;;  %v7382_v39 = vpop.eup %4506  ;;  %v3307_v58 = vsub.f32 1.5, %v3306_v47 }
 0x77e   : > { %v3288_v34 = vmul.f32 %v4503_v12, %v3287_v0  ;;  %v3314_v38 = vmul.f32 %v7382_v39, %v7367_v25  ;;  %v7395_v28 = vadd.f32 1e-06, %v3035_v46  ;;  %v4509_v18 = vpop.eup %4508  ;;  %v3415_v0 = vmul.f32 %v3302_v14, %v7073_v32 }
 0x77f   : > { %v3631_v7 = vpop.f32.mrf.mxu3  ;;  %4329 = vmatmul.msk.f32.gmra.mxu3 %vm182_vm0, %v3479_v41  ;;  %v3308_v27 = vmul.f32 %v7369_v49, %v3307_v58  ;;  %vm3320_vm11 = vweird.f32 %v7382_v39  ;;  %vm3330_vm2 = vweird.f32 %v4509_v18 }
 0x780   : > { %v3292_v19 = vsel %vm3291_vm5, %v4503_v12, %v3288_v34  ;;  %v7392_v4 = vadd.f32 %v3631_v7, %v7153_v59  ;;  %v3315_v63 = vmul.f32 %v7382_v39, %v3314_v38  ;;  %4510 = vrsqrt.f32 %v7395_v28  ;;  %vm3321_vm13 = vmor %vm3319_vm12, %vm3320_vm11 }
 0x781   : > { %v3414_v54 = vmul.f32 %v3292_v19, %v7092_v45  ;;  %v3324_v45 = vmul.f32 %v4509_v18, %v7377_v30  ;;  %v3448_v32 = vmul.f32 %v6846_v13, %v3415_v0  ;;  %v3312_v2 = vsel %vm3311_vm9, %v7369_v49, %v3308_v27  ;;  %vm3331_vm15 = vmor %vm3329_vm14, %vm3330_vm2 }
 0x782   : > { %3752 = vrot.lane.b32.xlu2 %v7392_v4, %s4567_s23  ;;  %v3316_v33 = vmul.f32 0.5, %v3315_v63  ;;  %vm3339_vm3 = vweird.f32 %v7395_v28 }
 0x783   : > { %v2996_v12 = vpop.xlane.xlu1 %2995  ;;  %v3447_v50 = vmul.f32 %v6846_v13, %v3414_v54  ;;  %v3325_v47 = vmul.f32 %v4509_v18, %v3324_v45  ;;  %v3481_v19 = vadd.f32 %v6855_v57, %v3448_v32  ;;  %v3416_v54 = vmul.f32 %v3312_v2, %v7097_v20 }
 0x784   : > { %v3036_v24 = vmul.f32 %v2996_v12, %v7901_v5  ;;  %v3317_v38 = vsub.f32 1.5, %v3316_v33 }
 0x785   : > { %v3480_v21 = vadd.f32 %v6855_v57, %v3447_v50  ;;  %v3326_v44 = vmul.f32 0.5, %v3325_v47  ;;  %v3449_v12 = vmul.f32 %v6846_v13, %v3416_v54 }
 0x786   : > { %v7415_v46 = vadd.f32 1e-06, %v3036_v24  ;;  %v4511_v7 = vpop.eup %4510  ;;  %v3318_v14 = vmul.f32 %v7382_v39, %v3317_v38 }
 0x787   : > { %v3634_v41 = vpop.f32.mrf.mxu3  ;;  %4330 = vmatmul.msk.f32.gmra.mxu3 %vm182_vm0, %v3480_v21  ;;  %v3334_v58 = vmul.f32 %v4511_v7, %v7395_v28  ;;  %v3327_v50 = vsub.f32 1.5, %v3326_v44  ;;  %v3482_v27 = vadd.f32 %v6855_v57, %v3449_v12  ;;  %vm3340_vm1 = vweird.f32 %v4511_v7 }
 0x788   : > { %v7411_v34 = vadd.f32 %v3634_v41, %v7153_v59  ;;  %4512 = vrsqrt.f32 %v7415_v46  ;;  %v3322_v20 = vsel %vm3321_vm13, %v7382_v39, %v3318_v14  ;;  %vm3341_vm4 = vmor %vm3339_vm3, %vm3340_vm1  ;;  %vm3349_vm6 = vweird.f32 %v7415_v46 }
 0x789   : > { %v3335_v24 = vmul.f32 %v4511_v7, %v3334_v58  ;;  %v3417_v0 = vmul.f32 %v3322_v20, %v7112_v17  ;;  %v3328_v45 = vmul.f32 %v4509_v18, %v3327_v50 }
 0x78a   : > { %3754 = vrot.lane.b32.xlu1 %v7411_v34, %s4567_s23 }
 0x78b   : > { %v3336_v25 = vmul.f32 0.5, %v3335_v24  ;;  %v3002_v41 = vpop.xlane.xlu0 %3001  ;;  %v3450_v2 = vmul.f32 %v6846_v13, %v3417_v0  ;;  %v3332_v17 = vsel %vm3331_vm15, %v4509_v18, %v3328_v45 }
 0x78c   : > { %v3038_v30 = vmul.f32 %v3002_v41, %v7901_v5 }
 0x78d   : > { %v3337_v47 = vsub.f32 1.5, %v3336_v25  ;;  %v3483_v54 = vadd.f32 %v6855_v57, %v3450_v2 }
 0x78e   : > { %v4513_v21 = vpop.eup %4512  ;;  %v7458_v24 = vadd.f32 1e-06, %v3038_v30 }
 0x78f   : > { %v3637_v63 = vpop.f32.mrf.mxu3  ;;  %4331 = vmatmul.msk.f32.gmra.mxu3 %vm182_vm0, %v3481_v19  ;;  %v3344_v33 = vmul.f32 %v4513_v21, %v7415_v46  ;;  %v3418_v19 = vmul.f32 %v3332_v17, %v7115_v55  ;;  %v3338_v44 = vmul.f32 %v4511_v7, %v3337_v47  ;;  %vm3350_vm5 = vweird.f32 %v4513_v21 }
 0x790   : > { %v7430_v49 = vadd.f32 %v3637_v63, %v7153_v59  ;;  %4514 = vrsqrt.f32 %v7458_v24  ;;  %vm3351_vm7 = vmor %vm3349_vm6, %vm3350_vm5  ;;  %vm3369_vm12 = vweird.f32 %v7458_v24 }
 0x791   : > { %v3345_v38 = vmul.f32 %v4513_v21, %v3344_v33  ;;  %v3451_v55 = vmul.f32 %v6846_v13, %v3418_v19  ;;  %v3342_v50 = vsel %vm3341_vm4, %v4511_v7, %v3338_v44 }
 0x792   : > { %3756 = vrot.lane.b32.xlu2 %v7430_v49, %s4567_s23  ;;  %v3419_v0 = vmul.f32 %v3342_v50, %v7138_v1 }
 0x793   : > { %v3346_v14 = vmul.f32 0.5, %v3345_v38  ;;  %v3484_v28 = vadd.f32 %v6855_v57, %v3451_v55 }
 0x794   : > { %v3452_v1 = vmul.f32 %v6846_v13, %v3419_v0 }
 0x795   : > { %v3347_v20 = vsub.f32 1.5, %v3346_v14 }
 0x796   : > { %v3485_v46 = vadd.f32 %v6855_v57, %v3452_v1 }
 0x797   : > { %4332 = vmatmul.msk.f32.gmra.mxu3 %vm182_vm0, %v3482_v27  ;;  %v3348_v27 = vmul.f32 %v4513_v21, %v3347_v20 }
 0x798   : > { %v3640_v32 = vpop.f32.mrf.mxu3 }
 0x799   : > { %v7442_v39 = vadd.f32 %v3640_v32, %v7153_v59  ;;  %v3352_v33 = vsel %vm3351_vm7, %v4513_v21, %v3348_v27  ;;  %v4515_v32 = vpop.eup %4514 }
 0x79a   : > { %v3420_v17 = vmul.f32 %v3352_v33, %v7156_v11  ;;  %v3364_v38 = vmul.f32 %v4515_v32, %v7458_v24  ;;  %vm3370_vm8 = vweird.f32 %v4515_v32 }
 0x79b   : > { %3758 = vrot.lane.b32.xlu0 %v7442_v39, %s4567_s23  ;;  %vm3371_vm13 = vmor %vm3369_vm12, %vm3370_vm8 }
 0x79c   : > { %v3453_v44 = vmul.f32 %v6846_v13, %v3420_v17  ;;  %v3365_v11 = vmul.f32 %v4515_v32, %v3364_v38 }
 0x79e   : > { %v3741_v58 = vpop.permute.xlu0 %3740  ;;  %v3486_v30 = vadd.f32 %v6855_v57, %v3453_v44 }
 0x79f   : > { %v3835_v63 = vmul.f32 %v3741_v58, %v7253_v36  ;;  %4333 = vmatmul.msk.f32.gmra.mxu3 %vm182_vm0, %v3483_v54  ;;  %v3743_v36 = vpop.permute.xlu1 %3742 }
 0x7a0   : > { %v3643_v12 = vpop.f32.mrf.mxu3  ;;  %v3836_v45 = vmul.f32 %v3743_v36, %v7248_v56 }
 0x7a1   : > { %v7454_v18 = vadd.f32 %v3643_v12, %v7153_v59  ;;  %4343 = vmatmul.msk.f32.gmra.mxu1 %vm182_vm0, %v3835_v63 }
 0x7a3   : > { %3760 = vrot.lane.b32.xlu2 %v7454_v18, %s4567_s23 }
 0x7a6   : > { %v3745_v56 = vpop.permute.xlu0 %3744 }
 0x7a7   : > { %4334 = vmatmul.msk.f32.gmra.mxu3 %vm182_vm0, %v3484_v28  ;;  %v3837_v19 = vmul.f32 %v3745_v56, %v7283_v43  ;;  %v3747_v14 = vpop.permute.xlu1 %3746  ;;  %v3366_v43 = vmul.f32 0.5, %v3365_v11 }
 0x7a8   : > { %v3646_v25 = vpop.f32.mrf.mxu3  ;;  %v3838_v63 = vmul.f32 %v3747_v14, %v7276_v35 }
 0x7a9   : > { %v7469_v7 = vadd.f32 %v3646_v25, %v7153_v59  ;;  %4344 = vmatmul.msk.f32.gmra.mxu1 %vm182_vm0, %v3836_v45  ;;  %v3367_v36 = vsub.f32 1.5, %v3366_v43 }
 0x7ab   : > { %3762 = vrot.lane.b32.xlu0 %v7469_v7, %s4567_s23  ;;  %v3368_v35 = vmul.f32 %v4515_v32, %v3367_v36 }
 0x7ac   : > { %v2999_v41 = vpop.xlane.xlu2 %2998 }
 0x7ad   : > { %v3037_v2 = vmul.f32 %v2999_v41, %v7901_v5 }
 0x7af   : > { %v3069_v47 = vadd.f32 1e-06, %v3037_v2  ;;  %4335 = vmatmul.msk.f32.gmra.mxu3 %vm182_vm0, %v3485_v46  ;;  %v3372_v2 = vsel %vm3371_vm13, %v4515_v32, %v3368_v35 }
 0x7b0   : > { %v3649_v54 = vpop.f32.mrf.mxu3 }
 0x7b1   : > { %4516 = vrsqrt.f32 %v3069_v47  ;;  %v7482_v21 = vadd.f32 %v3649_v54, %v7153_v59  ;;  %4345 = vmatmul.msk.f32.gmra.mxu1 %vm182_vm0, %v3837_v19  ;;  %vm3359_vm9 = vweird.f32 %v3069_v47 }
 0x7b3   : > { %3764 = vrot.lane.b32.xlu2 %v7482_v21, %s4567_s23 }
 0x7b4   : > { %v3749_v28 = vpop.permute.xlu2 %3748 }
 0x7b5   : > { %v3839_v25 = vmul.f32 %v3749_v28, %v7313_v53  ;;  %v3422_v53 = vmul.f32 %v3372_v2, %v7190_v62 }
 0x7b7   : > { %v4517_v58 = vpop.eup %4516  ;;  %4336 = vmatmul.msk.f32.gmra.mxu3 %vm182_vm0, %v3486_v30 }
 0x7b8   : > { %v3354_v12 = vmul.f32 %v4517_v58, %v3069_v47  ;;  %v3652_v55 = vpop.f32.mrf.mxu3  ;;  %vm3360_vm10 = vweird.f32 %v4517_v58 }
 0x7b9   : > { %v7492_v50 = vadd.f32 %v3652_v55, %v7153_v59  ;;  %4346 = vmatmul.msk.f32.gmra.mxu1 %vm182_vm0, %v3838_v63  ;;  %vm3361_vm11 = vmor %vm3359_vm9, %vm3360_vm10 }
 0x7ba   : > { %v3355_v20 = vmul.f32 %v4517_v58, %v3354_v12 }
 0x7bb   : > { %3766 = vrot.lane.b32.xlu1 %v7492_v50, %s4567_s23 }
 0x7bc   : > { %v3356_v0 = vmul.f32 0.5, %v3355_v20 }
 0x7be   : > { %v3357_v27 = vsub.f32 1.5, %v3356_v0 }
 0x7c0   : > { %v3358_v45 = vmul.f32 %v4517_v58, %v3357_v27  ;;  %v3655_v1 = vpop.f32.mrf.mxu3 }
 0x7c1   : > { %v7499_v33 = vadd.f32 %v3655_v1, %v7153_v59  ;;  %4347 = vmatmul.msk.f32.gmra.mxu1 %vm182_vm0, %v3839_v25 }
 0x7c2   : > { %v3362_v41 = vsel %vm3361_vm11, %v4517_v58, %v3358_v45 }
 0x7c3   : > { %v3421_v56 = vmul.f32 %v3362_v41, %v7270_v10  ;;  %3768 = vrot.lane.b32.xlu0 %v7499_v33, %s4567_s23  ;;  %v3455_v10 = vmul.f32 %v6846_v13, %v3422_v53 }
 0x7c5   : > { %v3454_v17 = vmul.f32 %v6846_v13, %v3421_v56  ;;  %v3488_v32 = vadd.f32 %v6855_v57, %v3455_v10 }
 0x7c7   : > { %v3487_v46 = vadd.f32 %v6855_v57, %v3454_v17 }
 0x7c8   : > { %v3658_v47 = vpop.f32.mrf.mxu3 }
 0x7c9   : > { %v7510_v38 = vadd.f32 %v3658_v47, %v7153_v59  ;;  %4337 = vmatmul.msk.f32.gmra.mxu3 %vm182_vm0, %v3487_v46 }
 0x7cb   : > { %3770 = vrot.lane.b32.xlu2 %v7510_v38, %s4567_s23 }
 0x7ce   : > { %v3005_v24 = vpop.xlane.xlu1 %3004 }
 0x7cf   : > { %v3039_v19 = vmul.f32 %v3005_v24, %v7901_v5 }
 0x7d0   : > { %v3661_v54 = vpop.f32.mrf.mxu3 }
 0x7d1   : > { %v7519_v62 = vadd.f32 %v3661_v54, %v7153_v59  ;;  %4338 = vmatmul.msk.f32.gmra.mxu3 %vm182_vm0, %v3488_v32  ;;  %v3071_v44 = vadd.f32 1e-06, %v3039_v19  ;;  %v3008_v11 = vpop.xlane.xlu0 %3007  ;;  %v7549_v54 = vperm.slane %v7345_v9, 7 }
 0x7d2   : > { %v3040_v14 = vmul.f32 %v3008_v11, %v7901_v5 }
 0x7d3   : > { %3772 = vrot.lane.b32.xlu1 %v7519_v62, %s4567_s23  ;;  %4518 = vrsqrt.f32 %v3071_v44  ;;  %vm3379_vm14 = vweird.f32 %v3071_v44 }
 0x7d4   : > { %v3072_v30 = vadd.f32 1e-06, %v3040_v14 }
 0x7d6   : > { %4520 = vrsqrt.f32 %v3072_v30  ;;  %vm3389_vm3 = vweird.f32 %v3072_v30 }
 0x7d8   : > { %v3664_v58 = vpop.f32.mrf.mxu3 }
 0x7d9   : > { %v7526_v43 = vadd.f32 %v3664_v58, %v7153_v59  ;;  %v4519_v63 = vpop.eup %4518 }
 0x7da   : > { %v3374_v12 = vmul.f32 %v4519_v63, %v3071_v44  ;;  %vm3380_vm2 = vweird.f32 %v4519_v63 }
 0x7db   : > { %3774 = vrot.lane.b32.xlu0 %v7526_v43, %s4567_s23  ;;  %vm3381_vm15 = vmor %vm3379_vm14, %vm3380_vm2 }
 0x7dc   : > { %v4521_v55 = vpop.eup %4520  ;;  %v3375_v20 = vmul.f32 %v4519_v63, %v3374_v12  ;;  %v3753_v32 = vpop.permute.xlu2 %3752 }
 0x7dd   : > { %v3384_v36 = vmul.f32 %v4521_v55, %v3072_v30  ;;  %vm3390_vm1 = vweird.f32 %v4521_v55 }
 0x7de   : > { %v3376_v0 = vmul.f32 0.5, %v3375_v20  ;;  %vm3391_vm4 = vmor %vm3389_vm3, %vm3390_vm1 }
 0x7df   : > { %v3385_v5 = vmul.f32 %v4521_v55, %v3384_v36 }
 0x7e0   : > { %v3667_v28 = vpop.f32.mrf.mxu3  ;;  %v3377_v27 = vsub.f32 1.5, %v3376_v0 }
 0x7e1   : > { %v7531_v35 = vadd.f32 %v3667_v28, %v7153_v59  ;;  %v3386_v45 = vmul.f32 0.5, %v3385_v5 }
 0x7e2   : > { %v3378_v25 = vmul.f32 %v4519_v63, %v3377_v27 }
 0x7e3   : > { %3776 = vrot.lane.b32.xlu2 %v7531_v35, %s4567_s23  ;;  %v3387_v1 = vsub.f32 1.5, %v3386_v45 }
 0x7e4   : > { %v3382_v41 = vsel %vm3381_vm15, %v4519_v63, %v3378_v25  ;;  %v3751_v56 = vpop.permute.xlu0 %3750 }
 0x7e5   : > { %v3423_v2 = vmul.f32 %v3382_v41, %v7321_v42  ;;  %v3388_v17 = vmul.f32 %v4521_v55, %v3387_v1  ;;  %v3840_v53 = vmul.f32 %v3751_v56, %v7360_v26  ;;  %v3841_v42 = vmul.f32 %v3753_v32, %v7392_v4  ;;  %v149_v26 = vld [vmem:[%s7834_s1 + $0x28] sm:$0xff] }
 0x7e6   : > { %v7552_v44 = vperm.slane %v149_v26, 0 }
 0x7e7   : > { %v3392_v46 = vsel %vm3391_vm4, %v4521_v55, %v3388_v17  ;;  %4348 = vmatmul.msk.f32.gmra.mxu1 %vm182_vm0, %v3840_v53  ;;  %v3456_v47 = vmul.f32 %v6846_v13, %v3423_v2 }
 0x7e8   : > { %v3424_v10 = vmul.f32 %v3392_v46, %v7327_v6 }
 0x7e9   : > { %v3489_v24 = vadd.f32 %v6855_v57, %v3456_v47 }
 0x7ea   : > { %v3457_v19 = vmul.f32 %v6846_v13, %v3424_v10 }
 0x7eb   : > { %4339 = vmatmul.msk.f32.gmra.mxu3 %vm182_vm0, %v3489_v24 }
 0x7ec   : > { %v3490_v6 = vadd.f32 %v6855_v57, %v3457_v19  ;;  %v3757_v30 = vpop.permute.xlu2 %3756 }
 0x7ed   : > { %v3843_v12 = vmul.f32 %v3757_v30, %v7430_v49 }
 0x7ef   : > { %4349 = vmatmul.msk.f32.gmra.mxu1 %vm182_vm0, %v3841_v42 }
 0x7f3   : > { %v3983_v11 = vpop.f32.mrf.mxu1  ;;  %4340 = vmatmul.msk.f32.gmra.mxu3 %vm182_vm0, %v3490_v6 }
 0x7f4   : > { %v3984_v4 = vadd.f32 %v3983_v11, %v7549_v54 }
 0x7f6   : > { %v4080_v13 = vmul.f32 %v7552_v44, %v3984_v4 }
 0x7f8   : > { %v4112_v9 = vadd.f32 %v4080_v13, %v6545_v22 }
 0x7fa   : > { %4144 = vst.msk [vmem:[%s7562_s8] sm:$0xff] %vm182_vm0, %v4112_v9 }
 0x7fc   : > { %v3755_v57 = vpop.permute.xlu1 %3754 }
 0x7fd   : > { %v3842_v14 = vmul.f32 %v3755_v57, %v7411_v34  ;;  %v3761_v36 = vpop.permute.xlu2 %3760 }
 0x7fe   : > { %v3845_v5 = vmul.f32 %v3761_v36, %v7454_v18 }
 0x7ff   : > { %4350 = vmatmul.msk.f32.gmra.mxu1 %vm182_vm0, %v3842_v14 }
 0x802   : > { %v3670_v58 = vpop.f32.mrf.mxu3 }
 0x803   : > { %v7570_v63 = vadd.f32 %v3670_v58, %v7153_v59 }
 0x805   : > { %3778 = vrot.lane.b32.xlu1 %v7570_v63, %s4567_s23 }
 0x807   : > { %4351 = vmatmul.msk.f32.gmra.mxu1 %vm182_vm0, %v3843_v12 }
 0x80a   : > { %v3673_v22 = vpop.f32.mrf.mxu3 }
 0x80b   : > { %v7577_v55 = vadd.f32 %v3673_v22, %v7153_v59 }
 0x80d   : > { %v3759_v20 = vpop.permute.xlu0 %3758  ;;  %3780 = vrot.lane.b32.xlu0 %v7577_v55, %s4567_s23  ;;  %v3765_v41 = vpop.permute.xlu2 %3764 }
 0x80e   : > { %v3844_v34 = vmul.f32 %v3759_v20, %v7442_v39 }
 0x810   : > { %4352 = vmatmul.msk.f32.gmra.mxu1 %vm182_vm0, %v3844_v34 }
 0x812   : > { %v3676_v0 = vpop.f32.mrf.mxu3 }
 0x813   : > { %v7584_v49 = vadd.f32 %v3676_v0, %v7153_v59 }
 0x815   : > { %3782 = vrot.lane.b32.xlu2 %v7584_v49, %s4567_s23 }
 0x818   : > { %4353 = vmatmul.msk.f32.gmra.mxu1 %vm182_vm0, %v3845_v5 }
 0x81a   : > { %v3679_v28 = vpop.f32.mrf.mxu3 }
 0x81b   : > { %v7591_v39 = vadd.f32 %v3679_v28, %v7153_v59 }
 0x81d   : > { %v3763_v27 = vpop.permute.xlu0 %3762  ;;  %3784 = vrot.lane.b32.xlu1 %v7591_v39, %s4567_s23 }
 0x81e   : > { %v3846_v45 = vmul.f32 %v3763_v27, %v7469_v7  ;;  %v3986_v25 = vpop.f32.mrf.mxu1  ;;  %v3847_v7 = vmul.f32 %v3765_v41, %v7482_v21 }
 0x81f   : > { %v3987_v1 = vadd.f32 %v3986_v25, %v7549_v54 }
 0x820   : > { %4354 = vmatmul.msk.f32.gmra.mxu1 %vm182_vm0, %v3846_v45 }
 0x821   : > { %v4081_v18 = vmul.f32 %v7552_v44, %v3987_v1 }
 0x822   : > { %v3682_v56 = vpop.f32.mrf.mxu3 }
 0x823   : > { %v4113_v2 = vadd.f32 %v4081_v18, %v6555_v40  ;;  %v7601_v17 = vadd.f32 %v3682_v56, %v7153_v59 }
 0x825   : > { %4145 = vst.msk [vmem:[%s7562_s8 + $0x8] sm:$0xff] %vm182_vm0, %v4113_v2  ;;  %3786 = vrot.lane.b32.xlu0 %v7601_v17, %s4567_s23 }
 0x826   : > { %v3989_v53 = vpop.f32.mrf.mxu1 }
 0x827   : > { %v3990_v46 = vadd.f32 %v3989_v53, %v7549_v54 }
 0x828   : > { %4355 = vmatmul.msk.f32.gmra.mxu1 %vm182_vm0, %v3847_v7 }
 0x829   : > { %v4082_v47 = vmul.f32 %v7552_v44, %v3990_v46 }
 0x82a   : > { %v3685_v10 = vpop.f32.mrf.mxu3 }
 0x82b   : > { %v4114_v40 = vadd.f32 %v4082_v47, %v6565_v23  ;;  %v7613_v24 = vadd.f32 %v3685_v10, %v7153_v59 }
 0x82d   : > { %v3767_v21 = vpop.permute.xlu1 %3766  ;;  %4146 = vst.msk [vmem:[%s7562_s8 + $0x10] sm:$0xff] %vm182_vm0, %v4114_v40  ;;  %3788 = vrot.lane.b32.xlu2 %v7613_v24, %s4567_s23 }
 0x82e   : > { %v3848_v32 = vmul.f32 %v3767_v21, %v7492_v50  ;;  %v3992_v42 = vpop.f32.mrf.mxu1 }
 0x82f   : > { %v3993_v19 = vadd.f32 %v3992_v42, %v7549_v54 }
 0x830   : > { %4356 = vmatmul.msk.f32.gmra.mxu1 %vm182_vm0, %v3848_v32 }
 0x831   : > { %v4083_v26 = vmul.f32 %v7552_v44, %v3993_v19 }
 0x832   : > { %v3688_v6 = vpop.f32.mrf.mxu3 }
 0x833   : > { %v4115_v23 = vadd.f32 %v4083_v26, %v6575_v52  ;;  %v7625_v11 = vadd.f32 %v3688_v6, %v7153_v59  ;;  %v3771_v52 = vpop.permute.xlu2 %3770 }
 0x835   : > { %v3769_v4 = vpop.permute.xlu0 %3768  ;;  %4147 = vst.msk [vmem:[%s7562_s8 + $0x18] sm:$0xff] %vm182_vm0, %v4115_v23  ;;  %3790 = vrot.lane.b32.xlu1 %v7625_v11, %s4567_s23 }
 0x836   : > { %v3849_v50 = vmul.f32 %v3769_v4, %v7499_v33  ;;  %v3995_v13 = vpop.f32.mrf.mxu1  ;;  %v3850_v33 = vmul.f32 %v3771_v52, %v7510_v38  ;;  %v7921_v4 = vld [vmem:[#allocation6_spill] sm:$0xff]  ;;  %v7922_v52 = vld [vmem:[#allocation4_spill] sm:$0xff] }
 0x837   : > { %v3996_v9 = vadd.f32 %v3995_v13, %v7549_v54 }
 0x838   : > { %4357 = vmatmul.msk.f32.gmra.mxu1 %vm182_vm0, %v3849_v50 }
 0x839   : > { %v4084_v57 = vmul.f32 %v7552_v44, %v3996_v9 }
 0x83a   : > { %v3691_v14 = vpop.f32.mrf.mxu3 }
 0x83b   : > { %v4116_v30 = vadd.f32 %v4084_v57, %v6585_v29  ;;  %v7637_v58 = vadd.f32 %v3691_v14, %v7153_v59 }
 0x83d   : > { %4148 = vst.msk [vmem:[%s7562_s8 + $0x20] sm:$0xff] %vm182_vm0, %v4116_v30  ;;  %3792 = vrot.lane.b32.xlu0 %v7637_v58, %s4567_s23 }
 0x83e   : > { %v3998_v12 = vpop.f32.mrf.mxu1 }
 0x83f   : > { %v3999_v22 = vadd.f32 %v3998_v12, %v7549_v54 }
 0x840   : > { %4358 = vmatmul.msk.f32.gmra.mxu1 %vm182_vm0, %v3850_v33 }
 0x841   : > { %v4085_v20 = vmul.f32 %v7552_v44, %v3999_v22 }
 0x843   : > { %v4117_v34 = vadd.f32 %v4085_v20, %v6595_v8  ;;  %v3777_v8 = vpop.permute.xlu2 %3776  ;;  %v7923_v20 = vld [vmem:[#allocation7_spill] sm:$0xff] }
 0x845   : > { %v3773_v29 = vpop.permute.xlu1 %3772  ;;  %4149 = vst.msk [vmem:[%s7562_s8 + $0x28] sm:$0xff] %vm182_vm0, %v4117_v34 }
 0x846   : > { %v3851_v36 = vmul.f32 %v3773_v29, %v7519_v62  ;;  %v3853_v62 = vmul.f32 %v3777_v8, %v7531_v35 }
 0x848   : > { %4359 = vmatmul.msk.f32.gmra.mxu1 %vm182_vm0, %v3851_v36 }
 0x84c   : > { %v3694_v38 = vpop.f32.mrf.mxu3 }
 0x84d   : > { %v7653_v0 = vadd.f32 %v3694_v38, %v7153_v59  ;;  %v3775_v5 = vpop.permute.xlu0 %3774 }
 0x84e   : > { %v3852_v28 = vmul.f32 %v3775_v5, %v7526_v43 }
 0x84f   : > { %3794 = vrot.lane.b32.xlu2 %v7653_v0, %s4567_s23 }
 0x850   : > { %4360 = vmatmul.msk.f32.gmra.mxu1 %vm182_vm0, %v3852_v28  ;;  %v7924_v28 = vld [vmem:[#allocation5_spill] sm:$0xff] }
 0x854   : > { %v3697_v27 = vpop.f32.mrf.mxu3 }
 0x855   : > { %v7660_v45 = vadd.f32 %v3697_v27, %v7153_v59 }
 0x857   : > { %3796 = vrot.lane.b32.xlu1 %v7660_v45, %s4567_s23 }
 0x858   : > { %4361 = vmatmul.msk.f32.gmra.mxu1 %vm182_vm0, %v3853_v62 }
 0x864   : > { %v4001_v25 = vpop.f32.mrf.mxu1 }
 0x865   : > { %v4002_v43 = vadd.f32 %v4001_v25, %v7549_v54 }
 0x867   : > { %v4086_v1 = vmul.f32 %v7552_v44, %v4002_v43 }
 0x869   : > { %v4118_v18 = vadd.f32 %v4086_v1, %v6605_v3 }
 0x86b   : > { %4150 = vst.msk [vmem:[%s7562_s8 + $0x30] sm:$0xff] %vm182_vm0, %v4118_v18 }
 0x86c   : > { %v4004_v41 = vpop.f32.mrf.mxu1 }
 0x86d   : > { %v4005_v56 = vadd.f32 %v4004_v41, %v7549_v54 }
 0x86e   : > { %v3700_v2 = vpop.f32.mrf.mxu3 }
 0x86f   : > { %v4087_v35 = vmul.f32 %v7552_v44, %v4005_v56  ;;  %v7674_v7 = vadd.f32 %v3700_v2, %v7153_v59  ;;  %v3783_v26 = vpop.permute.xlu2 %3782 }
 0x870   : > { %v3856_v23 = vmul.f32 %v3783_v26, %v7584_v49 }
 0x871   : > { %v4119_v53 = vadd.f32 %v4087_v35, %v6654_v15  ;;  %3798 = vrot.lane.b32.xlu0 %v7674_v7, %s4567_s23 }
 0x873   : > { %4151 = vst.msk [vmem:[%s7562_s8 + $0x38] sm:$0xff] %vm182_vm0, %v4119_v53 }
 0x876   : > { %v3703_v3 = vpop.f32.mrf.mxu3 }
 0x877   : > { %v3779_v46 = vpop.permute.xlu1 %3778  ;;  %v7682_v47 = vadd.f32 %v3703_v3, %v7153_v59 }
 0x878   : > { %v3854_v10 = vmul.f32 %v3779_v46, %v7570_v63 }
 0x879   : > { %3800 = vrot.lane.b32.xlu2 %v7682_v47, %s4567_s23 }
 0x87a   : > { %4362 = vmatmul.msk.f32.gmra.mxu1 %vm182_vm0, %v3854_v10 }
 0x87c   : > { %v4007_v40 = vpop.f32.mrf.mxu1 }
 0x87d   : > { %v4008_v15 = vadd.f32 %v4007_v40, %v7549_v54 }
 0x87f   : > { %v4088_v21 = vmul.f32 %v7552_v44, %v4008_v15  ;;  %v3781_v32 = vpop.permute.xlu0 %3780  ;;  %v7925_v15 = vld [vmem:[#allocation8_spill] sm:$0xff] }
 0x880   : > { %v3855_v19 = vmul.f32 %v3781_v32, %v7577_v55 }
 0x881   : > { %v4120_v42 = vadd.f32 %v4088_v21, %v6668_v51 }
 0x882   : > { %4363 = vmatmul.msk.f32.gmra.mxu1 %vm182_vm0, %v3855_v19  ;;  %v7926_v19 = vld [vmem:[#allocation3_spill] sm:$0xff] }
 0x883   : > { %4152 = vst.msk [vmem:[%s7562_s8 + $0x40] sm:$0xff] %vm182_vm0, %v4120_v42 }
 0x884   : > { %v4010_v59 = vpop.f32.mrf.mxu1 }
 0x885   : > { %v4011_v63 = vadd.f32 %v4010_v59, %v7549_v54 }
 0x887   : > { %v4089_v6 = vmul.f32 %v7552_v44, %v4011_v63  ;;  %v3789_v29 = vpop.permute.xlu2 %3788 }
 0x888   : > { %v3859_v5 = vmul.f32 %v3789_v29, %v7613_v24  ;;  %v7930_v29 = vld [vmem:[#allocation13_spill] sm:$0xff] }
 0x889   : > { %v4121_v50 = vadd.f32 %v4089_v6, %v7921_v4  ;;  %v7927_v4 = vld [vmem:[#allocation9_spill] sm:$0xff] }
 0x88a   : > { %4364 = vmatmul.msk.f32.gmra.mxu1 %vm182_vm0, %v3856_v23 }
 0x88b   : > { %4153 = vst.msk [vmem:[%s7562_s8 + $0x48] sm:$0xff] %vm182_vm0, %v4121_v50 }
 0x88d   : > { %v4013_v51 = vpop.f32.mrf.mxu1 }
 0x88e   : > { %v4014_v55 = vadd.f32 %v4013_v51, %v7549_v54 }
 0x88f   : > { %v3785_v9 = vpop.permute.xlu1 %3784 }
 0x890   : > { %v4090_v13 = vmul.f32 %v7552_v44, %v4014_v55  ;;  %v3857_v57 = vmul.f32 %v3785_v9, %v7591_v39 }
 0x892   : > { %v4122_v14 = vadd.f32 %v4090_v13, %v7922_v52  ;;  %4365 = vmatmul.msk.f32.gmra.mxu1 %vm182_vm0, %v3857_v57 }
 0x894   : > { %4154 = vst.msk [vmem:[%s7562_s8 + $0x50] sm:$0xff] %vm182_vm0, %v4122_v14 }
 0x895   : > { %v4016_v49 = vpop.f32.mrf.mxu1 }
 0x896   : > { %v4017_v30 = vadd.f32 %v4016_v49, %v7549_v54 }
 0x897   : > { %v3787_v12 = vpop.permute.xlu0 %3786 }
 0x898   : > { %v4091_v33 = vmul.f32 %v7552_v44, %v4017_v30  ;;  %v3858_v22 = vmul.f32 %v3787_v12, %v7601_v17 }
 0x89a   : > { %v4123_v34 = vadd.f32 %v4091_v33, %v7923_v20  ;;  %4366 = vmatmul.msk.f32.gmra.mxu1 %vm182_vm0, %v3858_v22  ;;  %v7929_v22 = vld [vmem:[#allocation12_spill] sm:$0xff] }
 0x89c   : > { %4155 = vst.msk [vmem:[%s7562_s8 + $0x58] sm:$0xff] %vm182_vm0, %v4123_v34 }
 0x89d   : > { %v4019_v39 = vpop.f32.mrf.mxu1 }
 0x89e   : > { %v4020_v36 = vadd.f32 %v4019_v39, %v7549_v54 }
 0x8a0   : > { %v4092_v38 = vmul.f32 %v7552_v44, %v4020_v36 }
 0x8a2   : > { %v4124_v8 = vadd.f32 %v4092_v38, %v7924_v28  ;;  %4367 = vmatmul.msk.f32.gmra.mxu1 %vm182_vm0, %v3859_v5  ;;  %v7931_v28 = vld [vmem:[#allocation11_spill] sm:$0xff] }
 0x8a4   : > { %4156 = vst.msk [vmem:[%s7562_s8 + $0x60] sm:$0xff] %vm182_vm0, %v4124_v8 }
 0x8a5   : > { %v4022_v17 = vpop.f32.mrf.mxu1 }
 0x8a6   : > { %v4023_v27 = vadd.f32 %v4022_v17, %v7549_v54 }
 0x8a7   : > { %v3791_v25 = vpop.permute.xlu1 %3790 }
 0x8a8   : > { %v4093_v62 = vmul.f32 %v7552_v44, %v4023_v27  ;;  %v3860_v43 = vmul.f32 %v3791_v25, %v7625_v11  ;;  %v7932_v25 = vld [vmem:[#allocation14_spill] sm:$0xff] }
 0x8a9   : > { %v3795_v11 = vpop.permute.xlu2 %3794 }
 0x8aa   : > { %v4125_v1 = vadd.f32 %v4093_v62, %v6720_v48  ;;  %4368 = vmatmul.msk.f32.gmra.mxu1 %vm182_vm0, %v3860_v43  ;;  %v3862_v46 = vmul.f32 %v3795_v11, %v7653_v0  ;;  %v7934_v11 = vld [vmem:[#allocation16_spill] sm:$0xff] }
 0x8ac   : > { %4157 = vst.msk [vmem:[%s7562_s8 + $0x68] sm:$0xff] %vm182_vm0, %v4125_v1 }
 0x8ad   : > { %v4025_v24 = vpop.f32.mrf.mxu1 }
 0x8ae   : > { %v4026_v18 = vadd.f32 %v4025_v24, %v7549_v54 }
 0x8af   : > { %v3793_v56 = vpop.permute.xlu0 %3792 }
 0x8b0   : > { %v4094_v41 = vmul.f32 %v7552_v44, %v4026_v18  ;;  %v3861_v2 = vmul.f32 %v3793_v56, %v7637_v58 }
 0x8b2   : > { %v4126_v35 = vadd.f32 %v4094_v41, %v6737_v31  ;;  %4369 = vmatmul.msk.f32.gmra.mxu1 %vm182_vm0, %v3861_v2  ;;  %v7933_v41 = vld [vmem:[#allocation15_spill] sm:$0xff] }
 0x8b4   : > { %4158 = vst.msk [vmem:[%s7562_s8 + $0x70] sm:$0xff] %vm182_vm0, %v4126_v35 }
 0x8b5   : > { %v4028_v48 = vpop.f32.mrf.mxu1 }
 0x8b6   : > { %v4029_v53 = vadd.f32 %v4028_v48, %v7549_v54 }
 0x8b8   : > { %v4095_v3 = vmul.f32 %v7552_v44, %v4029_v53 }
 0x8ba   : > { %v4127_v10 = vadd.f32 %v4095_v3, %v6762_v16  ;;  %4370 = vmatmul.msk.f32.gmra.mxu1 %vm182_vm0, %v3862_v46 }
 0x8bc   : > { %4159 = vst.msk [vmem:[%s7562_s8 + $0x78] sm:$0xff] %vm182_vm0, %v4127_v10 }
 0x8bd   : > { %v4031_v31 = vpop.f32.mrf.mxu1 }
 0x8be   : > { %v4032_v58 = vadd.f32 %v4031_v31, %v7549_v54  ;;  %v7935_v31 = vld [vmem:[#allocation17_spill] sm:$0xff] }
 0x8c0   : > { %v4096_v40 = vmul.f32 %v7552_v44, %v4032_v58 }
 0x8c2   : > { %v4128_v21 = vadd.f32 %v4096_v40, %v7925_v15 }
 0x8c4   : > { %4160 = vst.msk [vmem:[%s7562_s8 + $0x80] sm:$0xff] %vm182_vm0, %v4128_v21 }
 0x8c5   : > { %v4034_v32 = vpop.f32.mrf.mxu1 }
 0x8c6   : > { %v4035_v42 = vadd.f32 %v4034_v32, %v7549_v54  ;;  %v7936_v32 = vld [vmem:[#allocation18_spill] sm:$0xff] }
 0x8c8   : > { %v4097_v16 = vmul.f32 %v7552_v44, %v4035_v42 }
 0x8c9   : > { %v3797_v0 = vpop.permute.xlu1 %3796 }
 0x8ca   : > { %v4129_v59 = vadd.f32 %v4097_v16, %v7926_v19  ;;  %v3863_v63 = vmul.f32 %v3797_v0, %v7660_v45  ;;  %v7928_v45 = vld [vmem:[#allocation10_spill] sm:$0xff] }
 0x8cc   : > { %4161 = vst.msk [vmem:[%s7562_s8 + $0x88] sm:$0xff] %vm182_vm0, %v4129_v59  ;;  %4371 = vmatmul.msk.f32.gmra.mxu1 %vm182_vm0, %v3863_v63 }
 0x8cd   : > { %v4037_v26 = vpop.f32.mrf.mxu1 }
 0x8ce   : > { %v4038_v6 = vadd.f32 %v4037_v26, %v7549_v54 }
 0x8d0   : > { %v4098_v23 = vmul.f32 %v7552_v44, %v4038_v6 }
 0x8d2   : > { %v4130_v50 = vadd.f32 %v4098_v23, %v7927_v4  ;;  %v7937_v23 = vld [vmem:[#allocation19_spill] sm:$0xff] }
 0x8d3   : > { %v3801_v14 = vpop.permute.xlu2 %3800 }
 0x8d4   : > { %4162 = vst.msk [vmem:[%s7562_s8 + $0x90] sm:$0xff] %vm182_vm0, %v4130_v50  ;;  %v3865_v49 = vmul.f32 %v3801_v14, %v7682_v47 }
 0x8d5   : > { %v4040_v51 = vpop.f32.mrf.mxu1 }
 0x8d6   : > { %v4041_v55 = vadd.f32 %v4040_v51, %v7549_v54 }
 0x8d8   : > { %v4099_v13 = vmul.f32 %v7552_v44, %v4041_v55 }
 0x8da   : > { %v4131_v9 = vadd.f32 %v4099_v13, %v7928_v45 }
 0x8dc   : > { %4163 = vst.msk [vmem:[%s7562_s8 + $0x98] sm:$0xff] %vm182_vm0, %v4131_v9 }
 0x8e3   : > { %v3799_v57 = vpop.permute.xlu0 %3798 }
 0x8e4   : > { %v3864_v52 = vmul.f32 %v3799_v57, %v7674_v7 }
 0x8e6   : > { %4372 = vmatmul.msk.f32.gmra.mxu1 %vm182_vm0, %v3864_v52 }
 0x8ee   : > { %4373 = vmatmul.msk.f32.gmra.mxu1 %vm182_vm0, %v3865_v49 }
 0x8f7   : > { %v4043_v30 = vpop.f32.mrf.mxu1 }
 0x8f8   : > { %v4044_v33 = vadd.f32 %v4043_v30, %v7549_v54 }
 0x8fa   : > { %v4100_v12 = vmul.f32 %v7552_v44, %v4044_v33 }
 0x8fc   : > { %v4132_v20 = vadd.f32 %v4100_v12, %v7929_v22 }
 0x8fe   : > { %4164 = vst.msk [vmem:[%s7562_s8 + $0xa0] sm:$0xff] %vm182_vm0, %v4132_v20 }
 0x8ff   : > { %v4046_v34 = vpop.f32.mrf.mxu1 }
 0x900   : > { %v4047_v7 = vadd.f32 %v4046_v34, %v7549_v54 }
 0x902   : > { %v4101_v39 = vmul.f32 %v7552_v44, %v4047_v7 }
 0x904   : > { %v4133_v47 = vadd.f32 %v4101_v39, %v7930_v29 }
 0x906   : > { %4165 = vst.msk [vmem:[%s7562_s8 + $0xa8] sm:$0xff] %vm182_vm0, %v4133_v47 }
 0x907   : > { %v4049_v36 = vpop.f32.mrf.mxu1 }
 0x908   : > { %v4050_v38 = vadd.f32 %v4049_v36, %v7549_v54 }
 0x90a   : > { %v4102_v5 = vmul.f32 %v7552_v44, %v4050_v38 }
 0x90c   : > { %v4134_v8 = vadd.f32 %v4102_v5, %v7931_v28 }
 0x90e   : > { %4166 = vst.msk [vmem:[%s7562_s8 + $0xb0] sm:$0xff] %vm182_vm0, %v4134_v8 }
 0x90f   : > { %v4052_v17 = vpop.f32.mrf.mxu1 }
 0x910   : > { %v4053_v27 = vadd.f32 %v4052_v17, %v7549_v54 }
 0x912   : > { %v4103_v62 = vmul.f32 %v7552_v44, %v4053_v27 }
 0x914   : > { %v4135_v43 = vadd.f32 %v4103_v62, %v7932_v25 }
 0x916   : > { %4167 = vst.msk [vmem:[%s7562_s8 + $0xb8] sm:$0xff] %vm182_vm0, %v4135_v43 }
 0x917   : > { %v4055_v1 = vpop.f32.mrf.mxu1 }
 0x918   : > { %v4056_v24 = vadd.f32 %v4055_v1, %v7549_v54 }
 0x91a   : > { %v4104_v18 = vmul.f32 %v7552_v44, %v4056_v24 }
 0x91c   : > { %v4136_v56 = vadd.f32 %v4104_v18, %v7933_v41 }
 0x91e   : > { %4168 = vst.msk [vmem:[%s7562_s8 + $0xc0] sm:$0xff] %vm182_vm0, %v4136_v56 }
 0x91f   : > { %v4058_v2 = vpop.f32.mrf.mxu1 }
 0x920   : > { %v4059_v35 = vadd.f32 %v4058_v2, %v7549_v54 }
 0x922   : > { %v4105_v48 = vmul.f32 %v7552_v44, %v4059_v35 }
 0x924   : > { %v4137_v53 = vadd.f32 %v4105_v48, %v7934_v11 }
 0x926   : > { %4169 = vst.msk [vmem:[%s7562_s8 + $0xc8] sm:$0xff] %vm182_vm0, %v4137_v53 }
 0x927   : > { %v4061_v3 = vpop.f32.mrf.mxu1 }
 0x928   : > { %v4062_v46 = vadd.f32 %v4061_v3, %v7549_v54 }
 0x92a   : > { %v4106_v10 = vmul.f32 %v7552_v44, %v4062_v46 }
 0x92c   : > { %v4138_v58 = vadd.f32 %v4106_v10, %v7935_v31 }
 0x92e   : > { %4170 = vst.msk [vmem:[%s7562_s8 + $0xd0] sm:$0xff] %vm182_vm0, %v4138_v58 }
 0x92f   : > { %v4064_v40 = vpop.f32.mrf.mxu1 }
 0x930   : > { %v4065_v15 = vadd.f32 %v4064_v40, %v7549_v54 }
 0x932   : > { %v4107_v21 = vmul.f32 %v7552_v44, %v4065_v15 }
 0x934   : > { %v4139_v42 = vadd.f32 %v4107_v21, %v7936_v32 }
 0x936   : > { %4171 = vst.msk [vmem:[%s7562_s8 + $0xd8] sm:$0xff] %vm182_vm0, %v4139_v42 }
 0x937   : > { %v4067_v16 = vpop.f32.mrf.mxu1 }
 0x938   : > { %v4068_v0 = vadd.f32 %v4067_v16, %v7549_v54 }
 0x93a   : > { %v4108_v19 = vmul.f32 %v7552_v44, %v4068_v0 }
 0x93c   : > { %v4140_v59 = vadd.f32 %v4108_v19, %v6974_v37 }
 0x93e   : > { %4172 = vst.msk [vmem:[%s7562_s8 + $0xe0] sm:$0xff] %vm182_vm0, %v4140_v59 }
 0x949   : > { %v4070_v63 = vpop.f32.mrf.mxu1 }
 0x94a   : > { %v4071_v26 = vadd.f32 %v4070_v63, %v7549_v54 }
 0x94c   : > { %v4109_v6 = vmul.f32 %v7552_v44, %v4071_v26 }
 0x94e   : > { %v4141_v4 = vadd.f32 %v4109_v6, %v7937_v23 }
 0x950   : > { %4173 = vst.msk [vmem:[%s7562_s8 + $0xe8] sm:$0xff] %vm182_vm0, %v4141_v4 }
 0x963   : > { %v4073_v50 = vpop.f32.mrf.mxu1 }
 0x964   : > { %v4074_v51 = vadd.f32 %v4073_v50, %v7549_v54 }
 0x966   : > { %v4110_v55 = vmul.f32 %v7552_v44, %v4074_v51 }
 0x968   : > { %v4142_v13 = vadd.f32 %v4110_v55, %v7032_v60 }
 0x96a   : > { %4174 = vst.msk [vmem:[%s7562_s8 + $0xf0] sm:$0xff] %vm182_vm0, %v4142_v13 }
 0x96b   : > { %v4076_v37 = vpop.f32.mrf.mxu1 }
 0x96c   : > { %v4077_v45 = vadd.f32 %v4076_v37, %v7549_v54 }
 0x96e   : > { %v4111_v9 = vmul.f32 %v7552_v44, %v4077_v45 }
 0x970   : > { %v4143_v57 = vadd.f32 %v4111_v9, %v7035_v61 }
 0x972   : > { %4175 = vst.msk [vmem:[%s7562_s8 + $0xf8] sm:$0xff] %vm182_vm0, %v4143_v57 }
 0x973 PF: > { %s12_s9 = sadd.s32 1, %s4563_s9  }
 0x974   : > { %p9_p4 = scmp.ge.s32.totalorder %s12_s9, 4  }
 0x976   :  { %11 = sbr.rel (!%p9_p4) target bundleno = 1 (0x1), region = 60 }

</bundles_post_ra>
